<compile_context>
chip_gen: v5e
topology: v5e:2x2
jax: 0.10.0
libtpu: 0.0.40
codegen_flags: <defaults>
</compile_context>

<pallas_src>
import functools

import jax
import jax.numpy as jnp
import numpy as np
from jax.experimental import pallas as pl
from jax.experimental.pallas import tpu as pltpu

EPS = 1.001e-05  # BatchNorm2d eps used by the module


def _fused_msconv_kernel(x_ref, w_ref, scale_ref, shift_ref, o_ref, patches_ref,
                         *, tap_bases, cin, tile_hw, n_row_tiles):
    """Fused 4-branch dilated conv + BN + ReLU for one (batch, row-tile) block.

    x_ref       : (Cin, Lf)          bf16  zero-padded, row-flattened image
    w_ref       : (4*Cout, K_total)  bf16  block-diagonal conv weights
    scale_ref   : (4*Cout, 1)        f32   BN scale per output channel
    shift_ref   : (4*Cout, 1)        f32   BN shift per output channel
    o_ref       : (4*Cout, tile_hw)  f32   wide NCHW output tile
    patches_ref : (K_total, tile_hw) bf16  scratch im2col patch matrix
    """
    if n_row_tiles == 1:
        row_off = 0  # fully static tap slices
    else:
        # tile_hw is a multiple of 128 whenever n_row_tiles > 1 (wrapper asserts).
        row_off = pl.multiple_of(pl.program_id(1) * tile_hw, 128)

    # Build the im2col patch matrix: with a row-flattened image every dilated
    # tap is a *contiguous* lane window, written straight into bf16 scratch.
    for t, base in enumerate(tap_bases):
        patches_ref[pl.ds(t * cin, cin), :] = x_ref[:, pl.ds(base + row_off, tile_hw)]

    # ONE MXU contraction for all four branches (M = 4*Cout = 128).
    acc = jnp.dot(w_ref[...], patches_ref[...], preferred_element_type=jnp.float32)

    # BN (inference) applied post-accumulation in f32, then ReLU.
    y = jnp.maximum(acc * scale_ref[...] + shift_ref[...], 0.0)
    o_ref[...] = y.astype(o_ref.dtype)


def _pick_row_tile(h, wp, c_total, k_total, budget_bytes):
    """Largest row tile TH (divisor of H) whose VMEM footprint fits the budget.

    Tiles smaller than H must keep the (8,128) BlockSpec rule: TH*Wp % 128 == 0.
    """
    def tile_bytes(th):
        out_blk = 2 * c_total * th * wp * 4      # double-buffered f32 output
        patches = k_total * th * wp * 2          # bf16 scratch (single copy)
        return out_blk + patches

    candidates = [th for th in range(1, h + 1)
                  if h % th == 0 and (th == h or (th * wp) % 128 == 0)]
    fitting = [th for th in candidates if tile_bytes(th) <= budget_bytes]
    if fitting:
        return max(fitting)
    return min(candidates)  # smallest legal tile; may still need a higher vmem limit


def multiscale_conv_block(x_nchw, params, kernel_sizes, dilation_rates,
                          *, vmem_tile_budget=10 << 20):
    """Pallas implementation of Multiscale_Conv_Block.forward (NCHW in/out)."""
    N, Cin, H, W = x_nchw.shape
    Cout = params[0]["w"].shape[0]
    n_branch = len(kernel_sizes)
    Ctot = n_branch * Cout

    pads = [d * (k - 1) // 2 for k, d in zip(kernel_sizes, dilation_rates)]
    pad_max = max(pads)
    Hp, Wp = H + 2 * pad_max, W + 2 * pad_max
    hwp = H * Wp  # wide flattened spatial extent (lane axis of the output)

    # Pad ONCE to the largest halo, row-flatten, cast to bf16 once (MXU dtype).
    xp = jnp.pad(x_nchw.astype(jnp.float32),
                 ((0, 0), (0, 0), (pad_max, pad_max), (pad_max, pad_max)))
    xflat = xp.reshape(N, Cin, Hp * Wp).astype(jnp.bfloat16)

    # Static flat tap offsets, concatenated over branches in weight-column order.
    tap_bases = []
    for k, d, p in zip(kernel_sizes, dilation_rates, pads):
        off = pad_max - p
        assert off >= 0, "branch halo exceeds the shared max-halo padding"
        tap_bases += [(off + ky * d) * Wp + (off + kx * d)
                      for ky in range(k) for kx in range(k)]
    tap_bases = tuple(tap_bases)
    K_total = len(tap_bases) * Cin

    # Tail padding so the widest tap's contiguous read stays in bounds.
    lf_needed = max(tap_bases) + hwp
    Lf = ((max(lf_needed, Hp * Wp) + 127) // 128) * 128
    assert max(tap_bases) + hwp <= Lf
    xflat = jnp.pad(xflat, ((0, 0), (0, 0), (0, Lf - Hp * Wp)))

    # Block-diagonal weight (raw conv weights, bf16): branch b occupies rows
    # [b*Cout, (b+1)*Cout) and its own K columns, K ordered (ky, kx, c) to
    # match the patch-row ordering.  BN scale/shift stay in f32.
    w_big = jnp.zeros((Ctot, K_total), jnp.float32)
    scales, shifts = [], []
    koff = 0
    for b, prm in enumerate(params):
        k = kernel_sizes[b]
        kb = k * k * Cin
        wb = jnp.transpose(prm["w"], (0, 2, 3, 1)).reshape(Cout, kb)
        w_big = w_big.at[b * Cout:(b + 1) * Cout, koff:koff + kb].set(wb)
        koff += kb
        scale = prm["gamma"] / jnp.sqrt(prm["var"] + EPS)
        scales.append(scale)
        shifts.append(prm["beta"] - prm["mean"] * scale)
    assert koff == K_total
    w_big = w_big.astype(jnp.bfloat16)
    scale_all = jnp.concatenate(scales).reshape(Ctot, 1).astype(jnp.float32)
    shift_all = jnp.concatenate(shifts).reshape(Ctot, 1).astype(jnp.float32)

    # Row tiling keeps the per-step VMEM footprint inside the budget (derived
    # from v7x's 64 MiB physical VMEM / the 16-32 MiB default scoped limits).
    TH = _pick_row_tile(H, Wp, Ctot, K_total, vmem_tile_budget)
    n_row_tiles = H // TH
    tile_hw = TH * Wp
    assert n_row_tiles * TH == H
    assert n_row_tiles == 1 or tile_hw % 128 == 0

    kern = functools.partial(_fused_msconv_kernel, tap_bases=tap_bases,
                             cin=Cin, tile_hw=tile_hw, n_row_tiles=n_row_tiles)

    in_specs = [
        pl.BlockSpec((None, Cin, Lf), lambda n, r: (n, 0, 0)),   # whole image, resident per n
        pl.BlockSpec((Ctot, K_total), lambda n, r: (0, 0)),      # weights resident in VMEM
        pl.BlockSpec((Ctot, 1), lambda n, r: (0, 0)),            # BN scale
        pl.BlockSpec((Ctot, 1), lambda n, r: (0, 0)),            # BN shift
    ]

    out_wide = pl.pallas_call(
        kern,
        out_shape=jax.ShapeDtypeStruct((N, Ctot, hwp), jnp.float32),
        grid=(N, n_row_tiles),
        in_specs=in_specs,
        out_specs=pl.BlockSpec((None, Ctot, tile_hw), lambda n, r: (n, 0, r)),
        scratch_shapes=[pltpu.VMEM((K_total, tile_hw), jnp.bfloat16)],
        compiler_params=pltpu.CompilerParams(
            dimension_semantics=("parallel", "parallel"),
            vmem_limit_bytes=32 * 1024 * 1024),
    )(xflat, w_big, scale_all, shift_all)

    # Wide flat output -> NCHW: reshape is layout-free, slice drops halo cols.
    # TODO(synk): the column drop is an extra XLA slice; a downstream consumer
    # could take the wide (H, Wp) layout and fuse the drop instead.
    return out_wide.reshape(N, Ctot, H, Wp)[:, :, :, :W]


# ---------------- reference (plain JAX) for a sanity check ----------------
def _reference_branch(x_nchw, w_oihw, gamma, beta, mean, var, ksize, dil):
    pad = dil * (ksize - 1) // 2
    y = jax.lax.conv_general_dilated(
        x_nchw, w_oihw, window_strides=(1, 1),
        padding=[(pad, pad), (pad, pad)], rhs_dilation=(dil, dil),
        dimension_numbers=("NCHW", "OIHW", "NCHW"),
        precision=jax.lax.Precision.HIGHEST)
    scale = gamma / jnp.sqrt(var + EPS)
    shift = beta - mean * scale
    y = y * scale[None, :, None, None] + shift[None, :, None, None]
    return jnp.maximum(y, 0.0)


def _reference(x_nchw, params, kernel_sizes, dilation_rates):
    outs = [_reference_branch(x_nchw, params[i]["w"], params[i]["gamma"],
                              params[i]["beta"], params[i]["mean"],
                              params[i]["var"], k, d)
            for i, (k, d) in enumerate(zip(kernel_sizes, dilation_rates))]
    return jnp.concatenate(outs, axis=1)


# ---------------- deterministic parameter init ----------------
def _init_params(key, cin, cout, kernel_sizes):
    params = []
    for k in kernel_sizes:
        key, k1, k2, k3, k4, k5 = jax.random.split(key, 6)
        fan_in, fan_out = cin * k * k, cout * k * k
        bound = np.sqrt(6.0 / (fan_in + fan_out))          # xavier_uniform_
        w = jax.random.uniform(k1, (cout, cin, k, k), jnp.float32, -bound, bound)
        # Synthetic (deterministic) BN params / running stats, inference mode.
        gamma = jax.random.uniform(k2, (cout,), jnp.float32, 0.5, 1.5)
        beta = jax.random.uniform(k3, (cout,), jnp.float32, -0.5, 0.5)
        mean = jax.random.uniform(k4, (cout,), jnp.float32, -0.5, 0.5)
        var = jax.random.uniform(k5, (cout,), jnp.float32, 0.5, 1.5)
        params.append(dict(w=w, gamma=gamma, beta=beta, mean=mean, var=var))
    return params


if __name__ == "__main__":
    # NuClick-style config: Multiscale_Conv_Block(kernelSizes=[3,3,5,5],
    # dilatationRates=[1,3,3,6], num_output_channels=32)
    kernel_sizes = [3, 3, 5, 5]
    dilation_rates = [1, 3, 3, 6]
    N, Cin, H, W, Cout = 2, 4, 16, 16, 32

    key = jax.random.PRNGKey(0)
    kx, kp = jax.random.split(key)
    x = jax.random.normal(kx, (N, Cin, H, W), jnp.float32)   # NCHW like PyTorch
    params = _init_params(kp, Cin, Cout, kernel_sizes)

    out = multiscale_conv_block(x, params, kernel_sizes, dilation_rates)
    out = jax.block_until_ready(out)
    assert out.shape == (N, 4 * Cout, H, W), out.shape

    ref = jax.block_until_ready(_reference(x, params, kernel_sizes, dilation_rates))
    # bf16 MXU inputs with f32 accumulation -> compare at a bf16-appropriate tol.
    np.testing.assert_allclose(np.asarray(out), np.asarray(ref), rtol=2e-2, atol=2e-2)

    print("KERNEL_OK")
</pallas_src>

<mosaic_0001>
module attributes {stable_mosaic.version = 11 : i64} {
  func.func @_fused_msconv_kernel(%arg0: i32, %arg1: i32, %arg2: memref<1x4x1664xbf16, #tpu.memory_space<vmem>>, %arg3: memref<128x272xbf16, #tpu.memory_space<vmem>>, %arg4: memref<128x1xf32, #tpu.memory_space<vmem>>, %arg5: memref<128x1xf32, #tpu.memory_space<vmem>>, %arg6: memref<1x128x640xf32, #tpu.memory_space<vmem>>, %arg7: memref<272x640xbf16, #tpu.memory_space<vmem>>) attributes {dimension_semantics = [#tpu.dimension_semantics<parallel>, #tpu.dimension_semantics<parallel>], iteration_bounds = array<i64: 2, 1>, scalar_prefetch = 0 : i64, scratch_operands = 1 : i64, tpu.core_type = #tpu.core_type<tc>, window_params = [{transform_indices = @transform_0, window_bounds = array<i64: 1, 4, 1664>}, {pipeline_mode = #tpu.pipeline_mode<synchronous>, transform_indices = @transform_1, window_bounds = array<i64: 128, 272>}, {pipeline_mode = #tpu.pipeline_mode<synchronous>, transform_indices = @transform_2, window_bounds = array<i64: 128, 1>}, {pipeline_mode = #tpu.pipeline_mode<synchronous>, transform_indices = @transform_3, window_bounds = array<i64: 128, 1>}, {transform_indices = @transform_4, window_bounds = array<i64: 1, 128, 640>}]} {
    %c0 = arith.constant 0 : index
    %c0_0 = arith.constant 0 : index
    %c451 = arith.constant 451 : index
    %0 = vector.load %arg2[%c0, %c0_0, %c451] : memref<1x4x1664xbf16, #tpu.memory_space<vmem>>, vector<1x4x640xbf16>
    %1 = vector.shape_cast %0 : vector<1x4x640xbf16> to vector<4x640xbf16>
    %c0_1 = arith.constant 0 : index
    %c0_2 = arith.constant 0 : index
    %2 = vector.load %arg7[%c0_1, %c0_2] : memref<272x640xbf16, #tpu.memory_space<vmem>>, vector<4x640xbf16>
    tpu.vector_store %arg7[%c0_1, %c0_2], %1 {strides = array<i32>} : memref<272x640xbf16, #tpu.memory_space<vmem>>, vector<4x640xbf16>,
    %c0_3 = arith.constant 0 : index
    %c0_4 = arith.constant 0 : index
    %c452 = arith.constant 452 : index
    %3 = vector.load %arg2[%c0_3, %c0_4, %c452] : memref<1x4x1664xbf16, #tpu.memory_space<vmem>>, vector<1x4x640xbf16>
    %4 = vector.shape_cast %3 : vector<1x4x640xbf16> to vector<4x640xbf16>
    %c4 = arith.constant 4 : index
    %c0_5 = arith.constant 0 : index
    %5 = vector.load %arg7[%c4, %c0_5] : memref<272x640xbf16, #tpu.memory_space<vmem>>, vector<4x640xbf16>
    tpu.vector_store %arg7[%c4, %c0_5], %4 {strides = array<i32>} : memref<272x640xbf16, #tpu.memory_space<vmem>>, vector<4x640xbf16>,
    %c0_6 = arith.constant 0 : index
    %c0_7 = arith.constant 0 : index
    %c453 = arith.constant 453 : index
    %6 = vector.load %arg2[%c0_6, %c0_7, %c453] : memref<1x4x1664xbf16, #tpu.memory_space<vmem>>, vector<1x4x640xbf16>
    %7 = vector.shape_cast %6 : vector<1x4x640xbf16> to vector<4x640xbf16>
    %c8 = arith.constant 8 : index
    %c0_8 = arith.constant 0 : index
    %8 = vector.load %arg7[%c8, %c0_8] : memref<272x640xbf16, #tpu.memory_space<vmem>>, vector<4x640xbf16>
    tpu.vector_store %arg7[%c8, %c0_8], %7 {strides = array<i32>} : memref<272x640xbf16, #tpu.memory_space<vmem>>, vector<4x640xbf16>,
    %c0_9 = arith.constant 0 : index
    %c0_10 = arith.constant 0 : index
    %c491 = arith.constant 491 : index
    %9 = vector.load %arg2[%c0_9, %c0_10, %c491] : memref<1x4x1664xbf16, #tpu.memory_space<vmem>>, vector<1x4x640xbf16>
    %10 = vector.shape_cast %9 : vector<1x4x640xbf16> to vector<4x640xbf16>
    %c12 = arith.constant 12 : index
    %c0_11 = arith.constant 0 : index
    %11 = vector.load %arg7[%c12, %c0_11] : memref<272x640xbf16, #tpu.memory_space<vmem>>, vector<4x640xbf16>
    tpu.vector_store %arg7[%c12, %c0_11], %10 {strides = array<i32>} : memref<272x640xbf16, #tpu.memory_space<vmem>>, vector<4x640xbf16>,
    %c0_12 = arith.constant 0 : index
    %c0_13 = arith.constant 0 : index
    %c492 = arith.constant 492 : index
    %12 = vector.load %arg2[%c0_12, %c0_13, %c492] : memref<1x4x1664xbf16, #tpu.memory_space<vmem>>, vector<1x4x640xbf16>
    %13 = vector.shape_cast %12 : vector<1x4x640xbf16> to vector<4x640xbf16>
    %c16 = arith.constant 16 : index
    %c0_14 = arith.constant 0 : index
    %14 = vector.load %arg7[%c16, %c0_14] : memref<272x640xbf16, #tpu.memory_space<vmem>>, vector<4x640xbf16>
    tpu.vector_store %arg7[%c16, %c0_14], %13 {strides = array<i32>} : memref<272x640xbf16, #tpu.memory_space<vmem>>, vector<4x640xbf16>,
    %c0_15 = arith.constant 0 : index
    %c0_16 = arith.constant 0 : index
    %c493 = arith.constant 493 : index
    %15 = vector.load %arg2[%c0_15, %c0_16, %c493] : memref<1x4x1664xbf16, #tpu.memory_space<vmem>>, vector<1x4x640xbf16>
    %16 = vector.shape_cast %15 : vector<1x4x640xbf16> to vector<4x640xbf16>
    %c20 = arith.constant 20 : index
    %c0_17 = arith.constant 0 : index
    %17 = vector.load %arg7[%c20, %c0_17] : memref<272x640xbf16, #tpu.memory_space<vmem>>, vector<4x640xbf16>
    tpu.vector_store %arg7[%c20, %c0_17], %16 {strides = array<i32>} : memref<272x640xbf16, #tpu.memory_space<vmem>>, vector<4x640xbf16>,
    %c0_18 = arith.constant 0 : index
    %c0_19 = arith.constant 0 : index
    %c531 = arith.constant 531 : index
    %18 = vector.load %arg2[%c0_18, %c0_19, %c531] : memref<1x4x1664xbf16, #tpu.memory_space<vmem>>, vector<1x4x640xbf16>
    %19 = vector.shape_cast %18 : vector<1x4x640xbf16> to vector<4x640xbf16>
    %c24 = arith.constant 24 : index
    %c0_20 = arith.constant 0 : index
    %20 = vector.load %arg7[%c24, %c0_20] : memref<272x640xbf16, #tpu.memory_space<vmem>>, vector<4x640xbf16>
    tpu.vector_store %arg7[%c24, %c0_20], %19 {strides = array<i32>} : memref<272x640xbf16, #tpu.memory_space<vmem>>, vector<4x640xbf16>,
    %c0_21 = arith.constant 0 : index
    %c0_22 = arith.constant 0 : index
    %c532 = arith.constant 532 : index
    %21 = vector.load %arg2[%c0_21, %c0_22, %c532] : memref<1x4x1664xbf16, #tpu.memory_space<vmem>>, vector<1x4x640xbf16>
    %22 = vector.shape_cast %21 : vector<1x4x640xbf16> to vector<4x640xbf16>
    %c28 = arith.constant 28 : index
    %c0_23 = arith.constant 0 : index
    %23 = vector.load %arg7[%c28, %c0_23] : memref<272x640xbf16, #tpu.memory_space<vmem>>, vector<4x640xbf16>
    tpu.vector_store %arg7[%c28, %c0_23], %22 {strides = array<i32>} : memref<272x640xbf16, #tpu.memory_space<vmem>>, vector<4x640xbf16>,
    %c0_24 = arith.constant 0 : index
    %c0_25 = arith.constant 0 : index
    %c533 = arith.constant 533 : index
    %24 = vector.load %arg2[%c0_24, %c0_25, %c533] : memref<1x4x1664xbf16, #tpu.memory_space<vmem>>, vector<1x4x640xbf16>
    %25 = vector.shape_cast %24 : vector<1x4x640xbf16> to vector<4x640xbf16>
    %c32 = arith.constant 32 : index
    %c0_26 = arith.constant 0 : index
    %26 = vector.load %arg7[%c32, %c0_26] : memref<272x640xbf16, #tpu.memory_space<vmem>>, vector<4x640xbf16>
    tpu.vector_store %arg7[%c32, %c0_26], %25 {strides = array<i32>} : memref<272x640xbf16, #tpu.memory_space<vmem>>, vector<4x640xbf16>,
    %c0_27 = arith.constant 0 : index
    %c0_28 = arith.constant 0 : index
    %c369 = arith.constant 369 : index
    %27 = vector.load %arg2[%c0_27, %c0_28, %c369] : memref<1x4x1664xbf16, #tpu.memory_space<vmem>>, vector<1x4x640xbf16>
    %28 = vector.shape_cast %27 : vector<1x4x640xbf16> to vector<4x640xbf16>
    %c36 = arith.constant 36 : index
    %c0_29 = arith.constant 0 : index
    %29 = vector.load %arg7[%c36, %c0_29] : memref<272x640xbf16, #tpu.memory_space<vmem>>, vector<4x640xbf16>
    tpu.vector_store %arg7[%c36, %c0_29], %28 {strides = array<i32>} : memref<272x640xbf16, #tpu.memory_space<vmem>>, vector<4x640xbf16>,
    %c0_30 = arith.constant 0 : index
    %c0_31 = arith.constant 0 : index
    %c372 = arith.constant 372 : index
    %30 = vector.load %arg2[%c0_30, %c0_31, %c372] : memref<1x4x1664xbf16, #tpu.memory_space<vmem>>, vector<1x4x640xbf16>
    %31 = vector.shape_cast %30 : vector<1x4x640xbf16> to vector<4x640xbf16>
    %c40 = arith.constant 40 : index
    %c0_32 = arith.constant 0 : index
    %32 = vector.load %arg7[%c40, %c0_32] : memref<272x640xbf16, #tpu.memory_space<vmem>>, vector<4x640xbf16>
    tpu.vector_store %arg7[%c40, %c0_32], %31 {strides = array<i32>} : memref<272x640xbf16, #tpu.memory_space<vmem>>, vector<4x640xbf16>,
    %c0_33 = arith.constant 0 : index
    %c0_34 = arith.constant 0 : index
    %c375 = arith.constant 375 : index
    %33 = vector.load %arg2[%c0_33, %c0_34, %c375] : memref<1x4x1664xbf16, #tpu.memory_space<vmem>>, vector<1x4x640xbf16>
    %34 = vector.shape_cast %33 : vector<1x4x640xbf16> to vector<4x640xbf16>
    %c44 = arith.constant 44 : index
    %c0_35 = arith.constant 0 : index
    %35 = vector.load %arg7[%c44, %c0_35] : memref<272x640xbf16, #tpu.memory_space<vmem>>, vector<4x640xbf16>
    tpu.vector_store %arg7[%c44, %c0_35], %34 {strides = array<i32>} : memref<272x640xbf16, #tpu.memory_space<vmem>>, vector<4x640xbf16>,
    %c0_36 = arith.constant 0 : index
    %c0_37 = arith.constant 0 : index
    %c489 = arith.constant 489 : index
    %36 = vector.load %arg2[%c0_36, %c0_37, %c489] : memref<1x4x1664xbf16, #tpu.memory_space<vmem>>, vector<1x4x640xbf16>
    %37 = vector.shape_cast %36 : vector<1x4x640xbf16> to vector<4x640xbf16>
    %c48 = arith.constant 48 : index
    %c0_38 = arith.constant 0 : index
    %38 = vector.load %arg7[%c48, %c0_38] : memref<272x640xbf16, #tpu.memory_space<vmem>>, vector<4x640xbf16>
    tpu.vector_store %arg7[%c48, %c0_38], %37 {strides = array<i32>} : memref<272x640xbf16, #tpu.memory_space<vmem>>, vector<4x640xbf16>,
    %c0_39 = arith.constant 0 : index
    %c0_40 = arith.constant 0 : index
    %c492_41 = arith.constant 492 : index
    %39 = vector.load %arg2[%c0_39, %c0_40, %c492_41] : memref<1x4x1664xbf16, #tpu.memory_space<vmem>>, vector<1x4x640xbf16>
    %40 = vector.shape_cast %39 : vector<1x4x640xbf16> to vector<4x640xbf16>
    %c52 = arith.constant 52 : index
    %c0_42 = arith.constant 0 : index
    %41 = vector.load %arg7[%c52, %c0_42] : memref<272x640xbf16, #tpu.memory_space<vmem>>, vector<4x640xbf16>
    tpu.vector_store %arg7[%c52, %c0_42], %40 {strides = array<i32>} : memref<272x640xbf16, #tpu.memory_space<vmem>>, vector<4x640xbf16>,
    %c0_43 = arith.constant 0 : index
    %c0_44 = arith.constant 0 : index
    %c495 = arith.constant 495 : index
    %42 = vector.load %arg2[%c0_43, %c0_44, %c495] : memref<1x4x1664xbf16, #tpu.memory_space<vmem>>, vector<1x4x640xbf16>
    %43 = vector.shape_cast %42 : vector<1x4x640xbf16> to vector<4x640xbf16>
    %c56 = arith.constant 56 : index
    %c0_45 = arith.constant 0 : index
    %44 = vector.load %arg7[%c56, %c0_45] : memref<272x640xbf16, #tpu.memory_space<vmem>>, vector<4x640xbf16>
    tpu.vector_store %arg7[%c56, %c0_45], %43 {strides = array<i32>} : memref<272x640xbf16, #tpu.memory_space<vmem>>, vector<4x640xbf16>,
    %c0_46 = arith.constant 0 : index
    %c0_47 = arith.constant 0 : index
    %c609 = arith.constant 609 : index
    %45 = vector.load %arg2[%c0_46, %c0_47, %c609] : memref<1x4x1664xbf16, #tpu.memory_space<vmem>>, vector<1x4x640xbf16>
    %46 = vector.shape_cast %45 : vector<1x4x640xbf16> to vector<4x640xbf16>
    %c60 = arith.constant 60 : index
    %c0_48 = arith.constant 0 : index
    %47 = vector.load %arg7[%c60, %c0_48] : memref<272x640xbf16, #tpu.memory_space<vmem>>, vector<4x640xbf16>
    tpu.vector_store %arg7[%c60, %c0_48], %46 {strides = array<i32>} : memref<272x640xbf16, #tpu.memory_space<vmem>>, vector<4x640xbf16>,
    %c0_49 = arith.constant 0 : index
    %c0_50 = arith.constant 0 : index
    %c612 = arith.constant 612 : index
    %48 = vector.load %arg2[%c0_49, %c0_50, %c612] : memref<1x4x1664xbf16, #tpu.memory_space<vmem>>, vector<1x4x640xbf16>
    %49 = vector.shape_cast %48 : vector<1x4x640xbf16> to vector<4x640xbf16>
    %c64 = arith.constant 64 : index
    %c0_51 = arith.constant 0 : index
    %50 = vector.load %arg7[%c64, %c0_51] : memref<272x640xbf16, #tpu.memory_space<vmem>>, vector<4x640xbf16>
    tpu.vector_store %arg7[%c64, %c0_51], %49 {strides = array<i32>} : memref<272x640xbf16, #tpu.memory_space<vmem>>, vector<4x640xbf16>,
    %c0_52 = arith.constant 0 : index
    %c0_53 = arith.constant 0 : index
    %c615 = arith.constant 615 : index
    %51 = vector.load %arg2[%c0_52, %c0_53, %c615] : memref<1x4x1664xbf16, #tpu.memory_space<vmem>>, vector<1x4x640xbf16>
    %52 = vector.shape_cast %51 : vector<1x4x640xbf16> to vector<4x640xbf16>
    %c68 = arith.constant 68 : index
    %c0_54 = arith.constant 0 : index
    %53 = vector.load %arg7[%c68, %c0_54] : memref<272x640xbf16, #tpu.memory_space<vmem>>, vector<4x640xbf16>
    tpu.vector_store %arg7[%c68, %c0_54], %52 {strides = array<i32>} : memref<272x640xbf16, #tpu.memory_space<vmem>>, vector<4x640xbf16>,
    %c0_55 = arith.constant 0 : index
    %c0_56 = arith.constant 0 : index
    %c246 = arith.constant 246 : index
    %54 = vector.load %arg2[%c0_55, %c0_56, %c246] : memref<1x4x1664xbf16, #tpu.memory_space<vmem>>, vector<1x4x640xbf16>
    %55 = vector.shape_cast %54 : vector<1x4x640xbf16> to vector<4x640xbf16>
    %c72 = arith.constant 72 : index
    %c0_57 = arith.constant 0 : index
    %56 = vector.load %arg7[%c72, %c0_57] : memref<272x640xbf16, #tpu.memory_space<vmem>>, vector<4x640xbf16>
    tpu.vector_store %arg7[%c72, %c0_57], %55 {strides = array<i32>} : memref<272x640xbf16, #tpu.memory_space<vmem>>, vector<4x640xbf16>,
    %c0_58 = arith.constant 0 : index
    %c0_59 = arith.constant 0 : index
    %c249 = arith.constant 249 : index
    %57 = vector.load %arg2[%c0_58, %c0_59, %c249] : memref<1x4x1664xbf16, #tpu.memory_space<vmem>>, vector<1x4x640xbf16>
    %58 = vector.shape_cast %57 : vector<1x4x640xbf16> to vector<4x640xbf16>
    %c76 = arith.constant 76 : index
    %c0_60 = arith.constant 0 : index
    %59 = vector.load %arg7[%c76, %c0_60] : memref<272x640xbf16, #tpu.memory_space<vmem>>, vector<4x640xbf16>
    tpu.vector_store %arg7[%c76, %c0_60], %58 {strides = array<i32>} : memref<272x640xbf16, #tpu.memory_space<vmem>>, vector<4x640xbf16>,
    %c0_61 = arith.constant 0 : index
    %c0_62 = arith.constant 0 : index
    %c252 = arith.constant 252 : index
    %60 = vector.load %arg2[%c0_61, %c0_62, %c252] : memref<1x4x1664xbf16, #tpu.memory_space<vmem>>, vector<1x4x640xbf16>
    %61 = vector.shape_cast %60 : vector<1x4x640xbf16> to vector<4x640xbf16>
    %c80 = arith.constant 80 : index
    %c0_63 = arith.constant 0 : index
    %62 = vector.load %arg7[%c80, %c0_63] : memref<272x640xbf16, #tpu.memory_space<vmem>>, vector<4x640xbf16>
    tpu.vector_store %arg7[%c80, %c0_63], %61 {strides = array<i32>} : memref<272x640xbf16, #tpu.memory_space<vmem>>, vector<4x640xbf16>,
    %c0_64 = arith.constant 0 : index
    %c0_65 = arith.constant 0 : index
    %c255 = arith.constant 255 : index
    %63 = vector.load %arg2[%c0_64, %c0_65, %c255] : memref<1x4x1664xbf16, #tpu.memory_space<vmem>>, vector<1x4x640xbf16>
    %64 = vector.shape_cast %63 : vector<1x4x640xbf16> to vector<4x640xbf16>
    %c84 = arith.constant 84 : index
    %c0_66 = arith.constant 0 : index
    %65 = vector.load %arg7[%c84, %c0_66] : memref<272x640xbf16, #tpu.memory_space<vmem>>, vector<4x640xbf16>
    tpu.vector_store %arg7[%c84, %c0_66], %64 {strides = array<i32>} : memref<272x640xbf16, #tpu.memory_space<vmem>>, vector<4x640xbf16>,
    %c0_67 = arith.constant 0 : index
    %c0_68 = arith.constant 0 : index
    %c258 = arith.constant 258 : index
    %66 = vector.load %arg2[%c0_67, %c0_68, %c258] : memref<1x4x1664xbf16, #tpu.memory_space<vmem>>, vector<1x4x640xbf16>
    %67 = vector.shape_cast %66 : vector<1x4x640xbf16> to vector<4x640xbf16>
    %c88 = arith.constant 88 : index
    %c0_69 = arith.constant 0 : index
    %68 = vector.load %arg7[%c88, %c0_69] : memref<272x640xbf16, #tpu.memory_space<vmem>>, vector<4x640xbf16>
    tpu.vector_store %arg7[%c88, %c0_69], %67 {strides = array<i32>} : memref<272x640xbf16, #tpu.memory_space<vmem>>, vector<4x640xbf16>,
    %c0_70 = arith.constant 0 : index
    %c0_71 = arith.constant 0 : index
    %c366 = arith.constant 366 : index
    %69 = vector.load %arg2[%c0_70, %c0_71, %c366] : memref<1x4x1664xbf16, #tpu.memory_space<vmem>>, vector<1x4x640xbf16>
    %70 = vector.shape_cast %69 : vector<1x4x640xbf16> to vector<4x640xbf16>
    %c92 = arith.constant 92 : index
    %c0_72 = arith.constant 0 : index
    %71 = vector.load %arg7[%c92, %c0_72] : memref<272x640xbf16, #tpu.memory_space<vmem>>, vector<4x640xbf16>
    tpu.vector_store %arg7[%c92, %c0_72], %70 {strides = array<i32>} : memref<272x640xbf16, #tpu.memory_space<vmem>>, vector<4x640xbf16>,
    %c0_73 = arith.constant 0 : index
    %c0_74 = arith.constant 0 : index
    %c369_75 = arith.constant 369 : index
    %72 = vector.load %arg2[%c0_73, %c0_74, %c369_75] : memref<1x4x1664xbf16, #tpu.memory_space<vmem>>, vector<1x4x640xbf16>
    %73 = vector.shape_cast %72 : vector<1x4x640xbf16> to vector<4x640xbf16>
    %c96 = arith.constant 96 : index
    %c0_76 = arith.constant 0 : index
    %74 = vector.load %arg7[%c96, %c0_76] : memref<272x640xbf16, #tpu.memory_space<vmem>>, vector<4x640xbf16>
    tpu.vector_store %arg7[%c96, %c0_76], %73 {strides = array<i32>} : memref<272x640xbf16, #tpu.memory_space<vmem>>, vector<4x640xbf16>,
    %c0_77 = arith.constant 0 : index
    %c0_78 = arith.constant 0 : index
    %c372_79 = arith.constant 372 : index
    %75 = vector.load %arg2[%c0_77, %c0_78, %c372_79] : memref<1x4x1664xbf16, #tpu.memory_space<vmem>>, vector<1x4x640xbf16>
    %76 = vector.shape_cast %75 : vector<1x4x640xbf16> to vector<4x640xbf16>
    %c100 = arith.constant 100 : index
    %c0_80 = arith.constant 0 : index
    %77 = vector.load %arg7[%c100, %c0_80] : memref<272x640xbf16, #tpu.memory_space<vmem>>, vector<4x640xbf16>
    tpu.vector_store %arg7[%c100, %c0_80], %76 {strides = array<i32>} : memref<272x640xbf16, #tpu.memory_space<vmem>>, vector<4x640xbf16>,
    %c0_81 = arith.constant 0 : index
    %c0_82 = arith.constant 0 : index
    %c375_83 = arith.constant 375 : index
    %78 = vector.load %arg2[%c0_81, %c0_82, %c375_83] : memref<1x4x1664xbf16, #tpu.memory_space<vmem>>, vector<1x4x640xbf16>
    %79 = vector.shape_cast %78 : vector<1x4x640xbf16> to vector<4x640xbf16>
    %c104 = arith.constant 104 : index
    %c0_84 = arith.constant 0 : index
    %80 = vector.load %arg7[%c104, %c0_84] : memref<272x640xbf16, #tpu.memory_space<vmem>>, vector<4x640xbf16>
    tpu.vector_store %arg7[%c104, %c0_84], %79 {strides = array<i32>} : memref<272x640xbf16, #tpu.memory_space<vmem>>, vector<4x640xbf16>,
    %c0_85 = arith.constant 0 : index
    %c0_86 = arith.constant 0 : index
    %c378 = arith.constant 378 : index
    %81 = vector.load %arg2[%c0_85, %c0_86, %c378] : memref<1x4x1664xbf16, #tpu.memory_space<vmem>>, vector<1x4x640xbf16>
    %82 = vector.shape_cast %81 : vector<1x4x640xbf16> to vector<4x640xbf16>
    %c108 = arith.constant 108 : index
    %c0_87 = arith.constant 0 : index
    %83 = vector.load %arg7[%c108, %c0_87] : memref<272x640xbf16, #tpu.memory_space<vmem>>, vector<4x640xbf16>
    tpu.vector_store %arg7[%c108, %c0_87], %82 {strides = array<i32>} : memref<272x640xbf16, #tpu.memory_space<vmem>>, vector<4x640xbf16>,
    %c0_88 = arith.constant 0 : index
    %c0_89 = arith.constant 0 : index
    %c486 = arith.constant 486 : index
    %84 = vector.load %arg2[%c0_88, %c0_89, %c486] : memref<1x4x1664xbf16, #tpu.memory_space<vmem>>, vector<1x4x640xbf16>
    %85 = vector.shape_cast %84 : vector<1x4x640xbf16> to vector<4x640xbf16>
    %c112 = arith.constant 112 : index
    %c0_90 = arith.constant 0 : index
    %86 = vector.load %arg7[%c112, %c0_90] : memref<272x640xbf16, #tpu.memory_space<vmem>>, vector<4x640xbf16>
    tpu.vector_store %arg7[%c112, %c0_90], %85 {strides = array<i32>} : memref<272x640xbf16, #tpu.memory_space<vmem>>, vector<4x640xbf16>,
    %c0_91 = arith.constant 0 : index
    %c0_92 = arith.constant 0 : index
    %c489_93 = arith.constant 489 : index
    %87 = vector.load %arg2[%c0_91, %c0_92, %c489_93] : memref<1x4x1664xbf16, #tpu.memory_space<vmem>>, vector<1x4x640xbf16>
    %88 = vector.shape_cast %87 : vector<1x4x640xbf16> to vector<4x640xbf16>
    %c116 = arith.constant 116 : index
    %c0_94 = arith.constant 0 : index
    %89 = vector.load %arg7[%c116, %c0_94] : memref<272x640xbf16, #tpu.memory_space<vmem>>, vector<4x640xbf16>
    tpu.vector_store %arg7[%c116, %c0_94], %88 {strides = array<i32>} : memref<272x640xbf16, #tpu.memory_space<vmem>>, vector<4x640xbf16>,
    %c0_95 = arith.constant 0 : index
    %c0_96 = arith.constant 0 : index
    %c492_97 = arith.constant 492 : index
    %90 = vector.load %arg2[%c0_95, %c0_96, %c492_97] : memref<1x4x1664xbf16, #tpu.memory_space<vmem>>, vector<1x4x640xbf16>
    %91 = vector.shape_cast %90 : vector<1x4x640xbf16> to vector<4x640xbf16>
    %c120 = arith.constant 120 : index
    %c0_98 = arith.constant 0 : index
    %92 = vector.load %arg7[%c120, %c0_98] : memref<272x640xbf16, #tpu.memory_space<vmem>>, vector<4x640xbf16>
    tpu.vector_store %arg7[%c120, %c0_98], %91 {strides = array<i32>} : memref<272x640xbf16, #tpu.memory_space<vmem>>, vector<4x640xbf16>,
    %c0_99 = arith.constant 0 : index
    %c0_100 = arith.constant 0 : index
    %c495_101 = arith.constant 495 : index
    %93 = vector.load %arg2[%c0_99, %c0_100, %c495_101] : memref<1x4x1664xbf16, #tpu.memory_space<vmem>>, vector<1x4x640xbf16>
    %94 = vector.shape_cast %93 : vector<1x4x640xbf16> to vector<4x640xbf16>
    %c124 = arith.constant 124 : index
    %c0_102 = arith.constant 0 : index
    %95 = vector.load %arg7[%c124, %c0_102] : memref<272x640xbf16, #tpu.memory_space<vmem>>, vector<4x640xbf16>
    tpu.vector_store %arg7[%c124, %c0_102], %94 {strides = array<i32>} : memref<272x640xbf16, #tpu.memory_space<vmem>>, vector<4x640xbf16>,
    %c0_103 = arith.constant 0 : index
    %c0_104 = arith.constant 0 : index
    %c498 = arith.constant 498 : index
    %96 = vector.load %arg2[%c0_103, %c0_104, %c498] : memref<1x4x1664xbf16, #tpu.memory_space<vmem>>, vector<1x4x640xbf16>
    %97 = vector.shape_cast %96 : vector<1x4x640xbf16> to vector<4x640xbf16>
    %c128 = arith.constant 128 : index
    %c0_105 = arith.constant 0 : index
    %98 = vector.load %arg7[%c128, %c0_105] : memref<272x640xbf16, #tpu.memory_space<vmem>>, vector<4x640xbf16>
    tpu.vector_store %arg7[%c128, %c0_105], %97 {strides = array<i32>} : memref<272x640xbf16, #tpu.memory_space<vmem>>, vector<4x640xbf16>,
    %c0_106 = arith.constant 0 : index
    %c0_107 = arith.constant 0 : index
    %c606 = arith.constant 606 : index
    %99 = vector.load %arg2[%c0_106, %c0_107, %c606] : memref<1x4x1664xbf16, #tpu.memory_space<vmem>>, vector<1x4x640xbf16>
    %100 = vector.shape_cast %99 : vector<1x4x640xbf16> to vector<4x640xbf16>
    %c132 = arith.constant 132 : index
    %c0_108 = arith.constant 0 : index
    %101 = vector.load %arg7[%c132, %c0_108] : memref<272x640xbf16, #tpu.memory_space<vmem>>, vector<4x640xbf16>
    tpu.vector_store %arg7[%c132, %c0_108], %100 {strides = array<i32>} : memref<272x640xbf16, #tpu.memory_space<vmem>>, vector<4x640xbf16>,
    %c0_109 = arith.constant 0 : index
    %c0_110 = arith.constant 0 : index
    %c609_111 = arith.constant 609 : index
    %102 = vector.load %arg2[%c0_109, %c0_110, %c609_111] : memref<1x4x1664xbf16, #tpu.memory_space<vmem>>, vector<1x4x640xbf16>
    %103 = vector.shape_cast %102 : vector<1x4x640xbf16> to vector<4x640xbf16>
    %c136 = arith.constant 136 : index
    %c0_112 = arith.constant 0 : index
    %104 = vector.load %arg7[%c136, %c0_112] : memref<272x640xbf16, #tpu.memory_space<vmem>>, vector<4x640xbf16>
    tpu.vector_store %arg7[%c136, %c0_112], %103 {strides = array<i32>} : memref<272x640xbf16, #tpu.memory_space<vmem>>, vector<4x640xbf16>,
    %c0_113 = arith.constant 0 : index
    %c0_114 = arith.constant 0 : index
    %c612_115 = arith.constant 612 : index
    %105 = vector.load %arg2[%c0_113, %c0_114, %c612_115] : memref<1x4x1664xbf16, #tpu.memory_space<vmem>>, vector<1x4x640xbf16>
    %106 = vector.shape_cast %105 : vector<1x4x640xbf16> to vector<4x640xbf16>
    %c140 = arith.constant 140 : index
    %c0_116 = arith.constant 0 : index
    %107 = vector.load %arg7[%c140, %c0_116] : memref<272x640xbf16, #tpu.memory_space<vmem>>, vector<4x640xbf16>
    tpu.vector_store %arg7[%c140, %c0_116], %106 {strides = array<i32>} : memref<272x640xbf16, #tpu.memory_space<vmem>>, vector<4x640xbf16>,
    %c0_117 = arith.constant 0 : index
    %c0_118 = arith.constant 0 : index
    %c615_119 = arith.constant 615 : index
    %108 = vector.load %arg2[%c0_117, %c0_118, %c615_119] : memref<1x4x1664xbf16, #tpu.memory_space<vmem>>, vector<1x4x640xbf16>
    %109 = vector.shape_cast %108 : vector<1x4x640xbf16> to vector<4x640xbf16>
    %c144 = arith.constant 144 : index
    %c0_120 = arith.constant 0 : index
    %110 = vector.load %arg7[%c144, %c0_120] : memref<272x640xbf16, #tpu.memory_space<vmem>>, vector<4x640xbf16>
    tpu.vector_store %arg7[%c144, %c0_120], %109 {strides = array<i32>} : memref<272x640xbf16, #tpu.memory_space<vmem>>, vector<4x640xbf16>,
    %c0_121 = arith.constant 0 : index
    %c0_122 = arith.constant 0 : index
    %c618 = arith.constant 618 : index
    %111 = vector.load %arg2[%c0_121, %c0_122, %c618] : memref<1x4x1664xbf16, #tpu.memory_space<vmem>>, vector<1x4x640xbf16>
    %112 = vector.shape_cast %111 : vector<1x4x640xbf16> to vector<4x640xbf16>
    %c148 = arith.constant 148 : index
    %c0_123 = arith.constant 0 : index
    %113 = vector.load %arg7[%c148, %c0_123] : memref<272x640xbf16, #tpu.memory_space<vmem>>, vector<4x640xbf16>
    tpu.vector_store %arg7[%c148, %c0_123], %112 {strides = array<i32>} : memref<272x640xbf16, #tpu.memory_space<vmem>>, vector<4x640xbf16>,
    %c0_124 = arith.constant 0 : index
    %c0_125 = arith.constant 0 : index
    %c726 = arith.constant 726 : index
    %114 = vector.load %arg2[%c0_124, %c0_125, %c726] : memref<1x4x1664xbf16, #tpu.memory_space<vmem>>, vector<1x4x640xbf16>
    %115 = vector.shape_cast %114 : vector<1x4x640xbf16> to vector<4x640xbf16>
    %c152 = arith.constant 152 : index
    %c0_126 = arith.constant 0 : index
    %116 = vector.load %arg7[%c152, %c0_126] : memref<272x640xbf16, #tpu.memory_space<vmem>>, vector<4x640xbf16>
    tpu.vector_store %arg7[%c152, %c0_126], %115 {strides = array<i32>} : memref<272x640xbf16, #tpu.memory_space<vmem>>, vector<4x640xbf16>,
    %c0_127 = arith.constant 0 : index
    %c0_128 = arith.constant 0 : index
    %c729 = arith.constant 729 : index
    %117 = vector.load %arg2[%c0_127, %c0_128, %c729] : memref<1x4x1664xbf16, #tpu.memory_space<vmem>>, vector<1x4x640xbf16>
    %118 = vector.shape_cast %117 : vector<1x4x640xbf16> to vector<4x640xbf16>
    %c156 = arith.constant 156 : index
    %c0_129 = arith.constant 0 : index
    %119 = vector.load %arg7[%c156, %c0_129] : memref<272x640xbf16, #tpu.memory_space<vmem>>, vector<4x640xbf16>
    tpu.vector_store %arg7[%c156, %c0_129], %118 {strides = array<i32>} : memref<272x640xbf16, #tpu.memory_space<vmem>>, vector<4x640xbf16>,
    %c0_130 = arith.constant 0 : index
    %c0_131 = arith.constant 0 : index
    %c732 = arith.constant 732 : index
    %120 = vector.load %arg2[%c0_130, %c0_131, %c732] : memref<1x4x1664xbf16, #tpu.memory_space<vmem>>, vector<1x4x640xbf16>
    %121 = vector.shape_cast %120 : vector<1x4x640xbf16> to vector<4x640xbf16>
    %c160 = arith.constant 160 : index
    %c0_132 = arith.constant 0 : index
    %122 = vector.load %arg7[%c160, %c0_132] : memref<272x640xbf16, #tpu.memory_space<vmem>>, vector<4x640xbf16>
    tpu.vector_store %arg7[%c160, %c0_132], %121 {strides = array<i32>} : memref<272x640xbf16, #tpu.memory_space<vmem>>, vector<4x640xbf16>,
    %c0_133 = arith.constant 0 : index
    %c0_134 = arith.constant 0 : index
    %c735 = arith.constant 735 : index
    %123 = vector.load %arg2[%c0_133, %c0_134, %c735] : memref<1x4x1664xbf16, #tpu.memory_space<vmem>>, vector<1x4x640xbf16>
    %124 = vector.shape_cast %123 : vector<1x4x640xbf16> to vector<4x640xbf16>
    %c164 = arith.constant 164 : index
    %c0_135 = arith.constant 0 : index
    %125 = vector.load %arg7[%c164, %c0_135] : memref<272x640xbf16, #tpu.memory_space<vmem>>, vector<4x640xbf16>
    tpu.vector_store %arg7[%c164, %c0_135], %124 {strides = array<i32>} : memref<272x640xbf16, #tpu.memory_space<vmem>>, vector<4x640xbf16>,
    %c0_136 = arith.constant 0 : index
    %c0_137 = arith.constant 0 : index
    %c738 = arith.constant 738 : index
    %126 = vector.load %arg2[%c0_136, %c0_137, %c738] : memref<1x4x1664xbf16, #tpu.memory_space<vmem>>, vector<1x4x640xbf16>
    %127 = vector.shape_cast %126 : vector<1x4x640xbf16> to vector<4x640xbf16>
    %c168 = arith.constant 168 : index
    %c0_138 = arith.constant 0 : index
    %128 = vector.load %arg7[%c168, %c0_138] : memref<272x640xbf16, #tpu.memory_space<vmem>>, vector<4x640xbf16>
    tpu.vector_store %arg7[%c168, %c0_138], %127 {strides = array<i32>} : memref<272x640xbf16, #tpu.memory_space<vmem>>, vector<4x640xbf16>,
    %c0_139 = arith.constant 0 : index
    %c0_140 = arith.constant 0 : index
    %c0_141 = arith.constant 0 : index
    %129 = vector.load %arg2[%c0_139, %c0_140, %c0_141] : memref<1x4x1664xbf16, #tpu.memory_space<vmem>>, vector<1x4x640xbf16>
    %130 = vector.shape_cast %129 : vector<1x4x640xbf16> to vector<4x640xbf16>
    %c172 = arith.constant 172 : index
    %c0_142 = arith.constant 0 : index
    %131 = vector.load %arg7[%c172, %c0_142] : memref<272x640xbf16, #tpu.memory_space<vmem>>, vector<4x640xbf16>
    tpu.vector_store %arg7[%c172, %c0_142], %130 {strides = array<i32>} : memref<272x640xbf16, #tpu.memory_space<vmem>>, vector<4x640xbf16>,
    %c0_143 = arith.constant 0 : index
    %c0_144 = arith.constant 0 : index
    %c6 = arith.constant 6 : index
    %132 = vector.load %arg2[%c0_143, %c0_144, %c6] : memref<1x4x1664xbf16, #tpu.memory_space<vmem>>, vector<1x4x640xbf16>
    %133 = vector.shape_cast %132 : vector<1x4x640xbf16> to vector<4x640xbf16>
    %c176 = arith.constant 176 : index
    %c0_145 = arith.constant 0 : index
    %134 = vector.load %arg7[%c176, %c0_145] : memref<272x640xbf16, #tpu.memory_space<vmem>>, vector<4x640xbf16>
    tpu.vector_store %arg7[%c176, %c0_145], %133 {strides = array<i32>} : memref<272x640xbf16, #tpu.memory_space<vmem>>, vector<4x640xbf16>,
    %c0_146 = arith.constant 0 : index
    %c0_147 = arith.constant 0 : index
    %c12_148 = arith.constant 12 : index
    %135 = vector.load %arg2[%c0_146, %c0_147, %c12_148] : memref<1x4x1664xbf16, #tpu.memory_space<vmem>>, vector<1x4x640xbf16>
    %136 = vector.shape_cast %135 : vector<1x4x640xbf16> to vector<4x640xbf16>
    %c180 = arith.constant 180 : index
    %c0_149 = arith.constant 0 : index
    %137 = vector.load %arg7[%c180, %c0_149] : memref<272x640xbf16, #tpu.memory_space<vmem>>, vector<4x640xbf16>
    tpu.vector_store %arg7[%c180, %c0_149], %136 {strides = array<i32>} : memref<272x640xbf16, #tpu.memory_space<vmem>>, vector<4x640xbf16>,
    %c0_150 = arith.constant 0 : index
    %c0_151 = arith.constant 0 : index
    %c18 = arith.constant 18 : index
    %138 = vector.load %arg2[%c0_150, %c0_151, %c18] : memref<1x4x1664xbf16, #tpu.memory_space<vmem>>, vector<1x4x640xbf16>
    %139 = vector.shape_cast %138 : vector<1x4x640xbf16> to vector<4x640xbf16>
    %c184 = arith.constant 184 : index
    %c0_152 = arith.constant 0 : index
    %140 = vector.load %arg7[%c184, %c0_152] : memref<272x640xbf16, #tpu.memory_space<vmem>>, vector<4x640xbf16>
    tpu.vector_store %arg7[%c184, %c0_152], %139 {strides = array<i32>} : memref<272x640xbf16, #tpu.memory_space<vmem>>, vector<4x640xbf16>,
    %c0_153 = arith.constant 0 : index
    %c0_154 = arith.constant 0 : index
    %c24_155 = arith.constant 24 : index
    %141 = vector.load %arg2[%c0_153, %c0_154, %c24_155] : memref<1x4x1664xbf16, #tpu.memory_space<vmem>>, vector<1x4x640xbf16>
    %142 = vector.shape_cast %141 : vector<1x4x640xbf16> to vector<4x640xbf16>
    %c188 = arith.constant 188 : index
    %c0_156 = arith.constant 0 : index
    %143 = vector.load %arg7[%c188, %c0_156] : memref<272x640xbf16, #tpu.memory_space<vmem>>, vector<4x640xbf16>
    tpu.vector_store %arg7[%c188, %c0_156], %142 {strides = array<i32>} : memref<272x640xbf16, #tpu.memory_space<vmem>>, vector<4x640xbf16>,
    %c0_157 = arith.constant 0 : index
    %c0_158 = arith.constant 0 : index
    %c240 = arith.constant 240 : index
    %144 = vector.load %arg2[%c0_157, %c0_158, %c240] : memref<1x4x1664xbf16, #tpu.memory_space<vmem>>, vector<1x4x640xbf16>
    %145 = vector.shape_cast %144 : vector<1x4x640xbf16> to vector<4x640xbf16>
    %c192 = arith.constant 192 : index
    %c0_159 = arith.constant 0 : index
    %146 = vector.load %arg7[%c192, %c0_159] : memref<272x640xbf16, #tpu.memory_space<vmem>>, vector<4x640xbf16>
    tpu.vector_store %arg7[%c192, %c0_159], %145 {strides = array<i32>} : memref<272x640xbf16, #tpu.memory_space<vmem>>, vector<4x640xbf16>,
    %c0_160 = arith.constant 0 : index
    %c0_161 = arith.constant 0 : index
    %c246_162 = arith.constant 246 : index
    %147 = vector.load %arg2[%c0_160, %c0_161, %c246_162] : memref<1x4x1664xbf16, #tpu.memory_space<vmem>>, vector<1x4x640xbf16>
    %148 = vector.shape_cast %147 : vector<1x4x640xbf16> to vector<4x640xbf16>
    %c196 = arith.constant 196 : index
    %c0_163 = arith.constant 0 : index
    %149 = vector.load %arg7[%c196, %c0_163] : memref<272x640xbf16, #tpu.memory_space<vmem>>, vector<4x640xbf16>
    tpu.vector_store %arg7[%c196, %c0_163], %148 {strides = array<i32>} : memref<272x640xbf16, #tpu.memory_space<vmem>>, vector<4x640xbf16>,
    %c0_164 = arith.constant 0 : index
    %c0_165 = arith.constant 0 : index
    %c252_166 = arith.constant 252 : index
    %150 = vector.load %arg2[%c0_164, %c0_165, %c252_166] : memref<1x4x1664xbf16, #tpu.memory_space<vmem>>, vector<1x4x640xbf16>
    %151 = vector.shape_cast %150 : vector<1x4x640xbf16> to vector<4x640xbf16>
    %c200 = arith.constant 200 : index
    %c0_167 = arith.constant 0 : index
    %152 = vector.load %arg7[%c200, %c0_167] : memref<272x640xbf16, #tpu.memory_space<vmem>>, vector<4x640xbf16>
    tpu.vector_store %arg7[%c200, %c0_167], %151 {strides = array<i32>} : memref<272x640xbf16, #tpu.memory_space<vmem>>, vector<4x640xbf16>,
    %c0_168 = arith.constant 0 : index
    %c0_169 = arith.constant 0 : index
    %c258_170 = arith.constant 258 : index
    %153 = vector.load %arg2[%c0_168, %c0_169, %c258_170] : memref<1x4x1664xbf16, #tpu.memory_space<vmem>>, vector<1x4x640xbf16>
    %154 = vector.shape_cast %153 : vector<1x4x640xbf16> to vector<4x640xbf16>
    %c204 = arith.constant 204 : index
    %c0_171 = arith.constant 0 : index
    %155 = vector.load %arg7[%c204, %c0_171] : memref<272x640xbf16, #tpu.memory_space<vmem>>, vector<4x640xbf16>
    tpu.vector_store %arg7[%c204, %c0_171], %154 {strides = array<i32>} : memref<272x640xbf16, #tpu.memory_space<vmem>>, vector<4x640xbf16>,
    %c0_172 = arith.constant 0 : index
    %c0_173 = arith.constant 0 : index
    %c264 = arith.constant 264 : index
    %156 = vector.load %arg2[%c0_172, %c0_173, %c264] : memref<1x4x1664xbf16, #tpu.memory_space<vmem>>, vector<1x4x640xbf16>
    %157 = vector.shape_cast %156 : vector<1x4x640xbf16> to vector<4x640xbf16>
    %c208 = arith.constant 208 : index
    %c0_174 = arith.constant 0 : index
    %158 = vector.load %arg7[%c208, %c0_174] : memref<272x640xbf16, #tpu.memory_space<vmem>>, vector<4x640xbf16>
    tpu.vector_store %arg7[%c208, %c0_174], %157 {strides = array<i32>} : memref<272x640xbf16, #tpu.memory_space<vmem>>, vector<4x640xbf16>,
    %c0_175 = arith.constant 0 : index
    %c0_176 = arith.constant 0 : index
    %c480 = arith.constant 480 : index
    %159 = vector.load %arg2[%c0_175, %c0_176, %c480] : memref<1x4x1664xbf16, #tpu.memory_space<vmem>>, vector<1x4x640xbf16>
    %160 = vector.shape_cast %159 : vector<1x4x640xbf16> to vector<4x640xbf16>
    %c212 = arith.constant 212 : index
    %c0_177 = arith.constant 0 : index
    %161 = vector.load %arg7[%c212, %c0_177] : memref<272x640xbf16, #tpu.memory_space<vmem>>, vector<4x640xbf16>
    tpu.vector_store %arg7[%c212, %c0_177], %160 {strides = array<i32>} : memref<272x640xbf16, #tpu.memory_space<vmem>>, vector<4x640xbf16>,
    %c0_178 = arith.constant 0 : index
    %c0_179 = arith.constant 0 : index
    %c486_180 = arith.constant 486 : index
    %162 = vector.load %arg2[%c0_178, %c0_179, %c486_180] : memref<1x4x1664xbf16, #tpu.memory_space<vmem>>, vector<1x4x640xbf16>
    %163 = vector.shape_cast %162 : vector<1x4x640xbf16> to vector<4x640xbf16>
    %c216 = arith.constant 216 : index
    %c0_181 = arith.constant 0 : index
    %164 = vector.load %arg7[%c216, %c0_181] : memref<272x640xbf16, #tpu.memory_space<vmem>>, vector<4x640xbf16>
    tpu.vector_store %arg7[%c216, %c0_181], %163 {strides = array<i32>} : memref<272x640xbf16, #tpu.memory_space<vmem>>, vector<4x640xbf16>,
    %c0_182 = arith.constant 0 : index
    %c0_183 = arith.constant 0 : index
    %c492_184 = arith.constant 492 : index
    %165 = vector.load %arg2[%c0_182, %c0_183, %c492_184] : memref<1x4x1664xbf16, #tpu.memory_space<vmem>>, vector<1x4x640xbf16>
    %166 = vector.shape_cast %165 : vector<1x4x640xbf16> to vector<4x640xbf16>
    %c220 = arith.constant 220 : index
    %c0_185 = arith.constant 0 : index
    %167 = vector.load %arg7[%c220, %c0_185] : memref<272x640xbf16, #tpu.memory_space<vmem>>, vector<4x640xbf16>
    tpu.vector_store %arg7[%c220, %c0_185], %166 {strides = array<i32>} : memref<272x640xbf16, #tpu.memory_space<vmem>>, vector<4x640xbf16>,
    %c0_186 = arith.constant 0 : index
    %c0_187 = arith.constant 0 : index
    %c498_188 = arith.constant 498 : index
    %168 = vector.load %arg2[%c0_186, %c0_187, %c498_188] : memref<1x4x1664xbf16, #tpu.memory_space<vmem>>, vector<1x4x640xbf16>
    %169 = vector.shape_cast %168 : vector<1x4x640xbf16> to vector<4x640xbf16>
    %c224 = arith.constant 224 : index
    %c0_189 = arith.constant 0 : index
    %170 = vector.load %arg7[%c224, %c0_189] : memref<272x640xbf16, #tpu.memory_space<vmem>>, vector<4x640xbf16>
    tpu.vector_store %arg7[%c224, %c0_189], %169 {strides = array<i32>} : memref<272x640xbf16, #tpu.memory_space<vmem>>, vector<4x640xbf16>,
    %c0_190 = arith.constant 0 : index
    %c0_191 = arith.constant 0 : index
    %c504 = arith.constant 504 : index
    %171 = vector.load %arg2[%c0_190, %c0_191, %c504] : memref<1x4x1664xbf16, #tpu.memory_space<vmem>>, vector<1x4x640xbf16>
    %172 = vector.shape_cast %171 : vector<1x4x640xbf16> to vector<4x640xbf16>
    %c228 = arith.constant 228 : index
    %c0_192 = arith.constant 0 : index
    %173 = vector.load %arg7[%c228, %c0_192] : memref<272x640xbf16, #tpu.memory_space<vmem>>, vector<4x640xbf16>
    tpu.vector_store %arg7[%c228, %c0_192], %172 {strides = array<i32>} : memref<272x640xbf16, #tpu.memory_space<vmem>>, vector<4x640xbf16>,
    %c0_193 = arith.constant 0 : index
    %c0_194 = arith.constant 0 : index
    %c720 = arith.constant 720 : index
    %174 = vector.load %arg2[%c0_193, %c0_194, %c720] : memref<1x4x1664xbf16, #tpu.memory_space<vmem>>, vector<1x4x640xbf16>
    %175 = vector.shape_cast %174 : vector<1x4x640xbf16> to vector<4x640xbf16>
    %c232 = arith.constant 232 : index
    %c0_195 = arith.constant 0 : index
    %176 = vector.load %arg7[%c232, %c0_195] : memref<272x640xbf16, #tpu.memory_space<vmem>>, vector<4x640xbf16>
    tpu.vector_store %arg7[%c232, %c0_195], %175 {strides = array<i32>} : memref<272x640xbf16, #tpu.memory_space<vmem>>, vector<4x640xbf16>,
    %c0_196 = arith.constant 0 : index
    %c0_197 = arith.constant 0 : index
    %c726_198 = arith.constant 726 : index
    %177 = vector.load %arg2[%c0_196, %c0_197, %c726_198] : memref<1x4x1664xbf16, #tpu.memory_space<vmem>>, vector<1x4x640xbf16>
    %178 = vector.shape_cast %177 : vector<1x4x640xbf16> to vector<4x640xbf16>
    %c236 = arith.constant 236 : index
    %c0_199 = arith.constant 0 : index
    %179 = vector.load %arg7[%c236, %c0_199] : memref<272x640xbf16, #tpu.memory_space<vmem>>, vector<4x640xbf16>
    tpu.vector_store %arg7[%c236, %c0_199], %178 {strides = array<i32>} : memref<272x640xbf16, #tpu.memory_space<vmem>>, vector<4x640xbf16>,
    %c0_200 = arith.constant 0 : index
    %c0_201 = arith.constant 0 : index
    %c732_202 = arith.constant 732 : index
    %180 = vector.load %arg2[%c0_200, %c0_201, %c732_202] : memref<1x4x1664xbf16, #tpu.memory_space<vmem>>, vector<1x4x640xbf16>
    %181 = vector.shape_cast %180 : vector<1x4x640xbf16> to vector<4x640xbf16>
    %c240_203 = arith.constant 240 : index
    %c0_204 = arith.constant 0 : index
    %182 = vector.load %arg7[%c240_203, %c0_204] : memref<272x640xbf16, #tpu.memory_space<vmem>>, vector<4x640xbf16>
    tpu.vector_store %arg7[%c240_203, %c0_204], %181 {strides = array<i32>} : memref<272x640xbf16, #tpu.memory_space<vmem>>, vector<4x640xbf16>,
    %c0_205 = arith.constant 0 : index
    %c0_206 = arith.constant 0 : index
    %c738_207 = arith.constant 738 : index
    %183 = vector.load %arg2[%c0_205, %c0_206, %c738_207] : memref<1x4x1664xbf16, #tpu.memory_space<vmem>>, vector<1x4x640xbf16>
    %184 = vector.shape_cast %183 : vector<1x4x640xbf16> to vector<4x640xbf16>
    %c244 = arith.constant 244 : index
    %c0_208 = arith.constant 0 : index
    %185 = vector.load %arg7[%c244, %c0_208] : memref<272x640xbf16, #tpu.memory_space<vmem>>, vector<4x640xbf16>
    tpu.vector_store %arg7[%c244, %c0_208], %184 {strides = array<i32>} : memref<272x640xbf16, #tpu.memory_space<vmem>>, vector<4x640xbf16>,
    %c0_209 = arith.constant 0 : index
    %c0_210 = arith.constant 0 : index
    %c744 = arith.constant 744 : index
    %186 = vector.load %arg2[%c0_209, %c0_210, %c744] : memref<1x4x1664xbf16, #tpu.memory_space<vmem>>, vector<1x4x640xbf16>
    %187 = vector.shape_cast %186 : vector<1x4x640xbf16> to vector<4x640xbf16>
    %c248 = arith.constant 248 : index
    %c0_211 = arith.constant 0 : index
    %188 = vector.load %arg7[%c248, %c0_211] : memref<272x640xbf16, #tpu.memory_space<vmem>>, vector<4x640xbf16>
    tpu.vector_store %arg7[%c248, %c0_211], %187 {strides = array<i32>} : memref<272x640xbf16, #tpu.memory_space<vmem>>, vector<4x640xbf16>,
    %c0_212 = arith.constant 0 : index
    %c0_213 = arith.constant 0 : index
    %c960 = arith.constant 960 : index
    %189 = vector.load %arg2[%c0_212, %c0_213, %c960] : memref<1x4x1664xbf16, #tpu.memory_space<vmem>>, vector<1x4x640xbf16>
    %190 = vector.shape_cast %189 : vector<1x4x640xbf16> to vector<4x640xbf16>
    %c252_214 = arith.constant 252 : index
    %c0_215 = arith.constant 0 : index
    %191 = vector.load %arg7[%c252_214, %c0_215] : memref<272x640xbf16, #tpu.memory_space<vmem>>, vector<4x640xbf16>
    tpu.vector_store %arg7[%c252_214, %c0_215], %190 {strides = array<i32>} : memref<272x640xbf16, #tpu.memory_space<vmem>>, vector<4x640xbf16>,
    %c0_216 = arith.constant 0 : index
    %c0_217 = arith.constant 0 : index
    %c966 = arith.constant 966 : index
    %192 = vector.load %arg2[%c0_216, %c0_217, %c966] : memref<1x4x1664xbf16, #tpu.memory_space<vmem>>, vector<1x4x640xbf16>
    %193 = vector.shape_cast %192 : vector<1x4x640xbf16> to vector<4x640xbf16>
    %c256 = arith.constant 256 : index
    %c0_218 = arith.constant 0 : index
    %194 = vector.load %arg7[%c256, %c0_218] : memref<272x640xbf16, #tpu.memory_space<vmem>>, vector<4x640xbf16>
    tpu.vector_store %arg7[%c256, %c0_218], %193 {strides = array<i32>} : memref<272x640xbf16, #tpu.memory_space<vmem>>, vector<4x640xbf16>,
    %c0_219 = arith.constant 0 : index
    %c0_220 = arith.constant 0 : index
    %c972 = arith.constant 972 : index
    %195 = vector.load %arg2[%c0_219, %c0_220, %c972] : memref<1x4x1664xbf16, #tpu.memory_space<vmem>>, vector<1x4x640xbf16>
    %196 = vector.shape_cast %195 : vector<1x4x640xbf16> to vector<4x640xbf16>
    %c260 = arith.constant 260 : index
    %c0_221 = arith.constant 0 : index
    %197 = vector.load %arg7[%c260, %c0_221] : memref<272x640xbf16, #tpu.memory_space<vmem>>, vector<4x640xbf16>
    tpu.vector_store %arg7[%c260, %c0_221], %196 {strides = array<i32>} : memref<272x640xbf16, #tpu.memory_space<vmem>>, vector<4x640xbf16>,
    %c0_222 = arith.constant 0 : index
    %c0_223 = arith.constant 0 : index
    %c978 = arith.constant 978 : index
    %198 = vector.load %arg2[%c0_222, %c0_223, %c978] : memref<1x4x1664xbf16, #tpu.memory_space<vmem>>, vector<1x4x640xbf16>
    %199 = vector.shape_cast %198 : vector<1x4x640xbf16> to vector<4x640xbf16>
    %c264_224 = arith.constant 264 : index
    %c0_225 = arith.constant 0 : index
    %200 = vector.load %arg7[%c264_224, %c0_225] : memref<272x640xbf16, #tpu.memory_space<vmem>>, vector<4x640xbf16>
    tpu.vector_store %arg7[%c264_224, %c0_225], %199 {strides = array<i32>} : memref<272x640xbf16, #tpu.memory_space<vmem>>, vector<4x640xbf16>,
    %c0_226 = arith.constant 0 : index
    %c0_227 = arith.constant 0 : index
    %c984 = arith.constant 984 : index
    %201 = vector.load %arg2[%c0_226, %c0_227, %c984] : memref<1x4x1664xbf16, #tpu.memory_space<vmem>>, vector<1x4x640xbf16>
    %202 = vector.shape_cast %201 : vector<1x4x640xbf16> to vector<4x640xbf16>
    %c268 = arith.constant 268 : index
    %c0_228 = arith.constant 0 : index
    %203 = vector.load %arg7[%c268, %c0_228] : memref<272x640xbf16, #tpu.memory_space<vmem>>, vector<4x640xbf16>
    tpu.vector_store %arg7[%c268, %c0_228], %202 {strides = array<i32>} : memref<272x640xbf16, #tpu.memory_space<vmem>>, vector<4x640xbf16>,
    %c0_229 = arith.constant 0 : index
    %c0_230 = arith.constant 0 : index
    %204 = vector.load %arg3[%c0_229, %c0_230] : memref<128x272xbf16, #tpu.memory_space<vmem>>, vector<128x272xbf16>
    %c0_231 = arith.constant 0 : index
    %c0_232 = arith.constant 0 : index
    %205 = vector.load %arg7[%c0_231, %c0_232] : memref<272x640xbf16, #tpu.memory_space<vmem>>, vector<272x640xbf16>
    %cst = arith.constant dense<0.000000e+00> : vector<128x640xf32>
    %206 = tpu.matmul %204, %205, %cst {dimension_numbers = #tpu.dot_dimension_numbers<[1], [0], [0], [1], [0, 0, 1, 1], [], []>} : vector<128x272xbf16>, vector<272x640xbf16>, vector<128x640xf32> -> vector<128x640xf32>
    %c0_233 = arith.constant 0 : index
    %c0_234 = arith.constant 0 : index
    %207 = vector.load %arg4[%c0_233, %c0_234] : memref<128x1xf32, #tpu.memory_space<vmem>>, vector<128x1xf32>
    %208 = vector.broadcast %207 : vector<128x1xf32> to vector<128x640xf32>
    %209 = arith.mulf %206, %208 : vector<128x640xf32>
    %c0_235 = arith.constant 0 : index
    %c0_236 = arith.constant 0 : index
    %210 = vector.load %arg5[%c0_235, %c0_236] : memref<128x1xf32, #tpu.memory_space<vmem>>, vector<128x1xf32>
    %211 = vector.broadcast %210 : vector<128x1xf32> to vector<128x640xf32>
    %212 = arith.addf %209, %211 : vector<128x640xf32>
    %cst_237 = arith.constant 0.000000e+00 : f32
    %213 = vector.broadcast %cst_237 : f32 to vector<128x640xf32>
    %214 = arith.maximumf %212, %213 : vector<128x640xf32>
    %c0_238 = arith.constant 0 : index
    %c0_239 = arith.constant 0 : index
    %c0_240 = arith.constant 0 : index
    %215 = vector.load %arg6[%c0_238, %c0_239, %c0_240] : memref<1x128x640xf32, #tpu.memory_space<vmem>>, vector<1x128x640xf32>
    %216 = vector.shape_cast %215 : vector<1x128x640xf32> to vector<128x640xf32>
    %217 = vector.shape_cast %214 : vector<128x640xf32> to vector<1x128x640xf32>
    tpu.vector_store %arg6[%c0_238, %c0_239, %c0_240], %217 {strides = array<i32>} : memref<1x128x640xf32, #tpu.memory_space<vmem>>, vector<1x128x640xf32>,
    return
  }
  func.func @transform_0(%arg0: i32, %arg1: i32) -> (i32, i32, i32) {
    %c0_i32 = arith.constant 0 : i32
    %c0_i32_0 = arith.constant 0 : i32
    %c0_i32_1 = arith.constant 0 : i32
    return %arg0, %c0_i32, %c0_i32_0 : i32, i32, i32
  }
  func.func @transform_1(%arg0: i32, %arg1: i32) -> (i32, i32) {
    %c0_i32 = arith.constant 0 : i32
    %c0_i32_0 = arith.constant 0 : i32
    %c0_i32_1 = arith.constant 0 : i32
    return %c0_i32, %c0_i32_0 : i32, i32
  }
  func.func @transform_2(%arg0: i32, %arg1: i32) -> (i32, i32) {
    %c0_i32 = arith.constant 0 : i32
    %c0_i32_0 = arith.constant 0 : i32
    %c0_i32_1 = arith.constant 0 : i32
    return %c0_i32, %c0_i32_0 : i32, i32
  }
  func.func @transform_3(%arg0: i32, %arg1: i32) -> (i32, i32) {
    %c0_i32 = arith.constant 0 : i32
    %c0_i32_0 = arith.constant 0 : i32
    %c0_i32_1 = arith.constant 0 : i32
    return %c0_i32, %c0_i32_0 : i32, i32
  }
  func.func @transform_4(%arg0: i32, %arg1: i32) -> (i32, i32, i32) {
    %c0_i32 = arith.constant 0 : i32
    %c0_i32_0 = arith.constant 0 : i32
    return %arg0, %c0_i32, %arg1 : i32, i32, i32
  }
}

</mosaic_0001>

<bundles_post_ra>
// kernel: tpu_custom_call.1
= control target key start
LH: loop header
LB: loop body
LE: loop exit
PB: predicated region body
PF: predicated region fallthrough
CT: control target
= control target key end

     0   :  { %9 = vsyncpa [#allocation4], 0  ;;  %s8000_s0 = inlined_call_operand.vmem [shape: bf16[2,4,1664], index: 0, kind: input, shape index: {}]   ;;  %s8001_s1 = inlined_call_operand.vmem [shape: bf16[128,272], index: 1, kind: input, shape index: {}]   ;;  %s8002_s2 = inlined_call_operand.vmem [shape: f32[128,1], index: 2, kind: input, shape index: {}]   ;;  %s8003_s3 = inlined_call_operand.vmem [shape: f32[128,1], index: 3, kind: input, shape index: {}]   ;;  %s8004_s4 = inlined_call_operand.hbm [shape: f32[2,128,640], index: 4, kind: output, shape index: {}]  }
   0x1   :  { %11 = vsyncpa [#allocation4 + $0x1], 0  ;;  %s5457_s15 = smov 0   ;;  %s5459_s16 = smov 0  }
   0x2   :  { %s5461_s17 = smov 0   ;;  %s5463_s18 = smov 0  }
   0x3   :  { %s5465_s19 = smov 0   ;;  %s5467_s20 = smov 0  }
   0x4 LB: > { %s4581_s21 = sadd.s32 4294967295, %s5380_s20   ;;  %s4582_s22 = sadd.s32 4294967294, %s5380_s20   ;;  %s5380_s20 = sphi %s5467_s20, %s17_s20   ;;  %s5376_s19 = sphi %s5465_s19, %s8585_s19   ;;  %s5372_s18 = sphi %s5463_s18, %s8584_s18   ;;  %s5368_s17 = sphi %s5461_s17, %s8583_s17   ;;  %s5364_s16 = sphi %s5459_s16, %s8582_s16   ;;  %s5360_s15 = sphi %s5457_s15, %s8581_s15  }
   0x5   : > { %s29_s23 = sadd.s32 1, %s5376_s19  ;;  %s127_s24 = sadd.s32 1, %s5368_s17 }
   0x6   : > { %p31_p0 = scmp.ge.s32.totalorder %s29_s23, 2  ;;  %p137_p1 = scmp.ne.s32.totalorder %s5368_s17, %s5364_s16 }
   0x7   : > { %p138_p2 = scmp.eq.s32.totalorder %s4581_s21, 1  ;;  %p143_p3 = scmp.ne.s32.totalorder %s5364_s16, %s5360_s15 }
   0x8   : > { %s8587_s23 = smov (%p31_p0, %s29_s23), 0  ;;  %p144_p5 = scmp.eq.s32.totalorder %s4582_s22, 1 }
   0x9   : > { %p5497_p4 = por %p138_p2, %p137_p1  ;;  %s122_s26 = ssub.s32 %s5376_s19, %s8587_s23 }
   0xa   : > { %p4585_p6 = scmp.ge.s32.totalorder %s5380_s20, 1  ;;  %p125_p7 = scmp.eq.s32.totalorder %s122_s26, 0 }
   0xb   : > { %p5504_p8 = por %p144_p5, %p143_p3  ;;  %p179_p9 = scmp.lt.s32.totalorder %s5380_s20, 3 }
   0xc   : > { %s5510_s28 = scalar_select %p125_p7, %s5368_s17, %s127_s24  }
   0xd   : > { %p180_p10 = pnand %p4585_p6, %p179_p9 }
   0xf   : > { %183 = sbr.rel (%p180_p10) target bundleno = 1366 (0x556), region = 36 }
  0x14   : > { %p205_p11 = scmp.lt.s32.totalorder %s5372_s18, 1  ;;  %s5382_s8 = smov 61   ;;  %vm236_vm0 = vcmask 498688   ;;  %vm234_vm1 = vcmask 1043456   ;;  %vm271_vm2 = vcmask 490496   ;;  %vm305_vm3 = vcmask 482304  }
  0x15   : > { %s5383_s9 = smov 60   ;;  %s5384_s10 = smov 59   ;;  %vm340_vm4 = vcmask 171008   ;;  %vm374_vm5 = vcmask 162816   ;;  %vm409_vm6 = vcmask 154624   ;;  %vm443_vm7 = vcmask 891904  }
  0x16   : > { %s206_s29 = scalar_select %p205_p11, %s5372_s18, 1  ;;  %vm478_vm8 = vcmask 883712   ;;  %vm512_vm9 = vcmask 875520   ;;  %vm8078_vm10 = vcmask 121856   ;;  %vm581_vm11 = vcmask 97280  }
  0x17   : > { %s5385_s11 = smov 21   ;;  %s5386_s12 = smov 20   ;;  %vm8079_vm12 = vcmask 72704   ;;  %vm8091_vm13 = vcmask 187392   ;;  %vm718_vm14 = vcmask 138240   ;;  %vm753_vm15 = vcmask 252928  }
  0x18   : > { %s5192_s30 = smul.u32 26, %s206_s29  ;;  %s5387_s13 = smov 19  }
  0x19   : > { %s5388_s14 = smov 109   ;;  %s5389_s21 = smov 108  }
  0x1a   : > { %s5517_s7 = scalar_lea.vmem %s8000_s0, %s5192_s30  ;;  %s5390_s22 = smov 107  }
  0x1b   : > { %v213_v0 = vld [vmem:[%s5517_s7 + $0xe] sm:$0xf]  ;;  %v5521_v1 = vld [vmem:[%s5517_s7 + $0x6] sm:$0xff]  ;;  %s8041_s24 = smov 15   ;;  %s8047_s26 = smov 12  }
  0x1c   : > { %218 = vst [vmem:[#allocation1 + $0x10] ss:$2 sm:$0xff] %v213_v0  ;;  %v248_v5 = vld [vmem:[%s5517_s7 + $0xe] sm:$0xf]  ;;  %v5546_v33 = vld [vmem:[%s5517_s7 + $0x4] sm:$0xff]  ;;  %s5393_s29 = smov 9  }
  0x1d   : > { %215 = vst [vmem:[#allocation1] ss:$2 sm:$0xff] %v5521_v1  ;;  %v283_v9 = vld [vmem:[%s5517_s7 + $0xe] sm:$0xf]  ;;  %s5394_s30 = smov 23   ;;  %s5395_s5 = smov 17  }
  0x1e   : > { %v317_v12 = vld [vmem:[%s5517_s7 + $0xe] sm:$0xf]  ;;  %s8157_s6 = smov 31  }
  0x1f   : > { %v352_v16 = vld [vmem:[%s5517_s7 + $0xe] sm:$0xf] }
  0x20   : > { %v386_v20 = vld [vmem:[%s5517_s7 + $0xe] sm:$0xf] }
  0x21   : > { %v5537_v22 = vld [vmem:[%s5517_s7 + $0x8] sm:$0xff]  ;;  %v421_v25 = vld [vmem:[%s5517_s7 + $0x10] sm:$0xf] }
  0x22   : > { %v455_v32 = vld [vmem:[%s5517_s7 + $0x10] sm:$0xf]  ;;  %v524_v38 = vld [vmem:[%s5517_s7 + $0xc] sm:$0xf] }
  0x23   : > { %v223_v2 = vld.sshfl [vmem:[#allocation1 + $0x10] sm:$0xff pattern:$0x75643120]  ;;  %v559_v42 = vld [vmem:[%s5517_s7 + $0xc] sm:$0xf] }
  0x24   : > { %229 = vrot.lane.b32.xlu1 %v223_v2, %s5382_s8  ;;  %v219_v3 = vld.sshfl [vmem:[#allocation1] sm:$0xff pattern:$0x75643120]  ;;  %v221_v4 = vld.sshfl [vmem:[#allocation1 + $0x8] sm:$0xff pattern:$0x75643120] }
  0x25   : > { %225 = vrot.lane.b32.xlu0 %v219_v3, %s5382_s8  ;;  %251 = vst [vmem:[#allocation1 + $0x1] ss:$2 sm:$0xff] %v5521_v1  ;;  %v490_v37 = vld [vmem:[%s5517_s7 + $0x10] sm:$0xf]  ;;  %v593_v46 = vld [vmem:[%s5517_s7 + $0xc] sm:$0xf] }
  0x26   : > { %254 = vst [vmem:[#allocation1 + $0x11] ss:$2 sm:$0xff] %v248_v5  ;;  %v628_v50 = vld [vmem:[%s5517_s7 + $0xe] sm:$0xf] }
  0x27   : > { %v662_v54 = vld [vmem:[%s5517_s7 + $0xe] sm:$0xf] }
  0x28   : > { %v696_v58 = vld [vmem:[%s5517_s7 + $0xe] sm:$0xf] }
  0x2c   : > { %v255_v6 = vld.sshfl [vmem:[#allocation1] sm:$0xff pattern:$0x75643120]  ;;  %v257_v7 = vld.sshfl [vmem:[#allocation1 + $0x8] sm:$0xff pattern:$0x75643120] }
  0x2d   : > { %227 = vrot.lane.b32.xlu0 %v221_v4, %s5382_s8  ;;  %261 = vrot.lane.b32.xlu1 %v255_v6, %s5383_s9  ;;  %285 = vst [vmem:[#allocation1] ss:$2 sm:$0xff] %v5521_v1  ;;  %v259_v8 = vld.sshfl [vmem:[#allocation1 + $0x10] sm:$0xff pattern:$0x75643120]  ;;  %s8160_s8 = smov 28  }
  0x2e   : > { %263 = vrot.lane.b32.xlu2 %v257_v7, %s5383_s9  ;;  %288 = vst [vmem:[#allocation1 + $0x10] ss:$2 sm:$0xff] %v283_v9  ;;  %v730_v4 = vld [vmem:[%s5517_s7 + $0x10] sm:$0xf] }
  0x34   : > { %v291_v10 = vld.sshfl [vmem:[#allocation1 + $0x8] sm:$0xff pattern:$0x75643120]  ;;  %v289_v11 = vld.sshfl [vmem:[#allocation1] sm:$0xff pattern:$0x75643120] }
  0x35   : > { %297 = vrot.lane.b32.xlu1 %v291_v10, %s5384_s10  ;;  %295 = vrot.lane.b32.xlu0 %v289_v11, %s5384_s10  ;;  %320 = vst [vmem:[#allocation1 + $0x1] ss:$2 sm:$0xff] %v5521_v1  ;;  %v293_v13 = vld.sshfl [vmem:[#allocation1 + $0x10] sm:$0xff pattern:$0x75643120] }
  0x36   : > { %265 = vrot.lane.b32.xlu2 %v259_v8, %s5383_s9  ;;  %323 = vst [vmem:[#allocation1 + $0x11] ss:$2 sm:$0xff] %v317_v12  ;;  %s5398_s9 = smov 25  }
  0x3c   : > { %v326_v14 = vld.sshfl [vmem:[#allocation1 + $0x8] sm:$0xff pattern:$0x75643120]  ;;  %v324_v15 = vld.sshfl [vmem:[#allocation1] sm:$0xff pattern:$0x75643120] }
  0x3d   : > { %332 = vrot.lane.b32.xlu1 %v326_v14, %s5385_s11  ;;  %330 = vrot.lane.b32.xlu0 %v324_v15, %s5385_s11  ;;  %354 = vst [vmem:[#allocation1] ss:$2 sm:$0xff] %v5521_v1  ;;  %v328_v17 = vld.sshfl [vmem:[#allocation1 + $0x10] sm:$0xff pattern:$0x75643120] }
  0x3e   : > { %299 = vrot.lane.b32.xlu2 %v293_v13, %s5384_s10  ;;  %357 = vst [vmem:[#allocation1 + $0x10] ss:$2 sm:$0xff] %v352_v16  ;;  %s8076_s10 = smov 10  }
  0x44   : > { %v360_v18 = vld.sshfl [vmem:[#allocation1 + $0x8] sm:$0xff pattern:$0x75643120]  ;;  %v358_v19 = vld.sshfl [vmem:[#allocation1] sm:$0xff pattern:$0x75643120] }
  0x45   : > { %366 = vrot.lane.b32.xlu1 %v360_v18, %s5386_s12  ;;  %364 = vrot.lane.b32.xlu0 %v358_v19, %s5386_s12  ;;  %389 = vst [vmem:[#allocation1 + $0x1] ss:$2 sm:$0xff] %v5521_v1  ;;  %v362_v21 = vld.sshfl [vmem:[#allocation1 + $0x10] sm:$0xff pattern:$0x75643120] }
  0x46   : > { %334 = vrot.lane.b32.xlu2 %v328_v17, %s5385_s11  ;;  %392 = vst [vmem:[#allocation1 + $0x11] ss:$2 sm:$0xff] %v386_v20  ;;  %s8005_s11 = smov 7  }
  0x4c   : > { %v395_v23 = vld.sshfl [vmem:[#allocation1 + $0x8] sm:$0xff pattern:$0x75643120]  ;;  %v393_v24 = vld.sshfl [vmem:[#allocation1] sm:$0xff pattern:$0x75643120] }
  0x4d   : > { %401 = vrot.lane.b32.xlu1 %v395_v23, %s5387_s13  ;;  %399 = vrot.lane.b32.xlu0 %v393_v24, %s5387_s13  ;;  %423 = vst [vmem:[#allocation1] ss:$2 sm:$0xff] %v5537_v22  ;;  %v397_v26 = vld.sshfl [vmem:[#allocation1 + $0x10] sm:$0xff pattern:$0x75643120] }
  0x4e   : > { %368 = vrot.lane.b32.xlu2 %v362_v21, %s5386_s12  ;;  %426 = vst [vmem:[#allocation1 + $0x10] ss:$2 sm:$0xff] %v421_v25  ;;  %v765_v21 = vld [vmem:[%s5517_s7 + $0x10] sm:$0xf] }
  0x54   : > { %v429_v27 = vld.sshfl [vmem:[#allocation1 + $0x8] sm:$0xff pattern:$0x75643120]  ;;  %v427_v28 = vld.sshfl [vmem:[#allocation1] sm:$0xff pattern:$0x75643120] }
  0x55   : > { %435 = vrot.lane.b32.xlu1 %v429_v27, %s5388_s14  ;;  %433 = vrot.lane.b32.xlu0 %v427_v28, %s5388_s14  ;;  %458 = vst [vmem:[#allocation1 + $0x1] ss:$2 sm:$0xff] %v5537_v22  ;;  %v431_v29 = vld.sshfl [vmem:[#allocation1 + $0x10] sm:$0xff pattern:$0x75643120] }
  0x56   : > { %403 = vrot.lane.b32.xlu2 %v397_v26, %s5387_s13  ;;  %461 = vst [vmem:[#allocation1 + $0x11] ss:$2 sm:$0xff] %v455_v32  ;;  %s5401_s13 = smov 4  }
  0x5c   : > { %v464_v30 = vld.sshfl [vmem:[#allocation1 + $0x8] sm:$0xff pattern:$0x75643120]  ;;  %v462_v31 = vld.sshfl [vmem:[#allocation1] sm:$0xff pattern:$0x75643120] }
  0x5d   : > { %470 = vrot.lane.b32.xlu1 %v464_v30, %s5389_s21  ;;  %468 = vrot.lane.b32.xlu0 %v462_v31, %s5389_s21  ;;  %492 = vst [vmem:[#allocation1] ss:$2 sm:$0xff] %v5537_v22  ;;  %v466_v36 = vld.sshfl [vmem:[#allocation1 + $0x10] sm:$0xff pattern:$0x75643120] }
  0x5e   : > { %437 = vrot.lane.b32.xlu2 %v431_v29, %s5388_s14  ;;  %495 = vst [vmem:[#allocation1 + $0x10] ss:$2 sm:$0xff] %v490_v37  ;;  %s8021_s14 = smov 1  }
  0x64   : > { %v498_v34 = vld.sshfl [vmem:[#allocation1 + $0x8] sm:$0xff pattern:$0x75643120]  ;;  %v496_v35 = vld.sshfl [vmem:[#allocation1] sm:$0xff pattern:$0x75643120] }
  0x65   : > { %504 = vrot.lane.b32.xlu1 %v498_v34, %s5390_s22  ;;  %502 = vrot.lane.b32.xlu0 %v496_v35, %s5390_s22  ;;  %527 = vst [vmem:[#allocation1 + $0x1] ss:$2 sm:$0xff] %v5546_v33  ;;  %v500_v41 = vld.sshfl [vmem:[#allocation1 + $0x10] sm:$0xff pattern:$0x75643120]  ;;  %v833_v35 = vld [vmem:[%s5517_s7 + $0x2] sm:$0xff] }
  0x66   : > { %472 = vrot.lane.b32.xlu2 %v466_v36, %s5389_s21  ;;  %530 = vst [vmem:[#allocation1 + $0x11] ss:$2 sm:$0xff] %v524_v38  ;;  %s5403_s21 = smov 126  }
  0x6c   : > { %v533_v39 = vld.sshfl [vmem:[#allocation1 + $0x8] sm:$0xff pattern:$0x75643120]  ;;  %v531_v40 = vld.sshfl [vmem:[#allocation1] sm:$0xff pattern:$0x75643120] }
  0x6d   : > { %539 = vrot.lane.b32.xlu1 %v533_v39, %s8041_s24  ;;  %537 = vrot.lane.b32.xlu0 %v531_v40, %s8041_s24  ;;  %561 = vst [vmem:[#allocation1] ss:$2 sm:$0xff] %v5546_v33  ;;  %v535_v45 = vld.sshfl [vmem:[#allocation1 + $0x10] sm:$0xff pattern:$0x75643120] }
  0x6e   : > { %506 = vrot.lane.b32.xlu2 %v500_v41, %s5390_s22  ;;  %564 = vst [vmem:[#allocation1 + $0x10] ss:$2 sm:$0xff] %v559_v42  ;;  %s8006_s22 = smov 18  }
  0x74   : > { %v565_v43 = vld.sshfl [vmem:[#allocation1] sm:$0xff pattern:$0x75643120]  ;;  %v567_v44 = vld.sshfl [vmem:[#allocation1 + $0x8] sm:$0xff pattern:$0x75643120] }
  0x75   : > { %571 = vrot.lane.b32.xlu0 %v565_v43, %s8047_s26  ;;  %596 = vst [vmem:[#allocation1 + $0x1] ss:$2 sm:$0xff] %v5546_v33  ;;  %v5562_v49 = vld.sshfl [vmem:[#allocation1 + $0x10] sm:$0xff pattern:$0x75643120] }
  0x76   : > { %541 = vrot.lane.b32.xlu2 %v535_v45, %s8041_s24  ;;  %599 = vst [vmem:[#allocation1 + $0x11] ss:$2 sm:$0xff] %v593_v46 }
  0x7c   : > { %v602_v47 = vld.sshfl [vmem:[#allocation1 + $0x8] sm:$0xff pattern:$0x75643120]  ;;  %v600_v48 = vld.sshfl [vmem:[#allocation1] sm:$0xff pattern:$0x75643120] }
  0x7d   : > { %608 = vrot.lane.b32.xlu1 %v602_v47, %s5393_s29  ;;  %606 = vrot.lane.b32.xlu0 %v600_v48, %s5393_s29  ;;  %630 = vst [vmem:[#allocation1] ss:$2 sm:$0xff] %v5521_v1  ;;  %v5568_v53 = vld.sshfl [vmem:[#allocation1 + $0x10] sm:$0xff pattern:$0x75643120] }
  0x7e   : > { %573 = vrot.lane.b32.xlu2 %v567_v44, %s8047_s26  ;;  %633 = vst [vmem:[#allocation1 + $0x10] ss:$2 sm:$0xff] %v628_v50 }
  0x84   : > { %v634_v51 = vld.sshfl [vmem:[#allocation1] sm:$0xff pattern:$0x75643120]  ;;  %v636_v52 = vld.sshfl [vmem:[#allocation1 + $0x8] sm:$0xff pattern:$0x75643120] }
  0x85   : > { %640 = vrot.lane.b32.xlu1 %v634_v51, %s5394_s30  ;;  %665 = vst [vmem:[#allocation1 + $0x1] ss:$2 sm:$0xff] %v5521_v1  ;;  %v5575_v57 = vld.sshfl [vmem:[#allocation1 + $0x10] sm:$0xff pattern:$0x75643120] }
  0x86   : > { %642 = vrot.lane.b32.xlu2 %v636_v52, %s5394_s30  ;;  %668 = vst [vmem:[#allocation1 + $0x11] ss:$2 sm:$0xff] %v662_v54 }
  0x88   : > { %v264_v61 = vpop.permute.xlu2 %263 }
  0x89   : > { %v268_v5 = vrot.slane %v264_v61, 4 }
  0x8c   : > { %v671_v55 = vld.sshfl [vmem:[#allocation1 + $0x8] sm:$0xff pattern:$0x75643120]  ;;  %v669_v56 = vld.sshfl [vmem:[#allocation1] sm:$0xff pattern:$0x75643120] }
  0x8d   : > { %677 = vrot.lane.b32.xlu1 %v671_v55, %s5386_s12  ;;  %675 = vrot.lane.b32.xlu0 %v669_v56, %s5386_s12  ;;  %698 = vst [vmem:[#allocation1] ss:$2 sm:$0xff] %v5521_v1  ;;  %v5581_v62 = vld.sshfl [vmem:[#allocation1 + $0x10] sm:$0xff pattern:$0x75643120] }
  0x8e   : > { %701 = vst [vmem:[#allocation1 + $0x10] ss:$2 sm:$0xff] %v696_v58 }
  0x90   : > { %v266_v8 = vpop.permute.xlu2 %265 }
  0x91   : > { %v269_v11 = vrot.slane %v266_v8, 4 }
  0x93   : > { %v273_v16 = vsel %vm234_vm1, %v268_v5, %v269_v11  ;;  %v275_v17 = vsel %vm271_vm2, %v266_v8, %v269_v11 }
  0x94   : > { %v704_v59 = vld.sshfl [vmem:[#allocation1 + $0x8] sm:$0xff pattern:$0x75643120]  ;;  %v702_v60 = vld.sshfl [vmem:[#allocation1] sm:$0xff pattern:$0x75643120]  ;;  %v274_v18 = vsel %vm271_vm2, %v264_v61, %v273_v16 }
  0x95   : > { %710 = vrot.lane.b32.xlu0 %v704_v59, %s5395_s5  ;;  %733 = vst [vmem:[#allocation1 + $0x1] ss:$2 sm:$0xff] %v5537_v22  ;;  %708 = vrot.lane.b32.xlu2 %v702_v60, %s5395_s5  ;;  %v5588_v9 = vld.sshfl [vmem:[#allocation1 + $0x10] sm:$0xff pattern:$0x75643120] }
  0x96   : > { %v230_v63 = vpop.permute.xlu1 %229  ;;  %736 = vst [vmem:[#allocation1 + $0x11] ss:$2 sm:$0xff] %v730_v4 }
  0x97   : > { %v233_v0 = vrot.slane %v230_v63, 4  ;;  %v226_v2 = vpop.permute.xlu0 %225  ;;  %281 = vst [vmem:[#allocation2 + $0x10] sm:$0xc] %v275_v17 }
  0x98   : > { %v231_v10 = vrot.slane %v226_v2, 4  ;;  %280 = vst [vmem:[#allocation2 + $0x8] sm:$0xcc] %v274_v18  ;;  %v300_v40 = vpop.permute.xlu2 %299 }
  0x99   : > { %v240_v3 = vsel %vm236_vm0, %v230_v63, %v233_v0  ;;  %v303_v41 = vrot.slane %v300_v40, 4 }
  0x9a   : > { %246 = vst [vmem:[#allocation2 + $0x10] sm:$0x3] %v240_v3 }
  0x9b   : > { %v309_v45 = vsel %vm305_vm3, %v300_v40, %v303_v41 }
  0x9c   : > { %v737_v6 = vld.sshfl [vmem:[#allocation1] sm:$0xff pattern:$0x75643120]  ;;  %v739_v7 = vld.sshfl [vmem:[#allocation1 + $0x8] sm:$0xff pattern:$0x75643120] }
  0x9d   : > { %743 = vrot.lane.b32.xlu1 %v737_v6, %s8157_s6  ;;  %767 = vst [vmem:[#allocation1] ss:$2 sm:$0xff] %v5537_v22  ;;  %745 = vrot.lane.b32.xlu2 %v739_v7, %s8157_s6  ;;  %v5602_v28 = vld.sshfl [vmem:[#allocation1 + $0x10] sm:$0xff pattern:$0x75643120] }
  0x9e   : > { %770 = vst [vmem:[#allocation1 + $0x10] ss:$2 sm:$0xff] %v765_v21 }
  0x9f   : > { %v228_v12 = vpop.permute.xlu0 %227  ;;  %v262_v13 = vpop.permute.xlu1 %261  ;;  %315 = vst [vmem:[#allocation2 + $0x24] sm:$0x3] %v309_v45 }
  0xa0   : > { %v232_v14 = vrot.slane %v228_v12, 4  ;;  %v267_v15 = vrot.slane %v262_v13, 4  ;;  %v335_v55 = vpop.permute.xlu2 %334 }
  0xa1   : > { %v338_v56 = vrot.slane %v335_v55, 4 }
  0xa2   : > { %v235_v19 = vsel %vm234_vm1, %v231_v10, %v232_v14  ;;  %v238_v20 = vsel %vm234_vm1, %v232_v14, %v233_v0  ;;  %v270_v24 = vsel %vm234_vm1, %v267_v15, %v268_v5 }
  0xa3   : > { %v237_v23 = vsel %vm236_vm0, %v226_v2, %v235_v19  ;;  %v239_v27 = vsel %vm236_vm0, %v228_v12, %v238_v20  ;;  %v272_v29 = vsel %vm271_vm2, %v262_v13, %v270_v24  ;;  %v344_v61 = vsel %vm340_vm4, %v335_v55, %v338_v56 }
  0xa4   : > { %v773_v25 = vld.sshfl [vmem:[#allocation1 + $0x8] sm:$0xff pattern:$0x75643120]  ;;  %v771_v26 = vld.sshfl [vmem:[#allocation1] sm:$0xff pattern:$0x75643120] }
  0xa5   : > { %779 = vrot.lane.b32.xlu1 %v773_v25, %s8160_s8  ;;  %777 = vrot.lane.b32.xlu0 %v771_v26, %s8160_s8  ;;  %802 = vst [vmem:[#allocation1 + $0x1] ss:$2 sm:$0xff] %v5537_v22  ;;  %vm787_vm0 = vcmask 228352   ;;  %vm822_vm2 = vcmask 203776  }
  0xa6   : > { %244 = vst [vmem:[#allocation2] sm:$0x33] %v237_v23 }
  0xa7   : > { %v298_v30 = vpop.permute.xlu1 %297  ;;  %v296_v31 = vpop.permute.xlu0 %295  ;;  %245 = vst [vmem:[#allocation2 + $0x8] sm:$0x33] %v239_v27 }
  0xa8   : > { %v302_v32 = vrot.slane %v298_v30, 4  ;;  %v301_v34 = vrot.slane %v296_v31, 4  ;;  %279 = vst [vmem:[#allocation2] sm:$0xcc] %v272_v29  ;;  %v369_v10 = vpop.permute.xlu2 %368 }
  0xa9   : > { %350 = vst [vmem:[#allocation2 + $0x24] sm:$0xc] %v344_v61  ;;  %v372_v12 = vrot.slane %v369_v10, 4 }
  0xaa   : > { %v304_v36 = vsel %vm234_vm1, %v301_v34, %v302_v32  ;;  %v307_v44 = vsel %vm234_vm1, %v302_v32, %v303_v41 }
  0xab   : > { %v306_v37 = vsel %vm305_vm3, %v296_v31, %v304_v36  ;;  %v308_v48 = vsel %vm305_vm3, %v298_v30, %v307_v44  ;;  %v378_v17 = vsel %vm374_vm5, %v369_v10, %v372_v12  ;;  %vm856_vm3 = vcmask 80896  }
  0xac   : > { %v808_v38 = vld.sshfl [vmem:[#allocation1 + $0x8] sm:$0xff pattern:$0x75643120]  ;;  %v806_v39 = vld.sshfl [vmem:[#allocation1] sm:$0xff pattern:$0x75643120] }
  0xad   : > { %814 = vrot.lane.b32.xlu0 %v808_v38, %s5398_s9  ;;  %836 = vst [vmem:[#allocation1] ss:$2 sm:$0xff] %v833_v35  ;;  %812 = vrot.lane.b32.xlu2 %v806_v39, %s5398_s9 }
  0xae   : > { %313 = vst [vmem:[#allocation2 + $0x14] sm:$0x33] %v306_v37 }
  0xaf   : > { %v333_v42 = vpop.permute.xlu1 %332  ;;  %v331_v43 = vpop.permute.xlu0 %330  ;;  %314 = vst [vmem:[#allocation2 + $0x1c] sm:$0x33] %v308_v48 }
  0xb0   : > { %v337_v46 = vrot.slane %v333_v42, 4  ;;  %v336_v47 = vrot.slane %v331_v43, 4  ;;  %384 = vst [vmem:[#allocation2 + $0x38] sm:$0x3] %v378_v17  ;;  %v404_v24 = vpop.permute.xlu2 %403 }
  0xb1   : > { %v407_v26 = vrot.slane %v404_v24, 4 }
  0xb2   : > { %v339_v50 = vsel %vm234_vm1, %v336_v47, %v337_v46  ;;  %v342_v60 = vsel %vm234_vm1, %v337_v46, %v338_v56 }
  0xb3   : > { %v341_v51 = vsel %vm340_vm4, %v331_v43, %v339_v50  ;;  %v343_v2 = vsel %vm340_vm4, %v333_v42, %v342_v60  ;;  %v413_v32 = vsel %vm409_vm6, %v404_v24, %v407_v26  ;;  %vm8022_vm4 = vcmask 56320  }
  0xb4   : > { %v840_v52 = vld.sshfl [vmem:[#allocation1] sm:$0xff pattern:$0x75643120]  ;;  %v842_v54 = vld.sshfl [vmem:[#allocation1 + $0x8] sm:$0xff pattern:$0x75643120] }
  0xb5   : > { %846 = vrot.lane.b32.xlu1 %v840_v52, %s8076_s10  ;;  %871 = vst [vmem:[#allocation1 + $0x1] ss:$2 sm:$0xff] %v833_v35  ;;  %848 = vrot.lane.b32.xlu2 %v842_v54, %s8076_s10 }
  0xb6   : > { %348 = vst [vmem:[#allocation2 + $0x14] sm:$0xcc] %v341_v51 }
  0xb7   : > { %v367_v58 = vpop.permute.xlu1 %366  ;;  %v365_v59 = vpop.permute.xlu0 %364  ;;  %349 = vst [vmem:[#allocation2 + $0x1c] sm:$0xcc] %v343_v2 }
  0xb8   : > { %v371_v63 = vrot.slane %v367_v58, 4  ;;  %v370_v0 = vrot.slane %v365_v59, 4  ;;  %419 = vst [vmem:[#allocation2 + $0x38] sm:$0xc] %v413_v32  ;;  %v438_v41 = vpop.permute.xlu2 %437 }
  0xb9   : > { %v441_v43 = vrot.slane %v438_v41, 4 }
  0xba   : > { %v373_v3 = vsel %vm234_vm1, %v370_v0, %v371_v63  ;;  %v376_v16 = vsel %vm234_vm1, %v371_v63, %v372_v12 }
  0xbb   : > { %v375_v4 = vsel %vm374_vm5, %v365_v59, %v373_v3  ;;  %v377_v18 = vsel %vm374_vm5, %v367_v58, %v376_v16  ;;  %v447_v48 = vsel %vm443_vm7, %v438_v41, %v441_v43 }
  0xbc   : > { %v877_v5 = vld.sshfl [vmem:[#allocation1 + $0x8] sm:$0xff pattern:$0x75643120]  ;;  %v875_v6 = vld.sshfl [vmem:[#allocation1] sm:$0xff pattern:$0x75643120] }
  0xbd   : > { %883 = vrot.lane.b32.xlu1 %v877_v5, %s8005_s11  ;;  %881 = vrot.lane.b32.xlu0 %v875_v6, %s8005_s11  ;;  %905 = vst [vmem:[#allocation1] ss:$2 sm:$0xff] %v833_v35  ;;  %s8017_s11 = smov 6  }
  0xbe   : > { %382 = vst [vmem:[#allocation2 + $0x28] sm:$0x33] %v375_v4 }
  0xbf   : > { %v402_v11 = vpop.permute.xlu1 %401  ;;  %v400_v14 = vpop.permute.xlu0 %399  ;;  %383 = vst [vmem:[#allocation2 + $0x30] sm:$0x33] %v377_v18 }
  0xc0   : > { %v406_v13 = vrot.slane %v402_v11, 4  ;;  %v405_v15 = vrot.slane %v400_v14, 4  ;;  %453 = vst [vmem:[#allocation2 + $0x4c] sm:$0x3] %v447_v48  ;;  %v473_v56 = vpop.permute.xlu2 %472 }
  0xc1   : > { %v476_v59 = vrot.slane %v473_v56, 4 }
  0xc2   : > { %v408_v19 = vsel %vm234_vm1, %v405_v15, %v406_v13  ;;  %v411_v31 = vsel %vm234_vm1, %v406_v13, %v407_v26 }
  0xc3   : > { %v410_v20 = vsel %vm409_vm6, %v400_v14, %v408_v19  ;;  %v412_v34 = vsel %vm409_vm6, %v402_v11, %v411_v31  ;;  %v482_v2 = vsel %vm478_vm8, %v473_v56, %v476_v59  ;;  %vm925_vm6 = vcmask 31744  }
  0xc4   : > { %v911_v7 = vld.sshfl [vmem:[#allocation1 + $0x8] sm:$0xff pattern:$0x75643120]  ;;  %v909_v8 = vld.sshfl [vmem:[#allocation1] sm:$0xff pattern:$0x75643120] }
  0xc5   : > { %917 = vrot.lane.b32.xlu0 %v911_v7, %s5401_s13  ;;  %940 = vst [vmem:[#allocation1 + $0x1] ss:$2 sm:$0xff] %v833_v35  ;;  %915 = vrot.lane.b32.xlu2 %v909_v8, %s5401_s13 }
  0xc6   : > { %417 = vst [vmem:[#allocation2 + $0x28] sm:$0xcc] %v410_v20 }
  0xc7   : > { %v436_v25 = vpop.permute.xlu1 %435  ;;  %v434_v29 = vpop.permute.xlu0 %433  ;;  %418 = vst [vmem:[#allocation2 + $0x30] sm:$0xcc] %v412_v34 }
  0xc8   : > { %v440_v27 = vrot.slane %v436_v25, 4  ;;  %v439_v30 = vrot.slane %v434_v29, 4  ;;  %488 = vst [vmem:[#allocation2 + $0x4c] sm:$0xc] %v482_v2  ;;  %v507_v11 = vpop.permute.xlu2 %506 }
  0xc9   : > { %v510_v16 = vrot.slane %v507_v11, 4 }
  0xca   : > { %v442_v35 = vsel %vm234_vm1, %v439_v30, %v440_v27  ;;  %v445_v47 = vsel %vm234_vm1, %v440_v27, %v441_v43 }
  0xcb   : > { %v444_v36 = vsel %vm443_vm7, %v434_v29, %v442_v35  ;;  %v446_v50 = vsel %vm443_vm7, %v436_v25, %v445_v47  ;;  %vm8065_vm7 = vcmask 7168  }
  0xcc   : > { %v944_v21 = vld.sshfl [vmem:[#allocation1] sm:$0xff pattern:$0x75643120]  ;;  %v946_v23 = vld.sshfl [vmem:[#allocation1 + $0x8] sm:$0xff pattern:$0x75643120] }
  0xcd   : > { %950 = vrot.lane.b32.xlu1 %v944_v21, %s8021_s14  ;;  %974 = vst [vmem:[#allocation1] ss:$2 sm:$0xff] %v5546_v33  ;;  %952 = vrot.lane.b32.xlu2 %v946_v23, %s8021_s14  ;;  %s8026_s14 = smov 33  }
  0xce   : > { %451 = vst [vmem:[#allocation2 + $0x3c] sm:$0x33] %v444_v36 }
  0xcf   : > { %v471_v42 = vpop.permute.xlu1 %470  ;;  %v469_v45 = vpop.permute.xlu0 %468  ;;  %452 = vst [vmem:[#allocation2 + $0x44] sm:$0x33] %v446_v50 }
  0xd0   : > { %v475_v44 = vrot.slane %v471_v42, 4  ;;  %v474_v46 = vrot.slane %v469_v45, 4  ;;  %v542_v21 = vpop.permute.xlu2 %541 }
  0xd1   : > { %v545_v41 = vrot.slane %v542_v21, 4 }
  0xd2   : > { %v477_v51 = vsel %vm234_vm1, %v474_v46, %v475_v44  ;;  %v480_v0 = vsel %vm234_vm1, %v475_v44, %v476_v59 }
  0xd3   : > { %v479_v52 = vsel %vm478_vm8, %v469_v45, %v477_v51  ;;  %v481_v3 = vsel %vm478_vm8, %v471_v42, %v480_v0  ;;  %v551_v48 = vsel %vm8078_vm10, %v542_v21, %v545_v41  ;;  %vm8139_vm8 = vcmask 1031168  }
  0xd4   : > { %v980_v37 = vld.sshfl [vmem:[#allocation1 + $0x8] sm:$0xff pattern:$0x75643120]  ;;  %v978_v38 = vld.sshfl [vmem:[#allocation1] sm:$0xff pattern:$0x75643120] }
  0xd5   : > { %986 = vrot.lane.b32.xlu1 %v980_v37, %s5403_s21  ;;  %984 = vrot.lane.b32.xlu0 %v978_v38, %s5403_s21  ;;  %1009 = vst [vmem:[#allocation1 + $0x1] ss:$2 sm:$0xff] %v5546_v33 }
  0xd6   : > { %486 = vst [vmem:[#allocation2 + $0x3c] sm:$0xcc] %v479_v52 }
  0xd7   : > { %v505_v58 = vpop.permute.xlu1 %504  ;;  %v503_v61 = vpop.permute.xlu0 %502  ;;  %487 = vst [vmem:[#allocation2 + $0x44] sm:$0xcc] %v481_v3 }
  0xd8   : > { %v509_v60 = vrot.slane %v505_v58, 4  ;;  %v508_v63 = vrot.slane %v503_v61, 4  ;;  %v5677_v30 = vpop.permute.xlu2 %573  ;;  %557 = vst [vmem:[#allocation2 + $0x60] sm:$0xc] %v551_v48 }
  0xd9   : > { %8261 = vst [vmem:[#allocation7_spill] sm:$0xff] %v5677_v30  ;;  %v8014_v44 = vrot.slane %v5677_v30, 4 }
  0xda   : > { %v511_v4 = vsel %vm234_vm1, %v508_v63, %v509_v60  ;;  %v514_v19 = vsel %vm234_vm1, %v509_v60, %v510_v16 }
  0xdb   : > { %v513_v5 = vsel %vm512_vm9, %v503_v61, %v511_v4  ;;  %v515_v24 = vsel %vm512_vm9, %v505_v58, %v514_v19 }
  0xdc   : > { %v1015_v39 = vld.sshfl [vmem:[#allocation1 + $0x8] sm:$0xff pattern:$0x75643120]  ;;  %v1013_v40 = vld.sshfl [vmem:[#allocation1] sm:$0xff pattern:$0x75643120] }
  0xdd   : > { %1021 = vrot.lane.b32.xlu0 %v1015_v39, %s8006_s22  ;;  %1043 = vst [vmem:[#allocation1] ss:$2 sm:$0xff] %v5546_v33  ;;  %1019 = vrot.lane.b32.xlu2 %v1013_v40, %s8006_s22  ;;  %s8143_s22 = smov 26  }
  0xde   : > { %520 = vst [vmem:[#allocation2 + $0x50] sm:$0x33] %v513_v5 }
  0xdf   : > { %v540_v12 = vpop.permute.xlu1 %539  ;;  %v538_v13 = vpop.permute.xlu0 %537  ;;  %521 = vst [vmem:[#allocation2 + $0x58] sm:$0x33] %v515_v24 }
  0xe0   : > { %v544_v17 = vrot.slane %v540_v12, 4  ;;  %v543_v18 = vrot.slane %v538_v13, 4  ;;  %v5682_v36 = vpop.permute.xlu2 %642 }
  0xe1   : > { %8262 = vst [vmem:[#allocation8_spill] sm:$0xff] %v5682_v36  ;;  %v8009_v50 = vrot.slane %v5682_v36, 4  ;;  %v1210_v36 = vld [vmem:[%s5517_s7 + $0xe] sm:$0xf] }
  0xe2   : > { %v546_v20 = vsel %vm234_vm1, %v543_v18, %v544_v17  ;;  %v549_v47 = vsel %vm234_vm1, %v544_v17, %v545_v41 }
  0xe3   : > { %v548_v25 = vsel %vm8078_vm10, %v538_v13, %v546_v20 }
  0xe4   : > { %v1047_v54 = vld.sshfl [vmem:[#allocation1] sm:$0xff pattern:$0x75643120]  ;;  %v1049_v55 = vld.sshfl [vmem:[#allocation1 + $0x8] sm:$0xff pattern:$0x75643120] }
  0xe5   : > { %1053 = vrot.lane.b32.xlu1 %v1047_v54, %s8041_s24  ;;  %1077 = vst [vmem:[#allocation1 + $0x1] ss:$2 sm:$0xff] %v5546_v33  ;;  %1055 = vrot.lane.b32.xlu2 %v1049_v55, %s8041_s24  ;;  %v550_v54 = vsel %vm8078_vm10, %v540_v12, %v549_v47  ;;  %s8045_s24 = smov 122  }
  0xe6   : > { %555 = vst [vmem:[#allocation2 + $0x50] sm:$0xcc] %v548_v25 }
  0xe7   : > { %v572_v26 = vpop.permute.xlu0 %571  ;;  %556 = vst [vmem:[#allocation2 + $0x58] sm:$0xcc] %v550_v54 }
  0xe8   : > { %v577_v42 = vrot.slane %v572_v26, 4 }
  0xea   : > { %v580_v55 = vsel %vm234_vm1, %v577_v42, %v8014_v44 }
  0xeb   : > { %v582_v60 = vsel %vm581_vm11, %v572_v26, %v580_v55 }
  0xec   : > { %v1083_v6 = vld.sshfl [vmem:[#allocation1 + $0x8] sm:$0xff pattern:$0x75643120]  ;;  %v1081_v7 = vld.sshfl [vmem:[#allocation1] sm:$0xff pattern:$0x75643120] }
  0xed   : > { %1089 = vrot.lane.b32.xlu1 %v1083_v6, %s8047_s26  ;;  %1087 = vrot.lane.b32.xlu0 %v1081_v7, %s8047_s26  ;;  %1110 = vst [vmem:[#allocation1] ss:$2 sm:$0xff] %v5546_v33  ;;  %s8061_s26 = smov 110  }
  0xee   : > { %589 = vst [vmem:[#allocation2 + $0x64] sm:$0x33] %v582_v60 }
  0xef   : > { %v5670_v23 = vpop.permute.xlu1 %608  ;;  %v607_v32 = vpop.permute.xlu0 %606 }
  0xf0   : > { %8260 = vst [vmem:[#allocation6_spill] sm:$0xff] %v5670_v23  ;;  %v8008_v43 = vrot.slane %v5670_v23, 4  ;;  %v612_v45 = vrot.slane %v607_v32, 4  ;;  %v709_v51 = vpop.permute.xlu2 %708 }
  0xf1   : > { %v714_v3 = vrot.slane %v709_v51, 4 }
  0xf2   : > { %v615_v56 = vsel %vm234_vm1, %v612_v45, %v8008_v43 }
  0xf3   : > { %v617_v61 = vsel %vm8079_vm12, %v607_v32, %v615_v56 }
  0xf4   : > { %v1116_v8 = vld.sshfl [vmem:[#allocation1 + $0x8] sm:$0xff pattern:$0x75643120]  ;;  %v1114_v10 = vld.sshfl [vmem:[#allocation1] sm:$0xff pattern:$0x75643120] }
  0xf5   : > { %1122 = vrot.lane.b32.xlu0 %v1116_v8, %s5393_s29  ;;  %1144 = vst [vmem:[#allocation1 + $0x1] ss:$2 sm:$0xff] %v5546_v33  ;;  %1120 = vrot.lane.b32.xlu2 %v1114_v10, %s5393_s29  ;;  %v516_v33 = vsel %vm512_vm9, %v507_v11, %v510_v16  ;;  %v5718_v11 = vld.sshfl [vmem:[#allocation1 + $0x10] sm:$0xff pattern:$0x75643120]  ;;  %vm1029_vm9 = vcmask 146432  }
  0xf6   : > { %522 = vst [vmem:[#allocation2 + $0x60] sm:$0x3] %v516_v33 }
  0xf7   : > { %v641_v31 = vpop.permute.xlu1 %640  ;;  %624 = vst [vmem:[#allocation2 + $0x64] sm:$0xcc] %v617_v61 }
  0xf8   : > { %v646_v46 = vrot.slane %v641_v31, 4 }
  0xfa   : > { %v649_v63 = vsel %vm234_vm1, %v646_v46, %v8009_v50  ;;  %v868_v46 = vld [vmem:[%s5517_s7 + $0xa] sm:$0xf] }
  0xfb   : > { %v651_v4 = vsel %vm8091_vm13, %v641_v31, %v649_v63  ;;  %v1412_v63 = vld [vmem:[%s5517_s7 + $0x8] sm:$0xff] }
  0xfc   : > { %v1148_v14 = vld.sshfl [vmem:[#allocation1] sm:$0xff pattern:$0x75643120]  ;;  %v1150_v15 = vld.sshfl [vmem:[#allocation1 + $0x8] sm:$0xff pattern:$0x75643120] }
  0xfd   : > { %1154 = vrot.lane.b32.xlu1 %v1148_v14, %s8017_s11  ;;  %1178 = vst [vmem:[#allocation1] ss:$2 sm:$0xff] %v5521_v1  ;;  %1156 = vrot.lane.b32.xlu2 %v1150_v15, %s8017_s11  ;;  %v799_v14 = vld [vmem:[%s5517_s7 + $0x10] sm:$0xf]  ;;  %v5725_v15 = vpop.permute.xlu2 %745  ;;  %s8107_s11 = smov 36  }
  0xfe   : > { %658 = vst [vmem:[#allocation2 + $0x78] sm:$0x33] %v651_v4  ;;  %v8007_v17 = vrot.slane %v5725_v15, 4 }
  0xff   : > { %v5684_v37 = vpop.permute.xlu1 %677  ;;  %v676_v38 = vpop.permute.xlu0 %675  ;;  %8265 = vst [vmem:[#allocation11_spill] sm:$0xff] %v5725_v15 }
 0x100   : > { %8263 = vst [vmem:[#allocation9_spill] sm:$0xff] %v5684_v37  ;;  %v8016_v58 = vrot.slane %v5684_v37, 4  ;;  %v681_v0 = vrot.slane %v676_v38, 4 }
 0x101   : > { %805 = vst [vmem:[#allocation1 + $0x11] ss:$2 sm:$0xff] %v799_v14 }
 0x102   : > { %v684_v5 = vsel %vm234_vm1, %v681_v0, %v8016_v58 }
 0x103   : > { %v685_v8 = vsel %vm374_vm5, %v676_v38, %v684_v5  ;;  %v903_v5 = vld [vmem:[%s5517_s7 + $0xa] sm:$0xf] }
 0x104   : > { %v1184_v27 = vld.sshfl [vmem:[#allocation1 + $0x8] sm:$0xff pattern:$0x75643120]  ;;  %v1182_v29 = vld.sshfl [vmem:[#allocation1] sm:$0xff pattern:$0x75643120] }
 0x105   : > { %1190 = vrot.lane.b32.xlu1 %v1184_v27, %s8143_s22  ;;  %1188 = vrot.lane.b32.xlu0 %v1182_v29, %s8143_s22  ;;  %1213 = vst [vmem:[#allocation1 + $0x1] ss:$2 sm:$0xff] %v5521_v1  ;;  %v834_v27 = vld [vmem:[%s5517_s7 + $0xa] sm:$0xf] }
 0x106   : > { %692 = vst [vmem:[#allocation2 + $0x78] sm:$0xcc] %v685_v8 }
 0x107   : > { %v5702_v59 = vpop.permute.xlu0 %710  ;;  %v813_v29 = vpop.permute.xlu2 %812 }
 0x108   : > { %8264 = vst [vmem:[#allocation10_spill] sm:$0xff] %v5702_v59  ;;  %v8010_v2 = vrot.slane %v5702_v59, 4 }
 0x10a   : > { %v717_v10 = vsel %vm234_vm1, %v714_v3, %v8010_v2 }
 0x10b   : > { %v719_v12 = vsel %vm718_vm14, %v709_v51, %v717_v10 }
 0x10c   : > { %v1219_v34 = vld.sshfl [vmem:[#allocation1 + $0x8] sm:$0xff pattern:$0x75643120]  ;;  %v1217_v35 = vld.sshfl [vmem:[#allocation1] sm:$0xff pattern:$0x75643120] }
 0x10d   : > { %1225 = vrot.lane.b32.xlu0 %v1219_v34, %s5394_s30  ;;  %1246 = vst [vmem:[#allocation1] ss:$2 sm:$0xff] %v5521_v1  ;;  %1223 = vrot.lane.b32.xlu2 %v1217_v35, %s5394_s30  ;;  %v818_v34 = vrot.slane %v813_v29, 4  ;;  %v5747_v35 = vld.sshfl [vmem:[#allocation1 + $0x10] sm:$0xff pattern:$0x75643120] }
 0x10e   : > { %726 = vst [vmem:[#allocation2 + $0x8c] sm:$0x33] %v719_v12 }
 0x10f   : > { %v744_v52 = vpop.permute.xlu1 %743  ;;  %839 = vst [vmem:[#allocation1 + $0x10] ss:$2 sm:$0xff] %v834_v27  ;;  %v5760_v47 = vpop.permute.xlu2 %848 }
 0x110   : > { %v749_v13 = vrot.slane %v744_v52, 4  ;;  %8268 = vst [vmem:[#allocation14_spill] sm:$0xff] %v5760_v47  ;;  %v8020_v51 = vrot.slane %v5760_v47, 4 }
 0x112   : > { %v752_v33 = vsel %vm234_vm1, %v749_v13, %v8007_v17 }
 0x113   : > { %v754_v20 = vsel %vm753_vm15, %v744_v52, %v752_v33 }
 0x114   : > { %v1250_v39 = vld.sshfl [vmem:[#allocation1] sm:$0xff pattern:$0x75643120]  ;;  %v1252_v40 = vld.sshfl [vmem:[#allocation1 + $0x8] sm:$0xff pattern:$0x75643120] }
 0x115   : > { %1256 = vrot.lane.b32.xlu1 %v1250_v39, %s5386_s12  ;;  %1280 = vst [vmem:[#allocation1 + $0x1] ss:$2 sm:$0xff] %v5521_v1  ;;  %1258 = vrot.lane.b32.xlu2 %v1252_v40, %s5386_s12 }
 0x116   : > { %761 = vst [vmem:[#allocation2 + $0x8c] sm:$0xcc] %v754_v20  ;;  %v5766_v55 = vld.sshfl [vmem:[#allocation1 + $0x10] sm:$0xff pattern:$0x75643120] }
 0x117   : > { %v5727_v16 = vpop.permute.xlu1 %779  ;;  %v778_v18 = vpop.permute.xlu0 %777  ;;  %874 = vst [vmem:[#allocation1 + $0x11] ss:$2 sm:$0xff] %v868_v46 }
 0x118   : > { %8266 = vst [vmem:[#allocation12_spill] sm:$0xff] %v5727_v16  ;;  %v783_v19 = vrot.slane %v778_v18, 4 }
 0x11c   : > { %v1284_v6 = vld.sshfl [vmem:[#allocation1] sm:$0xff pattern:$0x75643120]  ;;  %v1286_v7 = vld.sshfl [vmem:[#allocation1 + $0x8] sm:$0xff pattern:$0x75643120] }
 0x11d   : > { %1313 = vst [vmem:[#allocation1] ss:$2 sm:$0xff] %v5521_v1  ;;  %1292 = vrot.lane.b32.xlu1 %v1286_v7, %s5395_s5  ;;  %1290 = vrot.lane.b32.xlu0 %v1284_v6, %s5395_s5  ;;  %v8015_v1 = vrot.slane %v5727_v16, 4 }
 0x11e   : > { %v5784_v10 = vld.sshfl [vmem:[#allocation1 + $0x10] sm:$0xff pattern:$0x75643120] }
 0x11f   : > { %v786_v21 = vsel %vm234_vm1, %v783_v19, %v8015_v1  ;;  %v5745_v32 = vpop.permute.xlu0 %814  ;;  %v916_v6 = vpop.permute.xlu2 %915  ;;  %908 = vst [vmem:[#allocation1 + $0x10] ss:$2 sm:$0xff] %v903_v5 }
 0x120   : > { %v788_v26 = vsel %vm787_vm0, %v778_v18, %v786_v21  ;;  %8267 = vst [vmem:[#allocation13_spill] sm:$0xff] %v5745_v32  ;;  %v8011_v38 = vrot.slane %v5745_v32, 4  ;;  %v921_v8 = vrot.slane %v916_v6, 4  ;;  %v937_v18 = vld [vmem:[%s5517_s7 + $0xa] sm:$0xf] }
 0x121   : > { %795 = vst [vmem:[#allocation2 + $0xa0] sm:$0x33] %v788_v26 }
 0x122   : > { %v821_v39 = vsel %vm234_vm1, %v818_v34, %v8011_v38 }
 0x123   : > { %v823_v42 = vsel %vm822_vm2, %v813_v29, %v821_v39  ;;  %v972_v39 = vld [vmem:[%s5517_s7 + $0xc] sm:$0xf] }
 0x124   : > { %v5738_v24 = vld.sshfl [vmem:[#allocation1] sm:$0xff pattern:$0x75643120]  ;;  %v5740_v25 = vld.sshfl [vmem:[#allocation1 + $0x8] sm:$0xff pattern:$0x75643120] }
 0x125   : > { %1348 = vst [vmem:[#allocation1 + $0x1] ss:$2 sm:$0xff] %v5537_v22 }
 0x126   : > { %830 = vst [vmem:[#allocation2 + $0xa0] sm:$0xcc] %v823_v42  ;;  %v5799_v29 = vld.sshfl [vmem:[#allocation1 + $0x10] sm:$0xff pattern:$0x75643120] }
 0x127   : > { %v847_v31 = vpop.permute.xlu1 %846  ;;  %v5796_v21 = vpop.permute.xlu2 %952  ;;  %943 = vst [vmem:[#allocation1 + $0x11] ss:$2 sm:$0xff] %v937_v18 }
 0x128   : > { %v852_v45 = vrot.slane %v847_v31, 4  ;;  %8270 = vst [vmem:[#allocation16_spill] sm:$0xff] %v5796_v21  ;;  %v8018_v27 = vrot.slane %v5796_v21, 4 }
 0x12c   : > { %v5753_v40 = vld.sshfl [vmem:[#allocation1] sm:$0xff pattern:$0x75643120]  ;;  %v5755_v41 = vld.sshfl [vmem:[#allocation1 + $0x8] sm:$0xff pattern:$0x75643120] }
 0x12d   : > { %1382 = vst [vmem:[#allocation1] ss:$2 sm:$0xff] %v5537_v22  ;;  %v855_v22 = vsel %vm234_vm1, %v852_v45, %v8020_v51 }
 0x12e   : > { %v857_v60 = vsel %vm856_vm3, %v847_v31, %v855_v22 }
 0x12f   : > { %v5762_v48 = vpop.permute.xlu1 %883  ;;  %v882_v54 = vpop.permute.xlu0 %881  ;;  %864 = vst [vmem:[#allocation2 + $0xb4] sm:$0x33] %v857_v60  ;;  %v5812_v60 = vld.sshfl [vmem:[#allocation1 + $0x10] sm:$0xff pattern:$0x75643120] }
 0x130   : > { %8269 = vst [vmem:[#allocation15_spill] sm:$0xff] %v5762_v48  ;;  %v8012_v52 = vrot.slane %v5762_v48, 4  ;;  %v887_v56 = vrot.slane %v882_v54, 4 }
 0x131   : > { %977 = vst [vmem:[#allocation1 + $0x10] ss:$2 sm:$0xff] %v972_v39 }
 0x132   : > { %v890_v61 = vsel %vm234_vm1, %v887_v56, %v8012_v52 }
 0x133   : > { %v892_v4 = vsel %vm8022_vm4, %v882_v54, %v890_v61  ;;  %vm8027_vm4 = vcmask 48128  }
 0x134   : > { %v5776_v0 = vld.sshfl [vmem:[#allocation1] sm:$0xff pattern:$0x75643120]  ;;  %v5778_v3 = vld.sshfl [vmem:[#allocation1 + $0x8] sm:$0xff pattern:$0x75643120] }
 0x135   : > { %899 = vst [vmem:[#allocation2 + $0xb4] sm:$0xcc] %v892_v4 }
 0x136   : > { %1416 = vst [vmem:[#allocation1 + $0x1] ss:$2 sm:$0xff] %v1412_v63 }
 0x137   : > { %v5782_v7 = vpop.permute.xlu0 %917  ;;  %v1020_v4 = vpop.permute.xlu2 %1019 }
 0x138   : > { %v8025_v12 = vrot.slane %v5782_v7, 4 }
 0x13a   : > { %v924_v13 = vsel %vm234_vm1, %v921_v8, %v8025_v12  ;;  %v1006_v8 = vld [vmem:[%s5517_s7 + $0xc] sm:$0xf] }
 0x13b   : > { %v926_v14 = vsel %vm925_vm6, %v916_v6, %v924_v13  ;;  %v5819_v6 = vld [vmem:[%s5517_s7 + $0xa] sm:$0xff] }
 0x13c   : > { %933 = vst [vmem:[#allocation2 + $0xc8] sm:$0x33] %v926_v14 }
 0x13d   : > { %v5792_v19 = vld.sshfl [vmem:[#allocation1] sm:$0xff pattern:$0x75643120]  ;;  %v5794_v33 = vld.sshfl [vmem:[#allocation1 + $0x8] sm:$0xff pattern:$0x75643120] }
 0x13e   : > { %1449 = vst [vmem:[#allocation1] ss:$2 sm:$0xff] %v1412_v63 }
 0x13f   : > { %v951_v20 = vpop.permute.xlu1 %950  ;;  %v5836_v39 = vpop.permute.xlu2 %1055 }
 0x140   : > { %v956_v26 = vrot.slane %v951_v20, 4  ;;  %8273 = vst [vmem:[#allocation19_spill] sm:$0xff] %v5836_v39 }
 0x142   : > { %v959_v31 = vsel %vm234_vm1, %v956_v26, %v8018_v27  ;;  %v5830_v26 = vld.sshfl [vmem:[#allocation1 + $0x10] sm:$0xff pattern:$0x75643120]  ;;  %v1141_v27 = vld [vmem:[%s5517_s7 + $0xc] sm:$0xf] }
 0x143   : > { %v961_v34 = vsel %vm8065_vm7, %v951_v20, %v959_v31  ;;  %1012 = vst [vmem:[#allocation1 + $0x11] ss:$2 sm:$0xff] %v1006_v8  ;;  %vm8147_vm7 = vcmask 293888  }
 0x144   : > { %968 = vst [vmem:[#allocation2 + $0xc8] sm:$0xcc] %v961_v34 }
 0x145   : > { %v1453_v42 = vld.sshfl [vmem:[#allocation1] sm:$0xff pattern:$0x75643120]  ;;  %v5806_v45 = vld.sshfl [vmem:[#allocation1 + $0x8] sm:$0xff pattern:$0x75643120] }
 0x146   : > { %1483 = vst [vmem:[#allocation1 + $0x1] ss:$2 sm:$0xff] %v1412_v63  ;;  %1459 = vrot.lane.b32.xlu2 %v1453_v42, %s5398_s9  ;;  %v1025_v63 = vrot.slane %v1020_v4, 4  ;;  %v8019_v42 = vrot.slane %v5836_v39, 4 }
 0x147   : > { %v5808_v46 = vpop.permute.xlu1 %986  ;;  %v985_v54 = vpop.permute.xlu0 %984 }
 0x148   : > { %8271 = vst [vmem:[#allocation17_spill] sm:$0xff] %v5808_v46  ;;  %v8013_v56 = vrot.slane %v5808_v46, 4  ;;  %v990_v22 = vrot.slane %v985_v54, 4 }
 0x14a   : > { %v993_v61 = vsel %vm234_vm1, %v990_v22, %v8013_v56  ;;  %v5845_v17 = vld.sshfl [vmem:[#allocation1 + $0x10] sm:$0xff pattern:$0x75643120]  ;;  %v1108_v56 = vld [vmem:[%s5517_s7 + $0xc] sm:$0xf] }
 0x14b   : > { %v995_v5 = vsel %vm8139_vm8, %v985_v54, %v993_v61  ;;  %v1041_v54 = vld [vmem:[%s5517_s7 + $0xc] sm:$0xf]  ;;  %v4785_v30 = vld [vmem:[#allocation2 + $0xc8] sm:$0xf] }
 0x14c   : > { %1002 = vst [vmem:[#allocation2 + $0xdc] sm:$0x33] %v995_v5 }
 0x14d   : > { %v5822_v13 = vld.sshfl [vmem:[#allocation1] sm:$0xff pattern:$0x75643120]  ;;  %v5824_v14 = vld.sshfl [vmem:[#allocation1 + $0x8] sm:$0xff pattern:$0x75643120] }
 0x14e   : > { %1517 = vst [vmem:[#allocation1] ss:$2 sm:$0xff] %v5819_v6 }
 0x14f   : > { %v5826_v18 = vpop.permute.xlu0 %1021  ;;  %1046 = vst [vmem:[#allocation1 + $0x10] ss:$2 sm:$0xff] %v1041_v54 }
 0x150   : > { %8272 = vst [vmem:[#allocation18_spill] sm:$0xff] %v5826_v18  ;;  %v8024_v20 = vrot.slane %v5826_v18, 4 }
 0x152   : > { %v1028_v31 = vsel %vm234_vm1, %v1025_v63, %v8024_v20 }
 0x153   : > { %v1030_v34 = vsel %vm1029_vm9, %v1020_v4, %v1028_v31  ;;  %v1074_v31 = vld [vmem:[%s5517_s7 + $0xc] sm:$0xf] }
 0x154   : > { %1037 = vst [vmem:[#allocation2 + $0xdc] sm:$0xcc] %v1030_v34 }
 0x155   : > { %v5840_v22 = vld.sshfl [vmem:[#allocation1] sm:$0xff pattern:$0x75643120]  ;;  %v5842_v61 = vld.sshfl [vmem:[#allocation1 + $0x8] sm:$0xff pattern:$0x75643120] }
 0x156   : > { %1552 = vst [vmem:[#allocation1 + $0x1] ss:$2 sm:$0xff] %v5819_v6  ;;  %v5860_v52 = vld.sshfl [vmem:[#allocation1 + $0x10] sm:$0xff pattern:$0x75643120] }
 0x157   : > { %v1054_v5 = vpop.permute.xlu1 %1053  ;;  %1080 = vst [vmem:[#allocation1 + $0x11] ss:$2 sm:$0xff] %v1074_v31 }
 0x158   : > { %v1059_v8 = vrot.slane %v1054_v5, 4 }
 0x15a   : > { %v1062_v4 = vsel %vm234_vm1, %v1059_v8, %v8019_v42  ;;  %v1121_v8 = vpop.permute.xlu2 %1120 }
 0x15b   : > { %v1063_v63 = vsel %vm8078_vm10, %v1054_v5, %v1062_v4  ;;  %vm8089_vm10 = vcmask 269312  }
 0x15c   : > { %1070 = vst [vmem:[#allocation2 + $0xf0] sm:$0x33] %v1063_v63  ;;  %v1126_v63 = vrot.slane %v1121_v8, 4 }
 0x15d   : > { %v5852_v34 = vld.sshfl [vmem:[#allocation1] sm:$0xff pattern:$0x75643120]  ;;  %v5854_v43 = vld.sshfl [vmem:[#allocation1 + $0x8] sm:$0xff pattern:$0x75643120] }
 0x15e   : > { %1586 = vst [vmem:[#allocation1] ss:$2 sm:$0xff] %v5819_v6  ;;  %v5873_v31 = vld.sshfl [vmem:[#allocation1 + $0x10] sm:$0xff pattern:$0x75643120] }
 0x15f   : > { %v5856_v50 = vpop.permute.xlu1 %1089  ;;  %v1088_v2 = vpop.permute.xlu0 %1087  ;;  %1113 = vst [vmem:[#allocation1 + $0x10] ss:$2 sm:$0xff] %v1108_v56 }
 0x160   : > { %v8029_v54 = vrot.slane %v5856_v50, 4  ;;  %v1093_v38 = vrot.slane %v1088_v2, 4 }
 0x162   : > { %v1096_v5 = vsel %vm234_vm1, %v1093_v38, %v8029_v54 }
 0x163   : > { %v1097_v4 = vsel %vm581_vm11, %v1088_v2, %v1096_v5 }
 0x164   : > { %1104 = vst [vmem:[#allocation2 + $0xf0] sm:$0xcc] %v1097_v4  ;;  %v5879_v4 = vpop.permute.xlu2 %1156 }
 0x165   : > { %v1592_v44 = vld.sshfl [vmem:[#allocation1 + $0x8] sm:$0xff pattern:$0x75643120]  ;;  %v1590_v1 = vld.sshfl [vmem:[#allocation1] sm:$0xff pattern:$0x75643120] }
 0x166   : > { %1598 = vrot.lane.b32.xlu0 %v1592_v44, %s8107_s11  ;;  %1621 = vst [vmem:[#allocation1 + $0x1] ss:$2 sm:$0xff] %v5819_v6  ;;  %1596 = vrot.lane.b32.xlu2 %v1590_v1, %s8107_s11  ;;  %v8028_v44 = vrot.slane %v5879_v4, 4 }
 0x167   : > { %v5867_v58 = vpop.permute.xlu0 %1122  ;;  %8275 = vst [vmem:[#allocation21_spill] sm:$0xff] %v5879_v4  ;;  %v5112_v4 = vld [vmem:[#allocation2 + $0xb0] sm:$0xf0] }
 0x168   : > { %8274 = vst [vmem:[#allocation20_spill] sm:$0xff] %v5867_v58  ;;  %v8023_v38 = vrot.slane %v5867_v58, 4 }
 0x16a   : > { %v1129_v2 = vsel %vm234_vm1, %v1126_v63, %v8023_v38  ;;  %v1176_v38 = vld [vmem:[%s5517_s7 + $0xe] sm:$0xf] }
 0x16b   : > { %v1130_v5 = vsel %vm8079_vm12, %v1121_v8, %v1129_v2  ;;  %v5886_v8 = vld.sshfl [vmem:[#allocation1 + $0x10] sm:$0xff pattern:$0x75643120]  ;;  %vm8156_vm12 = vcmask 244736  }
 0x16c   : > { %1137 = vst [vmem:[#allocation2 + $0x104] sm:$0x33] %v1130_v5  ;;  %v5893_v5 = vld [vmem:[%s5517_s7] sm:$0xff] }
 0x16d   : > { %v1625_v1 = vld.sshfl [vmem:[#allocation1] sm:$0xff pattern:$0x75643120]  ;;  %v1627_v42 = vld.sshfl [vmem:[#allocation1 + $0x8] sm:$0xff pattern:$0x75643120] }
 0x16e   : > { %1631 = vrot.lane.b32.xlu1 %v1625_v1, %s8026_s14  ;;  %1655 = vst [vmem:[#allocation1] ss:$2 sm:$0xff] %v5819_v6  ;;  %1633 = vrot.lane.b32.xlu2 %v1627_v42, %s8026_s14  ;;  %s8162_s14 = smov 30  }
 0x16f   : > { %v1155_v51 = vpop.permute.xlu1 %1154  ;;  %1147 = vst [vmem:[#allocation1 + $0x11] ss:$2 sm:$0xff] %v1141_v27 }
 0x170   : > { %v1160_v56 = vrot.slane %v1155_v51, 4 }
 0x172   : > { %v1163_v63 = vsel %vm234_vm1, %v1160_v56, %v8028_v44 }
 0x173   : > { %v1165_v2 = vsel %vm8027_vm4, %v1155_v51, %v1163_v63  ;;  %vm1198_vm4 = vcmask 211968   ;;  %v1224_v63 = vpop.permute.xlu2 %1223 }
 0x174   : > { %1172 = vst [vmem:[#allocation2 + $0x104] sm:$0xcc] %v1165_v2 }
 0x175   : > { %v1661_v1 = vld.sshfl [vmem:[#allocation1 + $0x8] sm:$0xff pattern:$0x75643120]  ;;  %v1659_v20 = vld.sshfl [vmem:[#allocation1] sm:$0xff pattern:$0x75643120] }
 0x176   : > { %1667 = vrot.lane.b32.xlu1 %v1661_v1, %s8162_s14  ;;  %1665 = vrot.lane.b32.xlu0 %v1659_v20, %s8162_s14  ;;  %1690 = vst [vmem:[#allocation1 + $0x1] ss:$2 sm:$0xff] %v5893_v5  ;;  %v5902_v56 = vld.sshfl [vmem:[#allocation1 + $0x10] sm:$0xff pattern:$0x75643120]  ;;  %v1229_v1 = vrot.slane %v1224_v63, 4 }
 0x177   : > { %v5896_v12 = vpop.permute.xlu1 %1190  ;;  %v1189_v42 = vpop.permute.xlu0 %1188  ;;  %1181 = vst [vmem:[#allocation1 + $0x10] ss:$2 sm:$0xff] %v1176_v38 }
 0x178   : > { %v8038_v27 = vrot.slane %v5896_v12, 4  ;;  %v1194_v51 = vrot.slane %v1189_v42, 4 }
 0x17a   : > { %v1197_v2 = vsel %vm234_vm1, %v1194_v51, %v8038_v27 }
 0x17b   : > { %v1199_v44 = vsel %vm1198_vm4, %v1189_v42, %v1197_v2  ;;  %v5919_v42 = vpop.permute.xlu2 %1258  ;;  %v5122_v46 = vld [vmem:[#allocation2 + $0x100] sm:$0xf0] }
 0x17c   : > { %1206 = vst [vmem:[#allocation2 + $0x118] sm:$0x33] %v1199_v44  ;;  %v8046_v51 = vrot.slane %v5919_v42, 4 }
 0x17d   : > { %v1694_v54 = vld.sshfl [vmem:[#allocation1] sm:$0xff pattern:$0x75643120]  ;;  %v1695_v15 = vld.sshfl [vmem:[#allocation1 + $0x8] sm:$0xff pattern:$0x75643120] }
 0x17e   : > { %1706 = vst [vmem:[#allocation1] ss:$2 sm:$0xff] %v5893_v5  ;;  %v5913_v59 = vld.sshfl [vmem:[#allocation1 + $0x10] sm:$0xff pattern:$0x75643120] }
 0x17f   : > { %v5908_v20 = vpop.permute.xlu0 %1225  ;;  %1700 = vst [vmem:[#allocation2 + $0x1a4] sm:$0xcc] %v1694_v54 }
 0x180   : > { %8276 = vst [vmem:[#allocation22_spill] sm:$0xff] %v5908_v20  ;;  %v8042_v23 = vrot.slane %v5908_v20, 4 }
 0x181   : > { %1701 = vst [vmem:[#allocation2 + $0x1ac] sm:$0xcc] %v1695_v15 }
 0x182   : > { %v1232_v38 = vsel %vm234_vm1, %v1229_v1, %v8042_v23  ;;  %1216 = vst [vmem:[#allocation1 + $0x11] ss:$2 sm:$0xff] %v1210_v36 }
 0x183   : > { %v1233_v44 = vsel %vm8091_vm13, %v1224_v63, %v1232_v38  ;;  %v1244_v63 = vld [vmem:[%s5517_s7 + $0xe] sm:$0xf]  ;;  %vm8105_vm13 = vcmask 949248  }
 0x184   : > { %1240 = vst [vmem:[#allocation2 + $0x118] sm:$0xcc] %v1233_v44 }
 0x185   : > { %v1712_v27 = vld.sshfl [vmem:[#allocation1 + $0x8] sm:$0xff pattern:$0x75643120]  ;;  %v1710_v32 = vld.sshfl [vmem:[#allocation1] sm:$0xff pattern:$0x75643120] }
 0x186   : > { %1718 = vrot.lane.b32.xlu1 %v1712_v27, %s8045_s24  ;;  %1716 = vrot.lane.b32.xlu0 %v1710_v32, %s8045_s24  ;;  %1741 = vst [vmem:[#allocation1 + $0x1] ss:$2 sm:$0xff] %v5893_v5  ;;  %s8056_s24 = smov 116  }
 0x187   : > { %v1257_v2 = vpop.permute.xlu1 %1256 }
 0x188   : > { %v1262_v54 = vrot.slane %v1257_v2, 4 }
 0x189   : > { %v5930_v1 = vld.sshfl [vmem:[#allocation1 + $0x10] sm:$0xff pattern:$0x75643120] }
 0x18a   : > { %v1265_v15 = vsel %vm234_vm1, %v1262_v54, %v8046_v51  ;;  %1249 = vst [vmem:[#allocation1 + $0x10] ss:$2 sm:$0xff] %v1244_v63  ;;  %v1277_v54 = vld [vmem:[%s5517_s7 + $0xe] sm:$0xf] }
 0x18b   : > { %v1266_v36 = vsel %vm374_vm5, %v1257_v2, %v1265_v15 }
 0x18c   : > { %1273 = vst [vmem:[#allocation2 + $0x12c] sm:$0x33] %v1266_v36 }
 0x18d   : > { %v1747_v27 = vld.sshfl [vmem:[#allocation1 + $0x8] sm:$0xff pattern:$0x75643120]  ;;  %v1745_v23 = vld.sshfl [vmem:[#allocation1] sm:$0xff pattern:$0x75643120] }
 0x18e   : > { %1753 = vrot.lane.b32.xlu0 %v1747_v27, %s8056_s24  ;;  %1775 = vst [vmem:[#allocation1] ss:$2 sm:$0xff] %v5893_v5  ;;  %1751 = vrot.lane.b32.xlu2 %v1745_v23, %s8056_s24  ;;  %v4825_v23 = vld [vmem:[#allocation2 + $0x118] sm:$0xf]  ;;  %v1311_v27 = vld [vmem:[%s5517_s7 + $0xe] sm:$0xf] }
 0x18f   : > { %v5932_v38 = vpop.permute.xlu1 %1292  ;;  %v1291_v44 = vpop.permute.xlu0 %1290  ;;  %s8062_s24 = smov 104  }
 0x190   : > { %8277 = vst [vmem:[#allocation23_spill] sm:$0xff] %v5932_v38  ;;  %v8049_v32 = vrot.slane %v5932_v38, 4  ;;  %v1296_v48 = vrot.slane %v1291_v44, 4 }
 0x191   : > { %v5943_v63 = vld.sshfl [vmem:[#allocation1 + $0x10] sm:$0xff pattern:$0x75643120] }
 0x192   : > { %v1299_v2 = vsel %vm234_vm1, %v1296_v48, %v8049_v32  ;;  %1283 = vst [vmem:[#allocation1 + $0x11] ss:$2 sm:$0xff] %v1277_v54  ;;  %v4805_v32 = vld [vmem:[#allocation2 + $0xf0] sm:$0xf] }
 0x193   : > { %v1300_v15 = vsel %vm718_vm14, %v1291_v44, %v1299_v2  ;;  %v4806_v54 = vor.u32 %v5122_v46, %v4805_v32  ;;  %v4745_v32 = vld [vmem:[#allocation2 + $0x78] sm:$0xf] }
 0x194   : > { %1307 = vst [vmem:[#allocation2 + $0x12c] sm:$0xcc] %v1300_v15  ;;  %v1841_v15 = vld [vmem:[%s5517_s7 + $0x2] sm:$0xff] }
 0x195   : > { %v1779_v36 = vld.sshfl [vmem:[#allocation1] sm:$0xff pattern:$0x75643120]  ;;  %v1781_v51 = vld.sshfl [vmem:[#allocation1 + $0x8] sm:$0xff pattern:$0x75643120] }
 0x196   : > { %1785 = vrot.lane.b32.xlu1 %v1779_v36, %s8061_s26  ;;  %1810 = vst [vmem:[#allocation1 + $0x1] ss:$2 sm:$0xff] %v5893_v5  ;;  %1787 = vrot.lane.b32.xlu2 %v1781_v51, %s8061_s26  ;;  %v5117_v36 = vld [vmem:[#allocation2 + $0xd8] sm:$0xf0]  ;;  %s8063_s26 = smov 16  }
 0x197   : > { %v4786_v51 = vor.u32 %v5117_v36, %v4785_v30 }
 0x199   : > { %v5949_v2 = vld.sshfl [vmem:[#allocation1 + $0x10] sm:$0xff pattern:$0x75643120] }
 0x19a   : > { %1316 = vst [vmem:[#allocation1 + $0x10] ss:$2 sm:$0xff] %v1311_v27 }
 0x19b   : > { %v5127_v48 = vld [vmem:[#allocation2 + $0x128] sm:$0xf0] }
 0x19c   : > { %v4826_v44 = vor.u32 %v5127_v48, %v4825_v23  ;;  %v1345_v23 = vld [vmem:[%s5517_s7 + $0x10] sm:$0xf]  ;;  %v4765_v48 = vld [vmem:[#allocation2 + $0xa0] sm:$0xf] }
 0x19d   : > { %v1816_v16 = vld.sshfl [vmem:[#allocation1 + $0x8] sm:$0xff pattern:$0x75643120]  ;;  %v1814_v5 = vld.sshfl [vmem:[#allocation1] sm:$0xff pattern:$0x75643120]  ;;  %v4766_v46 = vor.u32 %v5112_v4, %v4765_v48 }
 0x19e   : > { %3243 = vmatpush.bf16.msra.mxu0 %v4826_v44  ;;  %5175 = vmatpush.bf16.msra.mxu3 %v4826_v44  ;;  %1844 = vst [vmem:[#allocation1] ss:$2 sm:$0xff] %v1841_v15  ;;  %v5107_v44 = vld [vmem:[#allocation2 + $0x88] sm:$0xf0] }
 0x19f   : > { %1822 = vrot.lane.b32.xlu1 %v1816_v16, %s8062_s24  ;;  %1820 = vrot.lane.b32.xlu0 %v1814_v5, %s8062_s24  ;;  %v4746_v30 = vor.u32 %v5107_v44, %v4745_v32  ;;  %v4725_v5 = vld [vmem:[#allocation2 + $0x50] sm:$0xf]  ;;  %v1413_v32 = vld [vmem:[%s5517_s7 + $0x10] sm:$0xf]  ;;  %s8070_s24 = smov 120  }
 0x1a1   : > { %v5955_v27 = vld.sshfl [vmem:[#allocation1 + $0x10] sm:$0xff pattern:$0x75643120] }
 0x1a2   : > { %3244 = vmatpush.bf16.msra.mxu0 %v4806_v54  ;;  %5176 = vmatpush.bf16.msra.mxu3 %v4806_v54  ;;  %8278 = vst [vmem:[#allocation24_spill] sm:$0xff] %v5955_v27  ;;  %v1380_v54 = vld [vmem:[%s5517_s7 + $0x10] sm:$0xf]  ;;  %v1942_v27 = vld [vmem:[%s5517_s7 + $0x4] sm:$0xff] }
 0x1a3   : > { %1351 = vst [vmem:[#allocation1 + $0x11] ss:$2 sm:$0xff] %v1345_v23 }
 0x1a5   : > { %v1850_v37 = vld.sshfl [vmem:[#allocation1 + $0x8] sm:$0xff pattern:$0x75643120]  ;;  %v1848_v16 = vld.sshfl [vmem:[#allocation1] sm:$0xff pattern:$0x75643120] }
 0x1a6   : > { %3245 = vmatpush.bf16.msra.mxu0 %v4786_v51  ;;  %5177 = vmatpush.bf16.msra.mxu3 %v4786_v51  ;;  %1879 = vst [vmem:[#allocation1 + $0x1] ss:$2 sm:$0xff] %v1841_v15  ;;  %v5102_v51 = vld [vmem:[#allocation2 + $0x60] sm:$0xf0] }
 0x1a7   : > { %1856 = vrot.lane.b32.xlu0 %v1850_v37, %s8063_s26  ;;  %1854 = vrot.lane.b32.xlu2 %v1848_v16, %s8063_s26  ;;  %v4726_v48 = vor.u32 %v5102_v51, %v4725_v5  ;;  %v4705_v37 = vld [vmem:[#allocation2 + $0x28] sm:$0xf]  ;;  %v4685_v16 = vld [vmem:[#allocation2] sm:$0xf]  ;;  %s8064_s26 = smov 32  }
 0x1aa   : > { %3246 = vmatpush.bf16.msra.mxu0 %v4766_v46  ;;  %5178 = vmatpush.bf16.msra.mxu3 %v4766_v46  ;;  %v5960_v36 = vld.sshfl [vmem:[#allocation1 + $0x10] sm:$0xff pattern:$0x75643120]  ;;  %v5097_v46 = vld [vmem:[#allocation2 + $0x38] sm:$0xf0] }
 0x1ab   : > { %8279 = vst [vmem:[#allocation25_spill] sm:$0xff] %v5960_v36  ;;  %v4706_v44 = vor.u32 %v5097_v46, %v4705_v37  ;;  %v1480_v46 = vld [vmem:[%s5517_s7 + $0x10] sm:$0xf] }
 0x1ac   : > { %1385 = vst [vmem:[#allocation1 + $0x10] ss:$2 sm:$0xff] %v1380_v54  ;;  %v1653_v36 = vld [vmem:[%s5517_s7 + $0x12] sm:$0xf] }
 0x1ad   : > { %v1883_v4 = vld.sshfl [vmem:[#allocation1] sm:$0xff pattern:$0x75643120]  ;;  %v1885_v23 = vld.sshfl [vmem:[#allocation1 + $0x8] sm:$0xff pattern:$0x75643120] }
 0x1ae   : > { %3247 = vmatpush.bf16.msra.mxu0 %v4746_v30  ;;  %5179 = vmatpush.bf16.msra.mxu3 %v4746_v30  ;;  %1912 = vst [vmem:[#allocation1] ss:$2 sm:$0xff] %v1841_v15  ;;  %v5092_v30 = vld [vmem:[#allocation2 + $0x10] sm:$0xf0] }
 0x1af   : > { %1889 = vrot.lane.b32.xlu1 %v1883_v4, %s8076_s10  ;;  %1891 = vrot.lane.b32.xlu2 %v1885_v23, %s8076_s10  ;;  %v4686_v51 = vor.u32 %v5092_v30, %v4685_v16  ;;  %v1447_v4 = vld [vmem:[%s5517_s7 + $0x10] sm:$0xf]  ;;  %s8088_s10 = smov 48  }
 0x1b2   : > { %3248 = vmatpush.bf16.msra.mxu0 %v4726_v48  ;;  %5180 = vmatpush.bf16.msra.mxu3 %v4726_v48 }
 0x1b3   : > { %v5965_v54 = vld.sshfl [vmem:[#allocation1 + $0x10] sm:$0xff pattern:$0x75643120] }
 0x1b4   : > { %8280 = vst [vmem:[#allocation26_spill] sm:$0xff] %v5965_v54 }
 0x1b5   : > { %1419 = vst [vmem:[#allocation1 + $0x11] ss:$2 sm:$0xff] %v1413_v32  ;;  %v1918_v5 = vld.sshfl [vmem:[#allocation1 + $0x8] sm:$0xff pattern:$0x75643120] }
 0x1b6   : > { %3249 = vmatpush.bf16.msra.mxu0 %v4706_v44  ;;  %5181 = vmatpush.bf16.msra.mxu3 %v4706_v44  ;;  %v1916_v15 = vld.sshfl [vmem:[#allocation1] sm:$0xff pattern:$0x75643120] }
 0x1b7   : > { %1924 = vrot.lane.b32.xlu1 %v1918_v5, %s5401_s13  ;;  %1922 = vrot.lane.b32.xlu0 %v1916_v15, %s5401_s13  ;;  %1946 = vst [vmem:[#allocation1 + $0x1] ss:$2 sm:$0xff] %v1942_v27  ;;  %v2010_v44 = vld [vmem:[%s5517_s7 + $0x6] sm:$0xff]  ;;  %v1515_v5 = vld [vmem:[%s5517_s7 + $0x12] sm:$0xf] }
 0x1ba   : > { %3250 = vmatpush.bf16.msra.mxu0 %v4686_v51  ;;  %5182 = vmatpush.bf16.msra.mxu3 %v4686_v51 }
 0x1bc   : > { %v5971_v23 = vld.sshfl [vmem:[#allocation1 + $0x10] sm:$0xff pattern:$0x75643120] }
 0x1bd   : > { %8281 = vst [vmem:[#allocation27_spill] sm:$0xff] %v5971_v23 }
 0x1be   : > { %1452 = vst [vmem:[#allocation1 + $0x10] ss:$2 sm:$0xff] %v1447_v4  ;;  %v1952_v48 = vld.sshfl [vmem:[#allocation1 + $0x8] sm:$0xff pattern:$0x75643120] }
 0x1bf   : > { %v1950_v37 = vld.sshfl [vmem:[#allocation1] sm:$0xff pattern:$0x75643120]  ;;  %1958 = vrot.lane.b32.xlu0 %v1952_v48, %s5403_s21  ;;  %v1549_v4 = vld [vmem:[%s5517_s7 + $0x12] sm:$0xf] }
 0x1c0   : > { %1979 = vst [vmem:[#allocation1] ss:$2 sm:$0xff] %v1942_v27  ;;  %1956 = vrot.lane.b32.xlu2 %v1950_v37, %s5403_s21 }
 0x1c5   : > { %v5976_v32 = vld.sshfl [vmem:[#allocation1 + $0x10] sm:$0xff pattern:$0x75643120] }
 0x1c6   : > { %1486 = vst [vmem:[#allocation1 + $0x11] ss:$2 sm:$0xff] %v1480_v46 }
 0x1c7   : > { %v1983_v16 = vld.sshfl [vmem:[#allocation1] sm:$0xff pattern:$0x75643120]  ;;  %v1985_v30 = vld.sshfl [vmem:[#allocation1 + $0x8] sm:$0xff pattern:$0x75643120] }
 0x1c8   : > { %1989 = vrot.lane.b32.xlu1 %v1983_v16, %s8070_s24  ;;  %2014 = vst [vmem:[#allocation1 + $0x1] ss:$2 sm:$0xff] %v2010_v44  ;;  %1991 = vrot.lane.b32.xlu2 %v1985_v30, %s8070_s24  ;;  %v1584_v16 = vld [vmem:[%s5517_s7 + $0x12] sm:$0xf]  ;;  %s8102_s24 = smov 8  }
 0x1cd   : > { %v5982_v15 = vld.sshfl [vmem:[#allocation1 + $0x10] sm:$0xff pattern:$0x75643120] }
 0x1ce   : > { %8282 = vst [vmem:[#allocation28_spill] sm:$0xff] %v5982_v15 }
 0x1cf   : > { %1520 = vst [vmem:[#allocation1 + $0x10] ss:$2 sm:$0xff] %v1515_v5  ;;  %v2020_v27 = vld.sshfl [vmem:[#allocation1 + $0x8] sm:$0xff pattern:$0x75643120] }
 0x1d0   : > { %v2018_v51 = vld.sshfl [vmem:[#allocation1] sm:$0xff pattern:$0x75643120]  ;;  %2026 = vrot.lane.b32.xlu1 %v2020_v27, %s8064_s26 }
 0x1d1   : > { %2024 = vrot.lane.b32.xlu0 %v2018_v51, %s8064_s26  ;;  %2048 = vst [vmem:[#allocation1] ss:$2 sm:$0xff] %v2010_v44  ;;  %v5996_v51 = vpop.permute.xlu2 %1459  ;;  %s8161_s26 = smov 14  }
 0x1d6   : > { %v5987_v48 = vld.sshfl [vmem:[#allocation1 + $0x10] sm:$0xff pattern:$0x75643120] }
 0x1d7   : > { %8283 = vst [vmem:[#allocation29_spill] sm:$0xff] %v5987_v48  ;;  %v1704_v48 = vld [vmem:[%s5517_s7 + $0x8] sm:$0xf] }
 0x1d8   : > { %1555 = vst [vmem:[#allocation1 + $0x11] ss:$2 sm:$0xff] %v1549_v4  ;;  %v2054_v37 = vld.sshfl [vmem:[#allocation1 + $0x8] sm:$0xff pattern:$0x75643120] }
 0x1d9   : > { %v2052_v46 = vld.sshfl [vmem:[#allocation1] sm:$0xff pattern:$0x75643120]  ;;  %2060 = vrot.lane.b32.xlu0 %v2054_v37, %s8143_s22  ;;  %v1618_v4 = vld [vmem:[%s5517_s7 + $0x12] sm:$0xf] }
 0x1da   : > { %2082 = vst [vmem:[#allocation1 + $0x1] ss:$2 sm:$0xff] %v2010_v44  ;;  %2058 = vrot.lane.b32.xlu2 %v2052_v46, %s8143_s22 }
 0x1df   : > { %v5992_v30 = vld.sshfl [vmem:[#allocation1 + $0x10] sm:$0xff pattern:$0x75643120] }
 0x1e0   : > { %8284 = vst [vmem:[#allocation30_spill] sm:$0xff] %v5992_v30 }
 0x1e1   : > { %1589 = vst [vmem:[#allocation1 + $0x10] ss:$2 sm:$0xff] %v1584_v16  ;;  %v2086_v5 = vld.sshfl [vmem:[#allocation1] sm:$0xff pattern:$0x75643120]  ;;  %v1597_v16 = vpop.permute.xlu2 %1596 }
 0x1e2   : > { %v2088_v27 = vld.sshfl [vmem:[#allocation1 + $0x8] sm:$0xff pattern:$0x75643120]  ;;  %2092 = vrot.lane.b32.xlu1 %v2086_v5, %s5386_s12  ;;  %v6003_v5 = vpop.permute.xlu0 %1598  ;;  %v1602_v23 = vrot.slane %v1597_v16, 4 }
 0x1e3   : > { %2115 = vst [vmem:[#allocation1] ss:$2 sm:$0xff] %v2010_v44  ;;  %2094 = vrot.lane.b32.xlu2 %v2088_v27, %s5386_s12  ;;  %v8075_v27 = vrot.slane %v6003_v5, 4 }
 0x1e4   : > { %8285 = vst [vmem:[#allocation31_spill] sm:$0xff] %v6003_v5  ;;  %v1687_v5 = vld [vmem:[%s5517_s7 + $0x8] sm:$0x3] }
 0x1e8   : > { %v5999_v54 = vld.sshfl [vmem:[#allocation1 + $0x10] sm:$0xff pattern:$0x75643120] }
 0x1e9   : > { %1624 = vst [vmem:[#allocation1 + $0x11] ss:$2 sm:$0xff] %v1618_v4  ;;  %v1605_v4 = vsel %vm234_vm1, %v1602_v23, %v8075_v27 }
 0x1ea   : > { %v2121_v37 = vld.sshfl [vmem:[#allocation1 + $0x8] sm:$0xff pattern:$0x75643120]  ;;  %v2119_v46 = vld.sshfl [vmem:[#allocation1] sm:$0xff pattern:$0x75643120]  ;;  %v1607_v21 = vsel %vm8147_vm7, %v1597_v16, %v1605_v4  ;;  %v1666_v27 = vpop.permute.xlu0 %1665 }
 0x1eb   : > { %2127 = vrot.lane.b32.xlu1 %v2121_v37, %s8161_s26  ;;  %2125 = vrot.lane.b32.xlu0 %v2119_v46, %s8161_s26  ;;  %2149 = vst [vmem:[#allocation1 + $0x1] ss:$2 sm:$0xff] %v2010_v44  ;;  %v1632_v37 = vpop.permute.xlu1 %1631 }
 0x1ec   : > { %1614 = vst [vmem:[#allocation2 + $0x190] sm:$0x33] %v1607_v21  ;;  %v1637_v23 = vrot.slane %v1632_v37, 4  ;;  %v6022_v21 = vpop.permute.xlu2 %1633 }
 0x1ed   : > { %8287 = vst [vmem:[#allocation33_spill] sm:$0xff] %v6022_v21 }
 0x1f0   : > { %v6011_v39 = vld.sshfl [vmem:[#allocation1 + $0x10] sm:$0xff pattern:$0x75643120] }
 0x1f1   : > { %8286 = vst [vmem:[#allocation32_spill] sm:$0xff] %v6011_v39 }
 0x1f2   : > { %1658 = vst [vmem:[#allocation1 + $0x10] ss:$2 sm:$0xff] %v1653_v36  ;;  %v2155_v44 = vld.sshfl [vmem:[#allocation1 + $0x8] sm:$0xff pattern:$0x75643120] }
 0x1f3   : > { %v2153_v46 = vld.sshfl [vmem:[#allocation1] sm:$0xff pattern:$0x75643120]  ;;  %2161 = vrot.lane.b32.xlu0 %v2155_v44, %s8102_s24  ;;  %v6024_v36 = vpop.permute.xlu1 %1667  ;;  %v1671_v44 = vrot.slane %v1666_v27, 4 }
 0x1f4   : > { %2183 = vst [vmem:[#allocation1] ss:$2 sm:$0xff] %v5819_v6  ;;  %2159 = vrot.lane.b32.xlu2 %v2153_v46, %s8102_s24  ;;  %v8090_v46 = vrot.slane %v6022_v21, 4  ;;  %v1773_v21 = vld [vmem:[%s5517_s7 + $0x8] sm:$0xf]  ;;  %s5421_s24 = smov 24  }
 0x1f5   : > { %8288 = vst [vmem:[#allocation34_spill] sm:$0xff] %v6024_v36 }
 0x1f6   : > { %v1640_v58 = vsel %vm234_vm1, %v1637_v23, %v8090_v46  ;;  %v1752_v23 = vpop.permute.xlu2 %1751 }
 0x1f8   : > { %v1717_v38 = vpop.permute.xlu0 %1716 }
 0x1f9   : > { %v6017_v47 = vld.sshfl [vmem:[#allocation1 + $0x10] sm:$0xff pattern:$0x75643120] }
 0x1fa   : > { %1693 = vst [vmem:[#allocation1 + $0x11] ss:$2 sm:$0xff] %v1687_v5  ;;  %v8093_v5 = vrot.slane %v6024_v36, 4 }
 0x1fb   : > { %v2187_v16 = vld.sshfl [vmem:[#allocation1] sm:$0xff pattern:$0x75643120]  ;;  %v2189_v4 = vld.sshfl [vmem:[#allocation1 + $0x8] sm:$0xff pattern:$0x75643120] }
 0x1fc   : > { %2193 = vrot.lane.b32.xlu1 %v2187_v16, %s8088_s10  ;;  %2218 = vst [vmem:[#allocation1 + $0x1] ss:$2 sm:$0xff] %v5819_v6  ;;  %2195 = vrot.lane.b32.xlu2 %v2189_v4, %s8088_s10  ;;  %v1674_v16 = vsel %vm234_vm1, %v1671_v44, %v8093_v5  ;;  %v1642_v4 = vsel %vm8089_vm10, %v1632_v37, %v1640_v58  ;;  %s8145_s10 = smov 42   ;;  %v6040_v44 = vpop.permute.xlu1 %1718  ;;  %v1722_v58 = vrot.slane %v1717_v38, 4  ;;  %vm8092_vm10 = vcmask 998400  }
 0x1fd   : > { %v1676_v15 = vsel %vm8156_vm12, %v1666_v27, %v1674_v16  ;;  %1649 = vst [vmem:[#allocation2 + $0x190] sm:$0xcc] %v1642_v4  ;;  %v8094_v27 = vrot.slane %v6040_v44, 4 }
 0x1fe   : > { %1683 = vst [vmem:[#allocation2 + $0x1a4] sm:$0x33] %v1676_v15 }
 0x1ff   : > { %8289 = vst [vmem:[#allocation35_spill] sm:$0xff] %v6040_v44  ;;  %v1725_v15 = vsel %vm234_vm1, %v1722_v58, %v8094_v27 }
 0x200   : > { %v1727_v37 = vsel %vm8092_vm10, %v1717_v38, %v1725_v15  ;;  %v6048_v46 = vpop.permute.xlu0 %1753  ;;  %vm8101_vm10 = vcmask 900096  }
 0x201   : > { %v1696_v30 = vld.sshfl [vmem:[#allocation1 + $0x10] sm:$0xff pattern:$0x75643120]  ;;  %1734 = vst [vmem:[#allocation2 + $0x1b8] sm:$0x33] %v1727_v37 }
 0x202   : > { %1709 = vst [vmem:[#allocation1 + $0x10] ss:$2 sm:$0xff] %v1704_v48  ;;  %v6053_v48 = vpop.permute.xlu2 %1787 }
 0x203   : > { %v2224_v20 = vld.sshfl [vmem:[#allocation1 + $0x8] sm:$0xff pattern:$0x75643120]  ;;  %v2222_v18 = vld.sshfl [vmem:[#allocation1] sm:$0xff pattern:$0x75643120] }
 0x204   : > { %2230 = vrot.lane.b32.xlu1 %v2224_v20, %s8145_s10  ;;  %2228 = vrot.lane.b32.xlu0 %v2222_v18, %s8145_s10  ;;  %2251 = vst [vmem:[#allocation1] ss:$2 sm:$0xff] %v5819_v6  ;;  %v1757_v20 = vrot.slane %v1752_v23, 4  ;;  %v1738_v18 = vld [vmem:[%s5517_s7 + $0x8] sm:$0xf]  ;;  %v8103_v38 = vrot.slane %v6053_v48, 4 }
 0x205   : > { %1702 = vst [vmem:[#allocation2 + $0x1b4] sm:$0xc] %v1696_v30  ;;  %v8104_v30 = vrot.slane %v6048_v46, 4 }
 0x206   : > { %8290 = vst [vmem:[#allocation36_spill] sm:$0xff] %v6048_v46 }
 0x207   : > { %8291 = vst [vmem:[#allocation37_spill] sm:$0xff] %v6053_v48  ;;  %v1760_v15 = vsel %vm234_vm1, %v1757_v20, %v8104_v30 }
 0x208   : > { %v1786_v37 = vpop.permute.xlu1 %1785 }
 0x209   : > { %v6057_v58 = vld.sshfl [vmem:[#allocation1 + $0x10] sm:$0xff pattern:$0x75643120] }
 0x20a   : > { %1744 = vst [vmem:[#allocation1 + $0x11] ss:$2 sm:$0xff] %v1738_v18 }
 0x20b   : > { %v2257_v16 = vld.sshfl [vmem:[#allocation1 + $0x8] sm:$0xff pattern:$0x75643120]  ;;  %v2255_v4 = vld.sshfl [vmem:[#allocation1] sm:$0xff pattern:$0x75643120] }
 0x20c   : > { %2263 = vrot.lane.b32.xlu0 %v2257_v16, %s8107_s11  ;;  %2261 = vrot.lane.b32.xlu2 %v2255_v4, %s8107_s11  ;;  %2285 = vst [vmem:[#allocation1 + $0x1] ss:$2 sm:$0xff] %v5819_v6  ;;  %v1762_v16 = vsel %vm8105_vm13, %v1752_v23, %v1760_v15  ;;  %v1791_v4 = vrot.slane %v1786_v37, 4  ;;  %vm1864_vm13 = vcmask 130048   ;;  %s8114_s11 = smov 64  }
 0x20d   : > { %1769 = vst [vmem:[#allocation2 + $0x1b8] sm:$0xcc] %v1762_v16 }
 0x20e   : > { %v1794_v5 = vsel %vm234_vm1, %v1791_v4, %v8103_v38 }
 0x20f   : > { %v1796_v27 = vsel %vm8101_vm10, %v1786_v37, %v1794_v5  ;;  %vm8127_vm10 = vcmask 850944   ;;  %v6077_v37 = vld [vmem:[%s5517_s7 + $0xe] sm:$0xff] }
 0x210   : > { %1803 = vst [vmem:[#allocation2 + $0x1cc] sm:$0x33] %v1796_v27  ;;  %v1807_v27 = vld [vmem:[%s5517_s7 + $0x8] sm:$0xf] }
 0x211   : > { %v6071_v23 = vld.sshfl [vmem:[#allocation1 + $0x10] sm:$0xff pattern:$0x75643120]  ;;  %v6073_v20 = vpop.permute.xlu1 %1822  ;;  %v1821_v18 = vpop.permute.xlu0 %1820 }
 0x212   : > { %8292 = vst [vmem:[#allocation38_spill] sm:$0xff] %v6073_v20  ;;  %v8106_v15 = vrot.slane %v6073_v20, 4  ;;  %v1826_v5 = vrot.slane %v1821_v18, 4 }
 0x213   : > { %v2289_v36 = vld.sshfl [vmem:[#allocation1] sm:$0xff pattern:$0x75643120]  ;;  %v2291_v44 = vld.sshfl [vmem:[#allocation1 + $0x8] sm:$0xff pattern:$0x75643120] }
 0x214   : > { %2295 = vrot.lane.b32.xlu1 %v2289_v36, %s8162_s14  ;;  %2318 = vst [vmem:[#allocation1] ss:$2 sm:$0xff] %v5819_v6  ;;  %2297 = vrot.lane.b32.xlu2 %v2291_v44, %s8162_s14  ;;  %v1829_v36 = vsel %vm234_vm1, %v1826_v5, %v8106_v15  ;;  %v1855_v6 = vpop.permute.xlu2 %1854 }
 0x215   : > { %1778 = vst [vmem:[#allocation1 + $0x10] ss:$2 sm:$0xff] %v1773_v21  ;;  %v1831_v44 = vsel %vm8127_vm10, %v1821_v18, %v1829_v36  ;;  %v1860_v21 = vrot.slane %v1855_v6, 4  ;;  %vm8132_vm10 = vcmask 982016  }
 0x216   : > { %1838 = vst [vmem:[#allocation2 + $0x1cc] sm:$0xcc] %v1831_v44 }
 0x219   : > { %v6089_v30 = vpop.permute.xlu0 %1856 }
 0x21a   : > { %8293 = vst [vmem:[#allocation39_spill] sm:$0xff] %v6089_v30  ;;  %v8111_v18 = vrot.slane %v6089_v30, 4 }
 0x21b   : > { %v2322_v16 = vld.sshfl [vmem:[#allocation1] sm:$0xff pattern:$0x75643120]  ;;  %v2324_v4 = vld.sshfl [vmem:[#allocation1 + $0x8] sm:$0xff pattern:$0x75643120] }
 0x21c   : > { %2328 = vrot.lane.b32.xlu0 %v2322_v16, %s5421_s24  ;;  %2330 = vrot.lane.b32.xlu1 %v2324_v4, %s5421_s24  ;;  %2353 = vst [vmem:[#allocation1 + $0x1] ss:$2 sm:$0xff] %v6077_v37  ;;  %v6087_v38 = vld.sshfl [vmem:[#allocation1 + $0x10] sm:$0xff pattern:$0x75643120]  ;;  %v1863_v5 = vsel %vm234_vm1, %v1860_v21, %v8111_v18  ;;  %v6100_v44 = vpop.permute.xlu2 %1891 }
 0x21d   : > { %1813 = vst [vmem:[#allocation1 + $0x11] ss:$2 sm:$0xff] %v1807_v27  ;;  %v1865_v36 = vsel %vm1864_vm13, %v1855_v6, %v1863_v5  ;;  %v1842_v16 = vld [vmem:[%s5517_s7 + $0xa] sm:$0xf]  ;;  %v8117_v27 = vrot.slane %v6100_v44, 4 }
 0x21e   : > { %8294 = vst [vmem:[#allocation40_spill] sm:$0xff] %v6100_v44  ;;  %v1876_v18 = vld [vmem:[%s5517_s7 + $0xa] sm:$0xf] }
 0x21f   : > { %1872 = vst [vmem:[#allocation2 + $0x1e0] sm:$0x33] %v1865_v36 }
 0x221   : > { %v1890_v21 = vpop.permute.xlu1 %1889 }
 0x222   : > { %v1895_v6 = vrot.slane %v1890_v21, 4 }
 0x223   : > { %v2359_v4 = vld.sshfl [vmem:[#allocation1 + $0x8] sm:$0xff pattern:$0x75643120]  ;;  %v2357_v15 = vld.sshfl [vmem:[#allocation1] sm:$0xff pattern:$0x75643120] }
 0x224   : > { %2365 = vrot.lane.b32.xlu0 %v2359_v4, %s8114_s11  ;;  %2363 = vrot.lane.b32.xlu2 %v2357_v15, %s8114_s11  ;;  %2387 = vst [vmem:[#allocation1] ss:$2 sm:$0xff] %v6077_v37  ;;  %v6103_v48 = vld.sshfl [vmem:[#allocation1 + $0x10] sm:$0xff pattern:$0x75643120]  ;;  %v1898_v5 = vsel %vm234_vm1, %v1895_v6, %v8117_v27  ;;  %s8120_s11 = smov 58  }
 0x225   : > { %1847 = vst [vmem:[#allocation1 + $0x10] ss:$2 sm:$0xff] %v1842_v16  ;;  %v1899_v4 = vsel %vm856_vm3, %v1890_v21, %v1898_v5  ;;  %v1957_v5 = vpop.permute.xlu2 %1956 }
 0x226   : > { %1906 = vst [vmem:[#allocation2 + $0x1e0] sm:$0xcc] %v1899_v4 }
 0x229   : > { %v6115_v16 = vpop.permute.xlu1 %1924  ;;  %v1923_v30 = vpop.permute.xlu0 %1922 }
 0x22a   : > { %8295 = vst [vmem:[#allocation41_spill] sm:$0xff] %v6115_v16  ;;  %v8125_v21 = vrot.slane %v6115_v16, 4  ;;  %v1928_v6 = vrot.slane %v1923_v30, 4 }
 0x22b   : > { %v2391_v15 = vld.sshfl [vmem:[#allocation1] sm:$0xff pattern:$0x75643120]  ;;  %v2393_v46 = vld.sshfl [vmem:[#allocation1 + $0x8] sm:$0xff pattern:$0x75643120] }
 0x22c   : > { %2397 = vrot.lane.b32.xlu1 %v2391_v15, %s8120_s11  ;;  %2399 = vrot.lane.b32.xlu2 %v2393_v46, %s8120_s11  ;;  %2422 = vst [vmem:[#allocation1 + $0x1] ss:$2 sm:$0xff] %v6077_v37  ;;  %v6113_v36 = vld.sshfl [vmem:[#allocation1 + $0x10] sm:$0xff pattern:$0x75643120]  ;;  %v1931_v27 = vsel %vm234_vm1, %v1928_v6, %v8125_v21  ;;  %s8126_s11 = smov 52  }
 0x22d   : > { %1882 = vst [vmem:[#allocation1 + $0x11] ss:$2 sm:$0xff] %v1876_v18  ;;  %v1932_v15 = vsel %vm925_vm6, %v1923_v30, %v1931_v27  ;;  %v1910_v46 = vld [vmem:[%s5517_s7 + $0xa] sm:$0xf]  ;;  %v1962_v18 = vrot.slane %v1957_v5, 4  ;;  %v6136_v39 = vpop.permute.xlu2 %1991 }
 0x22e   : > { %1939 = vst [vmem:[#allocation2 + $0x1f4] sm:$0x33] %v1932_v15  ;;  %v8135_v15 = vrot.slane %v6136_v39, 4 }
 0x231   : > { %v6128_v16 = vpop.permute.xlu0 %1958 }
 0x232   : > { %8296 = vst [vmem:[#allocation42_spill] sm:$0xff] %v6128_v16  ;;  %v8128_v30 = vrot.slane %v6128_v16, 4 }
 0x233   : > { %v2428_v20 = vld.sshfl [vmem:[#allocation1 + $0x8] sm:$0xff pattern:$0x75643120]  ;;  %v2426_v4 = vld.sshfl [vmem:[#allocation1] sm:$0xff pattern:$0x75643120] }
 0x234   : > { %2434 = vrot.lane.b32.xlu1 %v2428_v20, %s8126_s11  ;;  %2432 = vrot.lane.b32.xlu0 %v2426_v4, %s8126_s11  ;;  %2456 = vst [vmem:[#allocation1] ss:$2 sm:$0xff] %v6077_v37  ;;  %v6126_v44 = vld.sshfl [vmem:[#allocation1 + $0x10] sm:$0xff pattern:$0x75643120]  ;;  %v1965_v27 = vsel %vm234_vm1, %v1962_v18, %v8128_v30  ;;  %s8131_s11 = smov 46  }
 0x235   : > { %1915 = vst [vmem:[#allocation1 + $0x10] ss:$2 sm:$0xff] %v1910_v46  ;;  %v1966_v6 = vsel %vm8139_vm8, %v1957_v5, %v1965_v27  ;;  %v1943_v20 = vld [vmem:[%s5517_s7 + $0xc] sm:$0xf]  ;;  %vm8140_vm8 = vcmask 64512  }
 0x236   : > { %1973 = vst [vmem:[#allocation2 + $0x1f4] sm:$0xcc] %v1966_v6 }
 0x23a   : > { %v1990_v18 = vpop.permute.xlu1 %1989 }
 0x23b   : > { %v2462_v21 = vld.sshfl [vmem:[#allocation1 + $0x8] sm:$0xff pattern:$0x75643120]  ;;  %v2460_v4 = vld.sshfl [vmem:[#allocation1] sm:$0xff pattern:$0x75643120] }
 0x23c   : > { %2468 = vrot.lane.b32.xlu0 %v2462_v21, %s8131_s11  ;;  %2466 = vrot.lane.b32.xlu2 %v2460_v4, %s8131_s11  ;;  %2491 = vst [vmem:[#allocation1 + $0x1] ss:$2 sm:$0xff] %v6077_v37  ;;  %v6142_v46 = vld.sshfl [vmem:[#allocation1 + $0x10] sm:$0xff pattern:$0x75643120]  ;;  %v1995_v5 = vrot.slane %v1990_v18, 4  ;;  %v2059_v37 = vpop.permute.xlu2 %2058 }
 0x23d   : > { %1949 = vst [vmem:[#allocation1 + $0x11] ss:$2 sm:$0xff] %v1943_v20  ;;  %v1977_v21 = vld [vmem:[%s5517_s7 + $0xc] sm:$0xf]  ;;  %s8133_s11 = smov 40  }
 0x23e   : > { %v1998_v27 = vsel %vm234_vm1, %v1995_v5, %v8135_v15 }
 0x23f   : > { %v2000_v30 = vsel %vm8132_vm10, %v1990_v18, %v1998_v27  ;;  %vm8138_vm10 = vcmask 261120  }
 0x240   : > { %2007 = vst [vmem:[#allocation2 + $0x208] sm:$0x33] %v2000_v30  ;;  %v2011_v30 = vld [vmem:[%s5517_s7 + $0xe] sm:$0xf] }
 0x242   : > { %v6155_v20 = vpop.permute.xlu1 %2026 }
 0x243   : > { %v2497_v16 = vld.sshfl [vmem:[#allocation1 + $0x8] sm:$0xff pattern:$0x75643120]  ;;  %v2495_v4 = vld.sshfl [vmem:[#allocation1] sm:$0xff pattern:$0x75643120]  ;;  %v2025_v5 = vpop.permute.xlu0 %2024 }
 0x244   : > { %1461 = vrot.lane.b32.xlu0 %v5806_v45, %s5398_s9  ;;  %2503 = vrot.lane.b32.xlu2 %v2497_v16, %s8133_s11  ;;  %v6153_v6 = vld.sshfl [vmem:[#allocation1 + $0x10] sm:$0xff pattern:$0x75643120]  ;;  %v8144_v18 = vrot.slane %v6155_v20, 4  ;;  %v2030_v27 = vrot.slane %v2025_v5, 4 }
 0x245   : > { %2501 = vrot.lane.b32.xlu1 %v2495_v4, %s8133_s11  ;;  %1982 = vst [vmem:[#allocation1 + $0x10] ss:$2 sm:$0xff] %v1977_v21  ;;  %s8136_s11 = smov 22   ;;  %v2064_v21 = vrot.slane %v2059_v37, 4 }
 0x246   : > { %v2033_v45 = vsel %vm234_vm1, %v2030_v27, %v8144_v18  ;;  %v6174_v27 = vpop.permute.xlu2 %2094 }
 0x247   : > { %v2035_v16 = vsel %vm8138_vm10, %v2025_v5, %v2033_v45  ;;  %vm1333_vm10 = vcmask 113664  }
 0x248   : > { %2042 = vst [vmem:[#allocation2 + $0x208] sm:$0xcc] %v2035_v16 }
 0x24b   : > { %v6171_v15 = vpop.permute.xlu0 %2060 }
 0x24c   : > { %1527 = vrot.lane.b32.xlu0 %v5840_v22, %s8145_s10  ;;  %1495 = vrot.lane.b32.xlu2 %v5824_v14, %s8136_s11  ;;  %v6169_v4 = vld.sshfl [vmem:[#allocation1 + $0x10] sm:$0xff pattern:$0x75643120]  ;;  %v8179_v5 = vrot.slane %v6171_v15, 4 }
 0x24d   : > { %1493 = vrot.lane.b32.xlu1 %v5822_v13, %s8136_s11  ;;  %2017 = vst [vmem:[#allocation1 + $0x11] ss:$2 sm:$0xff] %v2011_v30  ;;  %v2046_v14 = vld [vmem:[%s5517_s7 + $0xe] sm:$0xf]  ;;  %s8137_s11 = smov 39   ;;  %v8148_v13 = vrot.slane %v6174_v27, 4 }
 0x24e   : > { %v2067_v22 = vsel %vm234_vm1, %v2064_v21, %v8179_v5 }
 0x24f   : > { %v2068_v45 = vsel %vm1198_vm4, %v2059_v37, %v2067_v22 }
 0x250   : > { %2075 = vst [vmem:[#allocation2 + $0x21c] sm:$0x33] %v2068_v45 }
 0x254   : > { %1564 = vrot.lane.b32.xlu0 %v5854_v43, %s8137_s11  ;;  %1562 = vrot.lane.b32.xlu2 %v5852_v34, %s8137_s11  ;;  %v6188_v16 = vld.sshfl [vmem:[#allocation1 + $0x10] sm:$0xff pattern:$0x75643120]  ;;  %v2093_v30 = vpop.permute.xlu1 %2092  ;;  %v2160_v43 = vpop.permute.xlu2 %2159  ;;  %s8142_s11 = smov 34  }
 0x255   : > { %1529 = vrot.lane.b32.xlu1 %v5842_v61, %s8145_s10  ;;  %2051 = vst [vmem:[#allocation1 + $0x10] ss:$2 sm:$0xff] %v2046_v14  ;;  %v2098_v37 = vrot.slane %v2093_v30, 4  ;;  %v2079_v34 = vld [vmem:[%s5517_s7 + $0xe] sm:$0xf]  ;;  %s8299_s10 = smov 1  }
 0x257   : > { %v2101_v21 = vsel %vm234_vm1, %v2098_v37, %v8148_v13 }
 0x258   : > { %v2102_v22 = vsel %vm374_vm5, %v2093_v30, %v2101_v21 }
 0x259   : > { %2109 = vst [vmem:[#allocation2 + $0x21c] sm:$0xcc] %v2102_v22  ;;  %v2165_v22 = vrot.slane %v2160_v43, 4 }
 0x25c   : > { %1358 = vrot.lane.b32.xlu0 %v5753_v40, %s8142_s11  ;;  %1325 = vrot.lane.b32.xlu2 %v5740_v25, %s8161_s26  ;;  %v6201_v61 = vld.sshfl [vmem:[#allocation1 + $0x10] sm:$0xff pattern:$0x75643120] }
 0x25d   : > { %1323 = vrot.lane.b32.xlu1 %v5738_v24, %s8161_s26  ;;  %v6203_v45 = vpop.permute.xlu1 %2127  ;;  %v2126_v14 = vpop.permute.xlu0 %2125  ;;  %2085 = vst [vmem:[#allocation1 + $0x11] ss:$2 sm:$0xff] %v2079_v34  ;;  %v2113_v25 = vld [vmem:[%s5517_s7 + $0xe] sm:$0xf] }
 0x25e   : > { %v2132_v30 = vrot.slane %v6203_v45, 4  ;;  %v2131_v37 = vrot.slane %v2126_v14, 4  ;;  %v6215_v24 = vpop.permute.xlu2 %2195 }
 0x260   : > { %v2134_v40 = vsel %vm234_vm1, %v2131_v37, %v2132_v30 }
 0x261   : > { %v2135_v21 = vsel %vm1333_vm10, %v2126_v14, %v2134_v40  ;;  %v2146_v40 = vld [vmem:[%s5517_s7 + $0xe] sm:$0xf] }
 0x262   : > { %2142 = vst [vmem:[#allocation2 + $0x230] sm:$0x33] %v2135_v21 }
 0x264   : > { %1394 = vrot.lane.b32.xlu0 %v5778_v3, %s8157_s6  ;;  %1392 = vrot.lane.b32.xlu2 %v5776_v0, %s8157_s6  ;;  %v6219_v34 = vld.sshfl [vmem:[#allocation1 + $0x10] sm:$0xff pattern:$0x75643120] }
 0x265   : > { %1360 = vrot.lane.b32.xlu1 %v5755_v41, %s8142_s11  ;;  %v6221_v37 = vpop.permute.xlu0 %2161  ;;  %2118 = vst [vmem:[#allocation1 + $0x10] ss:$2 sm:$0xff] %v2113_v25  ;;  %v8151_v41 = vrot.slane %v6215_v24, 4  ;;  %s8297_s11 = smov 12  }
 0x266   : > { %v8155_v14 = vrot.slane %v6221_v37, 4 }
 0x268   : > { %v2168_v3 = vsel %vm234_vm1, %v2165_v22, %v8155_v14  ;;  %v2262_v22 = vpop.permute.xlu2 %2261  ;;  %v5152_v14 = vld [vmem:[#allocation2 + $0x1f0] sm:$0xf0] }
 0x269   : > { %v2170_v0 = vsel %vm8140_vm8, %v2160_v43, %v2168_v3  ;;  %vm8141_vm8 = vcmask 392192  }
 0x26a   : > { %2177 = vst [vmem:[#allocation2 + $0x230] sm:$0xcc] %v2170_v0 }
 0x26c   : > { %1192 = vrot.lane.b32.xlu0 %v5913_v59, %s8143_s22  ;;  %1428 = vrot.lane.b32.xlu2 %v5794_v33, %s8160_s8  ;;  %v6236_v21 = vld.sshfl [vmem:[#allocation1 + $0x10] sm:$0xff pattern:$0x75643120]  ;;  %s8298_s22 = smov 15  }
 0x26d   : > { %1426 = vrot.lane.b32.xlu1 %v5792_v19, %s8160_s8  ;;  %2152 = vst [vmem:[#allocation1 + $0x11] ss:$2 sm:$0xff] %v2146_v40  ;;  %v2181_v33 = vld [vmem:[%s5517_s7 + $0x12] sm:$0xf] }
 0x26e   : > { %v2194_v25 = vpop.permute.xlu1 %2193 }
 0x26f   : > { %v2199_v43 = vrot.slane %v2194_v25, 4 }
 0x271   : > { %v2202_v3 = vsel %vm234_vm1, %v2199_v43, %v8151_v41  ;;  %v2385_v41 = vld [vmem:[%s5517_s7 + $0x16] sm:$0xf] }
 0x272   : > { %v2204_v59 = vsel %vm8141_vm8, %v2194_v25, %v2202_v3  ;;  %vm1537_vm8 = vcmask 343040   ;;  %v6254_v3 = vpop.permute.xlu2 %2297 }
 0x273   : > { %2211 = vst [vmem:[#allocation2 + $0x244] sm:$0x33] %v2204_v59  ;;  %v2267_v59 = vrot.slane %v2262_v22, 4 }
 0x274   : > { %1294 = vrot.lane.b32.xlu0 %v5949_v2, %s5395_s5  ;;  %1260 = vrot.lane.b32.xlu2 %v5943_v63, %s5386_s12  ;;  %v6249_v19 = vld.sshfl [vmem:[#allocation1 + $0x10] sm:$0xff pattern:$0x75643120] }
 0x275   : > { %1227 = vrot.lane.b32.xlu1 %v5930_v1, %s5394_s30  ;;  %2186 = vst [vmem:[#allocation1 + $0x10] ss:$2 sm:$0xff] %v2181_v33  ;;  %v2215_v1 = vld [vmem:[%s5517_s7 + $0x12] sm:$0xf] }
 0x276   : > { %v6251_v0 = vpop.permute.xlu1 %2230  ;;  %v2229_v40 = vpop.permute.xlu0 %2228 }
 0x277   : > { %v2235_v25 = vrot.slane %v6251_v0, 4  ;;  %v2234_v43 = vrot.slane %v2229_v40, 4 }
 0x279   : > { %v2237_v2 = vsel %vm234_vm1, %v2234_v43, %v2235_v25 }
 0x27a   : > { %v2238_v63 = vsel %vm1537_vm8, %v2229_v40, %v2237_v2 }
 0x27b   : > { %2245 = vst [vmem:[#allocation2 + $0x244] sm:$0xcc] %v2238_v63 }
 0x27c   : > { %1124 = vrot.lane.b32.xlu0 %v5886_v8, %s5393_s29  ;;  %1091 = vrot.lane.b32.xlu2 %v5873_v31, %s8297_s11  ;;  %v6267_v33 = vld.sshfl [vmem:[#allocation1 + $0x10] sm:$0xff pattern:$0x75643120] }
 0x27d   : > { %1057 = vrot.lane.b32.xlu1 %v5860_v52, %s8298_s22  ;;  %2221 = vst [vmem:[#allocation1 + $0x11] ss:$2 sm:$0xff] %v2215_v1  ;;  %v2249_v31 = vld [vmem:[%s5517_s7 + $0x12] sm:$0xf]  ;;  %v2302_v52 = vrot.slane %v6254_v3, 4  ;;  %s8300_s22 = smov 6  }
 0x27e   : > { %v6269_v18 = vpop.permute.xlu0 %2263  ;;  %v2364_v2 = vpop.permute.xlu2 %2363 }
 0x27f   : > { %v8168_v43 = vrot.slane %v6269_v18, 4 }
 0x281   : > { %v2270_v40 = vsel %vm234_vm1, %v2267_v59, %v8168_v43 }
 0x282   : > { %v2271_v8 = vsel %vm8147_vm7, %v2262_v22, %v2270_v40  ;;  %vm8149_vm7 = vcmask 195584  }
 0x283   : > { %2278 = vst [vmem:[#allocation2 + $0x258] sm:$0x33] %v2271_v8 }
 0x284   : > { %954 = vrot.lane.b32.xlu0 %v5812_v60, %s8299_s10  ;;  %919 = vrot.lane.b32.xlu2 %v5799_v29, %s5401_s13  ;;  %v6284_v63 = vld.sshfl [vmem:[#allocation1 + $0x10] sm:$0xff pattern:$0x75643120]  ;;  %s8301_s10 = smov 18  }
 0x285   : > { %1158 = vrot.lane.b32.xlu1 %v5902_v56, %s8300_s22  ;;  %2254 = vst [vmem:[#allocation1 + $0x10] ss:$2 sm:$0xff] %v2249_v31  ;;  %v2282_v60 = vld [vmem:[%s5517_s7 + $0x12] sm:$0xf]  ;;  %s8302_s22 = smov 7  }
 0x286   : > { %v2296_v1 = vpop.permute.xlu1 %2295  ;;  %v6295_v29 = vpop.permute.xlu2 %2399 }
 0x287   : > { %v2301_v59 = vrot.slane %v2296_v1, 4 }
 0x289   : > { %v2304_v22 = vsel %vm234_vm1, %v2301_v59, %v2302_v52 }
 0x28a   : > { %v2305_v40 = vsel %vm8156_vm12, %v2296_v1, %v2304_v22  ;;  %v2316_v22 = vld [vmem:[%s5517_s7 + $0x12] sm:$0xf]  ;;  %vm8158_vm12 = vcmask 375808  }
 0x28b   : > { %2312 = vst [vmem:[#allocation2 + $0x258] sm:$0xcc] %v2305_v40 }
 0x28c   : > { %781 = vrot.lane.b32.xlu0 %v5718_v11, %s8160_s8  ;;  %1023 = vrot.lane.b32.xlu2 %v5845_v17, %s8301_s10  ;;  %v6299_v56 = vld.sshfl [vmem:[#allocation1 + $0x10] sm:$0xff pattern:$0x75643120]  ;;  %s8303_s10 = smov 10   ;;  %s8359_s8 = smov 58  }
 0x28d   : > { %988 = vrot.lane.b32.xlu1 %v5830_v26, %s5403_s21  ;;  %2288 = vst [vmem:[#allocation1 + $0x11] ss:$2 sm:$0xff] %v2282_v60  ;;  %v2369_v26 = vrot.slane %v2364_v2, 4 }
 0x28e   : > { %v2329_v8 = vpop.permute.xlu0 %2328  ;;  %v6301_v31 = vpop.permute.xlu1 %2330 }
 0x28f   : > { %v2334_v1 = vrot.slane %v2329_v8, 4  ;;  %v8180_v59 = vrot.slane %v6301_v31, 4 }
 0x291   : > { %v2337_v11 = vsel %vm234_vm1, %v2334_v1, %v8180_v59  ;;  %v4807_v59 = vld [vmem:[#allocation2 + $0x104] sm:$0xf0] }
 0x292   : > { %v2339_v17 = vsel %vm8149_vm7, %v2329_v8, %v2337_v11  ;;  %vm8150_vm7 = vcmask 523264  }
 0x293   : > { %2346 = vst [vmem:[#allocation2 + $0x26c] sm:$0x33] %v2339_v17 }
 0x294   : > { %885 = vrot.lane.b32.xlu0 %v5784_v10, %s8302_s22  ;;  %850 = vrot.lane.b32.xlu2 %v5766_v55, %s8303_s10  ;;  %v2293_v40 = vld.sshfl [vmem:[#allocation1 + $0x10] sm:$0xff pattern:$0x75643120]  ;;  %s8306_s22 = smov 8  }
 0x295   : > { %816 = vrot.lane.b32.xlu1 %v5747_v35, %s5398_s9  ;;  %2321 = vst [vmem:[#allocation1 + $0x10] ss:$2 sm:$0xff] %v2316_v22  ;;  %v2350_v55 = vld [vmem:[%s5517_s7 + $0x16] sm:$0xf]  ;;  %v8153_v35 = vrot.slane %v6295_v29, 4 }
 0x296   : > { %v6315_v60 = vpop.permute.xlu0 %2365  ;;  %v6317_v13 = vpop.permute.xlu2 %2466 }
 0x297   : > { %v8154_v8 = vrot.slane %v6315_v60, 4 }
 0x299   : > { %v2372_v10 = vsel %vm234_vm1, %v2369_v26, %v8154_v8 }
 0x29a   : > { %v2374_v1 = vsel %vm8150_vm7, %v2364_v2, %v2372_v10  ;;  %vm8152_vm7 = vcmask 474112   ;;  %v4985_v10 = vld [vmem:[#allocation2 + $0x258] sm:$0xf] }
 0x29b   : > { %2381 = vst [vmem:[#allocation2 + $0x26c] sm:$0xcc] %v2374_v1 }
 0x29c   : > { %712 = vrot.lane.b32.xlu0 %v5588_v9, %s5395_s5  ;;  %679 = vrot.lane.b32.xlu2 %v5581_v62, %s5386_s12  ;;  %v2326_v11 = vld.sshfl [vmem:[#allocation1 + $0x10] sm:$0xff pattern:$0x75643120]  ;;  %s8324_s5 = smov 104  }
 0x29d   : > { %644 = vrot.lane.b32.xlu1 %v5575_v57, %s5394_s30  ;;  %2356 = vst [vmem:[#allocation1 + $0x11] ss:$2 sm:$0xff] %v2350_v55  ;;  %v4965_v57 = vld [vmem:[#allocation2 + $0x230] sm:$0xf]  ;;  %v5162_v55 = vld [vmem:[#allocation2 + $0x240] sm:$0xf0] }
 0x29e   : > { %v2398_v17 = vpop.permute.xlu1 %2397  ;;  %v6332_v22 = vpop.permute.xlu2 %2503  ;;  %s8313_s30 = smov 26  }
 0x29f   : > { %v2403_v2 = vrot.slane %v2398_v17, 4 }
 0x2a1   : > { %v2406_v9 = vsel %vm234_vm1, %v2403_v2, %v8153_v35  ;;  %v5157_v35 = vld [vmem:[#allocation2 + $0x218] sm:$0xf0] }
 0x2a2   : > { %v2408_v26 = vsel %vm8152_vm7, %v2398_v17, %v2406_v9  ;;  %v5167_v62 = vld [vmem:[#allocation2 + $0x268] sm:$0xf0]  ;;  %vm8159_vm7 = vcmask 424960  }
 0x2a3   : > { %2415 = vst [vmem:[#allocation2 + $0x280] sm:$0x33] %v2408_v26  ;;  %v4986_v1 = vor.u32 %v5167_v62, %v4985_v10  ;;  %v4966_v62 = vor.u32 %v5162_v55, %v4965_v57  ;;  %v2472_v57 = vrot.slane %v6317_v13, 4 }
 0x2a4   : > { %610 = vrot.lane.b32.xlu0 %v5568_v53, %s5393_s29  ;;  %575 = vrot.lane.b32.xlu2 %v5562_v49, %s8297_s11  ;;  %v2361_v2 = vld.sshfl [vmem:[#allocation1 + $0x10] sm:$0xff pattern:$0x75643120]  ;;  %s8304_s29 = smov 36   ;;  %s8317_s11 = smov 16  }
 0x2a5   : > { %747 = vrot.lane.b32.xlu1 %v5602_v28, %s8157_s6  ;;  %3292 = vmatpush.bf16.msra.mxu1 %v4986_v1  ;;  %2390 = vst [vmem:[#allocation1 + $0x10] ss:$2 sm:$0xff] %v2385_v41  ;;  %v4945_v49 = vld [vmem:[#allocation2 + $0x208] sm:$0xf]  ;;  %v4925_v41 = vld [vmem:[#allocation2 + $0x1e0] sm:$0xf] }
 0x2a6   : > { %5183 = vmatpush.bf16.msrb.mxu3 %v4986_v1  ;;  %v6345_v17 = vpop.permute.xlu1 %2434  ;;  %v2433_v9 = vpop.permute.xlu0 %2432  ;;  %v4946_v8 = vor.u32 %v5157_v35, %v4945_v49  ;;  %v4926_v35 = vor.u32 %v5152_v14, %v4925_v41  ;;  %v5142_v41 = vld [vmem:[#allocation2 + $0x1a0] sm:$0xf0]  ;;  %s8309_s6 = smov 120  }
 0x2a7   : > { %v8167_v26 = vrot.slane %v6345_v17, 4  ;;  %v2438_v10 = vrot.slane %v2433_v9, 4  ;;  %v6348_v53 = vpop.permute.xlu2 %1495 }
 0x2a9   : > { %v2441_v28 = vsel %vm234_vm1, %v2438_v10, %v8167_v26  ;;  %3293 = vmatpush.bf16.msra.mxu1 %v4966_v62 }
 0x2aa   : > { %v2443_v1 = vsel %vm8159_vm7, %v2433_v9, %v2441_v28  ;;  %5184 = vmatpush.bf16.msrb.mxu3 %v4966_v62  ;;  %v4905_v62 = vld [vmem:[#allocation2 + $0x1b8] sm:$0xf]  ;;  %vm8173_vm7 = vcmask 179200  }
 0x2ab   : > { %2450 = vst [vmem:[#allocation2 + $0x280] sm:$0xcc] %v2443_v1  ;;  %v4885_v1 = vld [vmem:[#allocation2 + $0x190] sm:$0xf] }
 0x2ac   : > { %2332 = vrot.lane.b32.xlu0 %v2326_v11, %s5421_s24  ;;  %2299 = vrot.lane.b32.xlu2 %v2293_v40, %s8162_s14  ;;  %v4661_v40 = vld [vmem:[%s8001_s1 + $0x90] sm:$0xf]  ;;  %v5085_v11 = vld [vmem:[%s8001_s1 + $0x98] sm:$0xf0]  ;;  %s8307_s24 = smov 64  }
 0x2ad   : > { %2265 = vrot.lane.b32.xlu1 %v6299_v56, %s8304_s29  ;;  %3294 = vmatpush.bf16.msra.mxu1 %v4946_v8  ;;  %v5147_v56 = vld [vmem:[#allocation2 + $0x1c8] sm:$0xf0]  ;;  %v6370_v49 = vor.u32 %v5085_v11, %v4661_v40 }
 0x2ae   : > { %5185 = vmatpush.bf16.msrb.mxu3 %v4946_v8  ;;  %v6359_v55 = vpop.permute.xlu0 %2468  ;;  %v4906_v28 = vor.u32 %v5147_v56, %v4905_v62  ;;  %v4886_v56 = vor.u32 %v5142_v41, %v4885_v1  ;;  %v6441_v43 = vld.sshfl [vmem:[#allocation1 + $0x10] sm:$0xff pattern:$0x75643120] }
 0x2af   : > { %v8164_v9 = vrot.slane %v6359_v55, 4  ;;  %v6362_v10 = vpop.permute.xlu2 %1562  ;;  %8305 = vst [vmem:[#allocation43_spill] sm:$0xff] %v6370_v49  ;;  %3281 = vmatmul.bf16.vlgmr.msra.gmra.mxu3 %v6370_v49 }
 0x2b0   : > { %v1568_v26 = vrot.slane %v6362_v10, 4 }
 0x2b1   : > { %v2475_v8 = vsel %vm234_vm1, %v2472_v57, %v8164_v9  ;;  %3295 = vmatpush.bf16.msra.mxu1 %v4926_v35  ;;  %v5067_v57 = vld [vmem:[%s8001_s1 + $0x8] sm:$0xf0] }
 0x2b2   : > { %v2477_v14 = vsel %vm8158_vm12, %v6317_v13, %v2475_v8  ;;  %5186 = vmatpush.bf16.msrb.mxu3 %v4926_v35  ;;  %v4589_v13 = vld [vmem:[%s8001_s1] sm:$0xf]  ;;  %v8163_v35 = vrot.slane %v6332_v22, 4  ;;  %vm8169_vm12 = vcmask 326656   ;;  %v5170_v9 = vld [vmem:[#allocation2 + $0x284] sm:$0xf] }
 0x2b3   : > { %2484 = vst [vmem:[#allocation2 + $0x294] sm:$0x33] %v2477_v14  ;;  %v6392_v40 = vor.u32 %v5067_v57, %v4589_v13 }
 0x2b4   : > { %2163 = vrot.lane.b32.xlu0 %v6249_v19, %s8306_s22  ;;  %2129 = vrot.lane.b32.xlu2 %v6236_v21, %s8161_s26  ;;  %v1465_v21 = vrot.slane %v5996_v51, 4  ;;  %s8310_s22 = smov 42   ;;  %s8314_s26 = smov 32  }
 0x2b5   : > { %2367 = vrot.lane.b32.xlu1 %v2361_v2, %s8307_s24  ;;  %3296 = vmatpush.bf16.msra.mxu1 %v4906_v28  ;;  %8308 = vst [vmem:[#allocation44_spill] sm:$0xff] %v6392_v40  ;;  %s8311_s24 = smov 48  }
 0x2b6   : > { %5187 = vmatpush.bf16.msrb.mxu3 %v4906_v28  ;;  %v6390_v19 = vpop.permute.xlu0 %1461  ;;  %3251 = vmatmul.bf16.vlgmr.msra.gmra.mxu0 %v6392_v40 }
 0x2b7   : > { %v8165_v2 = vrot.slane %v6390_v19, 4  ;;  %v6396_v11 = vpop.permute.xlu2 %1325  ;;  %v2502_v62 = vpop.permute.xlu1 %2501 }
 0x2b8   : > { %v2507_v8 = vrot.slane %v2502_v62, 4 }
 0x2b9   : > { %v1468_v14 = vsel %vm234_vm1, %v1465_v21, %v8165_v2  ;;  %3297 = vmatpush.bf16.msra.mxu1 %v4886_v56 }
 0x2ba   : > { %v1469_v28 = vsel %vm822_vm2, %v5996_v51, %v1468_v14  ;;  %v2510_v13 = vsel %vm234_vm1, %v2507_v8, %v8163_v35  ;;  %5188 = vmatpush.bf16.msrb.mxu3 %v4886_v56  ;;  %v8166_v51 = vrot.slane %v6348_v53, 4  ;;  %v5005_v14 = vld [vmem:[#allocation2 + $0x280] sm:$0xf] }
 0x2bb   : > { %1476 = vst [vmem:[#allocation2 + $0x168] sm:$0x33] %v1469_v28  ;;  %v2512_v1 = vsel %vm8169_vm12, %v2502_v62, %v2510_v13  ;;  %v4673_v62 = vld [vmem:[%s8001_s1 + $0xa8] sm:$0xf]  ;;  %v5068_v13 = vld [vmem:[%s8001_s1 + $0x10] sm:$0xf0] }
 0x2bc   : > { %2519 = vst [vmem:[#allocation2 + $0x294] sm:$0xcc] %v2512_v1  ;;  %1993 = vrot.lane.b32.xlu0 %v6169_v4, %s8309_s6  ;;  %2232 = vrot.lane.b32.xlu2 %v6284_v63, %s8310_s22  ;;  %v5088_v4 = vld [vmem:[%s8001_s1 + $0xb0] sm:$0xf0]  ;;  %v4987_v63 = vld [vmem:[#allocation2 + $0x26c] sm:$0xf0] }
 0x2bd   : > { %2197 = vrot.lane.b32.xlu1 %v6267_v33, %s8311_s24  ;;  %v6423_v8 = vor.u32 %v5088_v4, %v4673_v62  ;;  %v4597_v28 = vld [vmem:[%s8001_s1 + $0x8] sm:$0xf]  ;;  %v5165_v4 = vld [vmem:[#allocation2 + $0x25c] sm:$0xf]  ;;  %vm8175_vm12 = vcmask 318464   ;;  %s8328_s6 = smov 30  }
 0x2be   : > { %v1528_v41 = vpop.permute.xlu0 %1527  ;;  %s8329_s24 = smov 33  }
 0x2bf   : > { %v6415_v57 = vpop.permute.xlu2 %1392  ;;  %v1494_v21 = vpop.permute.xlu1 %1493  ;;  %8312 = vst [vmem:[#allocation45_spill] sm:$0xff] %v6423_v8  ;;  %3286 = vmatmul.bf16.gmra.mxu3 %v6423_v8 }
 0x2c0   : > { %v1499_v56 = vrot.slane %v1494_v21, 4 }
 0x2c2   : > { %v1502_v33 = vsel %vm234_vm1, %v1499_v56, %v8166_v51  ;;  %v5160_v51 = vld [vmem:[#allocation2 + $0x234] sm:$0xf] }
 0x2c3   : > { %v1504_v1 = vsel %vm8173_vm7, %v1494_v21, %v1502_v33  ;;  %v5172_v35 = vld [vmem:[#allocation2 + $0x290] sm:$0xf0]  ;;  %v5007_v2 = vld [vmem:[#allocation2 + $0x294] sm:$0xf0]  ;;  %v4990_v21 = vor.u32 %v5165_v4, %v4987_v63  ;;  %v6445_v33 = vor.u32 %v5068_v13, %v4597_v28  ;;  %v2419_v28 = vld [vmem:[%s5517_s7 + $0x16] sm:$0xf] }
 0x2c4   : > { %1511 = vst [vmem:[#allocation2 + $0x168] sm:$0xcc] %v1504_v1  ;;  %2096 = vrot.lane.b32.xlu0 %v6219_v34, %s5386_s12  ;;  %2062 = vrot.lane.b32.xlu2 %v6201_v61, %s8313_s30  ;;  %v5006_v56 = vor.u32 %v5172_v35, %v5005_v14  ;;  %v5010_v62 = vor.u32 %v5170_v9, %v5007_v2  ;;  %v4967_v1 = vld [vmem:[#allocation2 + $0x244] sm:$0xf0]  ;;  %v1533_v34 = vrot.slane %v1528_v41, 4  ;;  %s8319_s30 = smov 116  }
 0x2c5   : > { %2028 = vrot.lane.b32.xlu1 %v6188_v16, %s8314_s26  ;;  %8315 = vst [vmem:[#allocation46_spill] sm:$0xff] %v6445_v33  ;;  %v4601_v9 = vld [vmem:[%s8001_s1 + $0x18] sm:$0xf]  ;;  %v5070_v35 = vld [vmem:[%s8001_s1 + $0x20] sm:$0xf0]  ;;  %s8320_s26 = smov 122  }
 0x2c6   : > { %3348 = vmatpush.bf16.msra.mxu2 %v5006_v56  ;;  %3495 = vmatpush.bf16.msrb.mxu0 %v5010_v62  ;;  %v6447_v61 = vpop.permute.xlu0 %1564  ;;  %v6460_v14 = vor.u32 %v5070_v35, %v4601_v9  ;;  %v4970_v62 = vor.u32 %v5160_v51, %v4967_v1  ;;  %2425 = vst [vmem:[#allocation1 + $0x11] ss:$2 sm:$0xff] %v2419_v28  ;;  %v5155_v9 = vld [vmem:[#allocation2 + $0x20c] sm:$0xf]  ;;  %v4947_v35 = vld [vmem:[#allocation2 + $0x21c] sm:$0xf0] }
 0x2c7   : > { %v8170_v16 = vrot.slane %v6447_v61, 4  ;;  %v6456_v2 = vpop.permute.xlu2 %1428  ;;  %v6458_v63 = vpop.permute.xlu1 %1529  ;;  %v8172_v51 = vrot.slane %v6396_v11, 4  ;;  %v4927_v28 = vld [vmem:[#allocation2 + $0x1f4] sm:$0xf0]  ;;  %vm8174_vm7 = vcmask 277504   ;;  %s8358_s12 = smov 52  }
 0x2c8   : > { %8316 = vst [vmem:[#allocation47_spill] sm:$0xff] %v6460_v14  ;;  %v8171_v13 = vrot.slane %v6458_v63, 4  ;;  %3256 = vmatmul.bf16.gmra.mxu0 %v6460_v14 }
 0x2c9   : > { %v1571_v56 = vsel %vm234_vm1, %v1568_v26, %v8170_v16  ;;  %5023 = vmatmul.msk.bf16.vlgmr.msra.gmra.mxu2 %vm1864_vm13, %v6445_v33  ;;  %v5145_v16 = vld [vmem:[#allocation2 + $0x1bc] sm:$0xf] }
 0x2ca   : > { %3439 = vmatpush.bf16.msrb.mxu2 %v4990_v21  ;;  %v1573_v4 = vsel %vm8175_vm12, %v6362_v10, %v1571_v56  ;;  %v1536_v21 = vsel %vm234_vm1, %v1533_v34, %v8171_v13  ;;  %v4950_v10 = vor.u32 %v5155_v9, %v4947_v35  ;;  %v5150_v34 = vld [vmem:[#allocation2 + $0x1e4] sm:$0xf]  ;;  %v8318_v13 = vrot.slane %v5919_v42, 4 }
 0x2cb   : > { %1580 = vst [vmem:[#allocation2 + $0x17c] sm:$0xcc] %v1573_v4  ;;  %v1538_v26 = vsel %vm1537_vm8, %v1528_v41, %v1536_v21 }
 0x2cc   : > { %1545 = vst [vmem:[#allocation2 + $0x17c] sm:$0x33] %v1538_v26  ;;  %1926 = vrot.lane.b32.xlu0 %v6142_v46, %s5401_s13  ;;  %1893 = vrot.lane.b32.xlu2 %v6126_v44, %s8303_s10  ;;  %v4930_v46 = vor.u32 %v5150_v34, %v4927_v28  ;;  %v4907_v44 = vld [vmem:[#allocation2 + $0x1cc] sm:$0xf0]  ;;  %v5071_v34 = vld [vmem:[%s8001_s1 + $0x28] sm:$0xf0] }
 0x2cd   : > { %1858 = vrot.lane.b32.xlu1 %v6113_v36, %s8317_s11  ;;  %v6484_v26 = vld.sshfl [vmem:[#allocation1 + $0x10] sm:$0xff pattern:$0x75643120]  ;;  %s8325_s11 = smov 110   ;;  %s8341_s10 = smov 39  }
 0x2ce   : > { %3440 = vmatpush.bf16.msrb.mxu2 %v4970_v62  ;;  %v1359_v1 = vpop.permute.xlu0 %1358  ;;  %v2454_v62 = vld [vmem:[%s5517_s7 + $0x16] sm:$0xf]  ;;  %s8387_s13 = smov 31  }
 0x2cf   : > { %v1261_v56 = vpop.permute.xlu2 %1260  ;;  %v1324_v41 = vpop.permute.xlu1 %1323  ;;  %2459 = vst [vmem:[#allocation1 + $0x10] ss:$2 sm:$0xff] %v2454_v62 }
 0x2d0   : > { %v1264_v4 = vrot.slane %v1261_v56, 4  ;;  %v1329_v21 = vrot.slane %v1324_v41, 4 }
 0x2d2   : > { %3441 = vmatpush.bf16.msrb.mxu2 %v4950_v10  ;;  %v1267_v36 = vsel %vm234_vm1, %v8318_v13, %v1264_v4  ;;  %v1269_v9 = vsel %vm374_vm5, %v1261_v56, %v1264_v4  ;;  %v1332_v35 = vsel %vm234_vm1, %v1329_v21, %v8172_v51  ;;  %v4609_v10 = vld [vmem:[%s8001_s1 + $0x20] sm:$0xf]  ;;  %v4865_v56 = vld [vmem:[#allocation2 + $0x168] sm:$0xf]  ;;  %v1398_v51 = vrot.slane %v6415_v57, 4 }
 0x2d3   : > { %v1268_v28 = vsel %vm374_vm5, %v5919_v42, %v1267_v36  ;;  %1275 = vst [vmem:[#allocation2 + $0x13c] sm:$0x3] %v1269_v9  ;;  %v1334_v13 = vsel %vm1333_vm10, %v1324_v41, %v1332_v35  ;;  %v5137_v4 = vld [vmem:[#allocation2 + $0x178] sm:$0xf0]  ;;  %v4910_v42 = vor.u32 %v5145_v16, %v4907_v44  ;;  %v6509_v62 = vor.u32 %v5071_v34, %v4609_v10  ;;  %v5140_v36 = vld [vmem:[#allocation2 + $0x194] sm:$0xf] }
 0x2d4   : > { %1274 = vst [vmem:[#allocation2 + $0x134] sm:$0x33] %v1268_v28  ;;  %1755 = vrot.lane.b32.xlu0 %v6071_v23, %s8319_s30  ;;  %1720 = vrot.lane.b32.xlu2 %v6057_v58, %s8320_s26  ;;  %v4866_v21 = vor.u32 %v5137_v4, %v4865_v56  ;;  %v1364_v41 = vrot.slane %v1359_v1, 4  ;;  %v4887_v23 = vld [vmem:[#allocation2 + $0x1a4] sm:$0xf0]  ;;  %v8323_v4 = vrot.slane %v5856_v50, 4 }
 0x2d5   : > { %1341 = vst [vmem:[#allocation2 + $0x140] sm:$0x33] %v1334_v13  ;;  %1960 = vrot.lane.b32.xlu1 %v6153_v6, %s5403_s21  ;;  %v4613_v6 = vld [vmem:[%s8001_s1 + $0x30] sm:$0xf]  ;;  %v5073_v16 = vld [vmem:[%s8001_s1 + $0x38] sm:$0xf0]  ;;  %v4890_v13 = vor.u32 %v5140_v36, %v4887_v23 }
 0x2d6   : > { %3442 = vmatpush.bf16.msrb.mxu2 %v4930_v46  ;;  %8321 = vst [vmem:[#allocation48_spill] sm:$0xff] %v6509_v62  ;;  %3298 = vmatpush.bf16.msra.mxu1 %v4866_v21  ;;  %v6511_v46 = vpop.permute.xlu0 %1394  ;;  %v6523_v34 = vor.u32 %v5073_v16, %v4613_v6  ;;  %v4867_v16 = vld [vmem:[#allocation2 + $0x17c] sm:$0xf0]  ;;  %v2488_v23 = vld [vmem:[%s5517_s7 + $0x16] sm:$0xf]  ;;  %s202_s30 = sand.u32 1, %s5364_s16  }
 0x2d7   : > { %5189 = vmatpush.bf16.msrb.mxu3 %v4866_v21  ;;  %v8176_v9 = vrot.slane %v6511_v46, 4  ;;  %v1092_v58 = vpop.permute.xlu2 %1091  ;;  %v6514_v35 = vpop.permute.xlu1 %1360  ;;  %s5191_s26 = smul.u32 640, %s202_s30 }
 0x2d8   : > { %v1095_v44 = vrot.slane %v1092_v58, 4  ;;  %v8177_v10 = vrot.slane %v6514_v35, 4  ;;  %8322 = vst [vmem:[#allocation49_spill] sm:$0xff] %v6523_v34  ;;  %3261 = vmatmul.bf16.gmra.mxu0 %v6523_v34 }
 0x2d9   : > { %v1401_v28 = vsel %vm234_vm1, %v1398_v51, %v8176_v9  ;;  %5024 = vmatmul.msk.bf16.gmra.mxu2 %vm1864_vm13, %v6509_v62 }
 0x2da   : > { %3443 = vmatpush.bf16.msrb.mxu2 %v4910_v42  ;;  %v1402_v56 = vsel %vm753_vm15, %v6415_v57, %v1401_v28  ;;  %v1098_v21 = vsel %vm234_vm1, %v8323_v4, %v1095_v44  ;;  %v1100_v42 = vsel %vm581_vm11, %v1092_v58, %v1095_v44  ;;  %v1367_v6 = vsel %vm234_vm1, %v1364_v41, %v8177_v10  ;;  %v5135_v57 = vld [vmem:[#allocation2 + $0x16c] sm:$0xf] }
 0x2db   : > { %1409 = vst [vmem:[#allocation2 + $0x154] sm:$0x33] %v1402_v56  ;;  %v1099_v51 = vsel %vm581_vm11, %v5856_v50, %v1098_v21  ;;  %v1369_v36 = vsel %vm8174_vm7, %v1359_v1, %v1367_v6  ;;  %v6548_v41 = vld.sshfl [vmem:[#allocation1 + $0x10] sm:$0xff pattern:$0x75643120]  ;;  %v4870_v58 = vor.u32 %v5135_v57, %v4867_v16  ;;  %v8178_v50 = vrot.slane %v6456_v2, 4 }
 0x2dc   : > { %1105 = vst [vmem:[#allocation2 + $0xf8] sm:$0xcc] %v1099_v51  ;;  %1600 = vrot.lane.b32.xlu0 %v5999_v54, %s8304_s29  ;;  %1824 = vrot.lane.b32.xlu2 %v6103_v48, %s8324_s5  ;;  %v8326_v48 = vrot.slane %v5896_v12, 4  ;;  %v5074_v57 = vld [vmem:[%s8001_s1 + $0x40] sm:$0xf0]  ;;  %vm8339_vm7 = vcmask 187392  }
 0x2dd   : > { %1106 = vst [vmem:[#allocation2 + $0x100] sm:$0xc] %v1100_v42  ;;  %1789 = vrot.lane.b32.xlu1 %v6087_v38, %s8325_s11  ;;  %v8327_v42 = vrot.slane %v5782_v7, 4  ;;  %vm8340_vm12 = vmmov %vm8339_vm7  ;;  %s8385_s29 = smov 28  }
 0x2de   : > { %3444 = vmatpush.bf16.msrb.mxu2 %v4890_v13  ;;  %1376 = vst [vmem:[#allocation2 + $0x140] sm:$0xcc] %v1369_v36  ;;  %v1193_v1 = vpop.permute.xlu0 %1192  ;;  %v4621_v36 = vld [vmem:[%s8001_s1 + $0x38] sm:$0xf] }
 0x2df   : > { %v1196_v44 = vrot.slane %v1193_v1, 4  ;;  %v920_v28 = vpop.permute.xlu2 %919  ;;  %v1427_v13 = vpop.permute.xlu1 %1426  ;;  %2494 = vst [vmem:[#allocation1 + $0x11] ss:$2 sm:$0xff] %v2488_v23 }
 0x2e0   : > { %v923_v54 = vrot.slane %v920_v28, 4  ;;  %v1432_v56 = vrot.slane %v1427_v13, 4 }
 0x2e1   : > { %v1200_v4 = vsel %vm234_vm1, %v8326_v48, %v1196_v44  ;;  %v1202_v21 = vsel %vm1198_vm4, %v1193_v1, %v1196_v44  ;;  %v6581_v1 = vor.u32 %v5074_v57, %v4621_v36 }
 0x2e2   : > { %3445 = vmatpush.bf16.msrb.mxu2 %v4870_v58  ;;  %v1201_v38 = vsel %vm1198_vm4, %v5896_v12, %v1200_v4  ;;  %1208 = vst [vmem:[#allocation2 + $0x128] sm:$0x3] %v1202_v21  ;;  %v927_v6 = vsel %vm234_vm1, %v8327_v42, %v923_v54  ;;  %v929_v16 = vsel %vm925_vm6, %v920_v28, %v923_v54  ;;  %v8330_v58 = vld [vmem:[#allocation32_spill] sm:$0xff]  ;;  %v8333_v21 = vld [vmem:[#allocation23_spill] sm:$0xff] }
 0x2e3   : > { %v1435_v51 = vsel %vm234_vm1, %v1432_v56, %v8178_v50  ;;  %1207 = vst [vmem:[#allocation2 + $0x120] sm:$0x33] %v1201_v38  ;;  %v928_v12 = vsel %vm925_vm6, %v5782_v7, %v927_v6  ;;  %v5430_v56 = vmov 0   ;;  %v8334_v38 = vrot.slane %v8333_v21, 4 }
 0x2e4   : > { %v1436_v23 = vsel %vm787_vm0, %v1427_v13, %v1435_v51  ;;  %934 = vst [vmem:[#allocation2 + $0xd0] sm:$0x33] %v928_v12  ;;  %1463 = vrot.lane.b32.xlu0 %v5976_v32, %s5398_s9  ;;  %1669 = vrot.lane.b32.xlu2 %v6017_v47, %s8328_s6  ;;  %v4625_v32 = vld [vmem:[%s8001_s1 + $0x48] sm:$0xf]  ;;  %v5076_v47 = vld [vmem:[%s8001_s1 + $0x50] sm:$0xf0] }
 0x2e5   : > { %935 = vst [vmem:[#allocation2 + $0xd8] sm:$0x3] %v929_v16  ;;  %1635 = vrot.lane.b32.xlu1 %v8330_v58, %s8329_s24  ;;  %5299 = vset.pattern.permute.xlu0 %v5430_v56  ;;  %v6589_v4 = vor.u32 %v5076_v47, %v4625_v32  ;;  %v8335_v51 = vld [vmem:[#allocation18_spill] sm:$0xff]  ;;  %v5125_v32 = vld [vmem:[#allocation2 + $0x11c] sm:$0xf]  ;;  %s8344_s6 = smov 22  }
 0x2e6   : > { %8331 = vst [vmem:[#allocation32_spill] sm:$0xff] %v6581_v1  ;;  %v1295_v44 = vpop.permute.xlu0 %1294  ;;  %5301 = vset.pattern.permute.xlu2 %v5430_v56  ;;  %5300 = vset.pattern.permute.xlu1 %v5430_v56  ;;  %v8336_v36 = vrot.slane %v8335_v51, 4  ;;  %v4827_v47 = vld [vmem:[#allocation2 + $0x12c] sm:$0xf0]  ;;  %s8357_s9 = smov 46  }
 0x2e7   : > { %1443 = vst [vmem:[#allocation2 + $0x154] sm:$0xcc] %v1436_v23  ;;  %v1298_v28 = vrot.slane %v1295_v44, 4  ;;  %v1024_v54 = vpop.permute.xlu2 %1023  ;;  %v1228_v7 = vpop.permute.xlu1 %1227  ;;  %v8337_v23 = vld [vmem:[#allocation22_spill] sm:$0xff] }
 0x2e8   : > { %v1027_v13 = vrot.slane %v1024_v54, 4  ;;  %v1231_v48 = vrot.slane %v1228_v7, 4  ;;  %8332 = vst [vmem:[#allocation50_spill] sm:$0xff] %v6589_v4  ;;  %v8338_v58 = vrot.slane %v8337_v23, 4  ;;  %3266 = vmatmul.bf16.gmra.mxu0 %v6589_v4 }
 0x2e9   : > { %v1301_v42 = vsel %vm234_vm1, %v8334_v38, %v1298_v28  ;;  %v1303_v6 = vsel %vm718_vm14, %v1295_v44, %v1298_v28  ;;  %5025 = vmatmul.msk.bf16.gmra.mxu2 %vm1864_vm13, %v6581_v1  ;;  %v5066_v44 = vld [vmem:[%s8001_s1 + $0x4] sm:$0xf]  ;;  %v4591_v28 = vld [vmem:[%s8001_s1 + $0xc] sm:$0xf0]  ;;  %v4663_v38 = vld [vmem:[%s8001_s1 + $0x9c] sm:$0xf0] }
 0x2ea   : > { %v1302_v16 = vsel %vm718_vm14, %v8333_v21, %v1301_v42  ;;  %1309 = vst [vmem:[#allocation2 + $0x13c] sm:$0xc] %v1303_v6  ;;  %v1031_v57 = vsel %vm234_vm1, %v8336_v36, %v1027_v13  ;;  %v1033_v12 = vsel %vm1029_vm9, %v1024_v54, %v1027_v13  ;;  %v1234_v56 = vsel %vm234_vm1, %v8338_v58, %v1231_v48  ;;  %v5084_v13 = vld [vmem:[%s8001_s1 + $0x94] sm:$0xf]  ;;  %v5130_v36 = vld [vmem:[#allocation2 + $0x144] sm:$0xf] }
 0x2eb   : > { %1308 = vst [vmem:[#allocation2 + $0x134] sm:$0xcc] %v1302_v16  ;;  %v1032_v21 = vsel %vm1029_vm9, %v8335_v51, %v1031_v57  ;;  %v1235_v54 = vsel %vm8339_vm7, %v8337_v23, %v1234_v56  ;;  %v1236_v42 = vsel %vm8340_vm12, %v1228_v7, %v1231_v48  ;;  %v8342_v6 = vld [vmem:[#allocation30_spill] sm:$0xff]  ;;  %v8343_v16 = vld [vmem:[#allocation29_spill] sm:$0xff]  ;;  %v8345_v57 = vld [vmem:[#allocation28_spill] sm:$0xff]  ;;  %v6630_v50 = vor.u32 %v5066_v44, %v4591_v28 }
 0x2ec   : > { %1038 = vst [vmem:[#allocation2 + $0xe4] sm:$0xcc] %v1032_v21  ;;  %1566 = vrot.lane.b32.xlu0 %v8342_v6, %s8341_s10  ;;  %1531 = vrot.lane.b32.xlu2 %v8343_v16, %s8310_s22  ;;  %v4845_v51 = vld [vmem:[#allocation2 + $0x140] sm:$0xf]  ;;  %v4830_v6 = vor.u32 %v5125_v32, %v4827_v47  ;;  %v6632_v16 = vor.u32 %v5084_v13, %v4663_v38  ;;  %vm8349_vm12 = vcmask 72704   ;;  %v8351_v47 = vld [vmem:[#allocation14_spill] sm:$0xff] }
 0x2ed   : > { %1039 = vst [vmem:[#allocation2 + $0xec] sm:$0xc] %v1033_v12  ;;  %1497 = vrot.lane.b32.xlu1 %v8345_v57, %s8344_s6  ;;  %v5120_v57 = vld [vmem:[#allocation2 + $0xf4] sm:$0xf]  ;;  %vm8350_vm7 = vmmov %vm8349_vm12  ;;  %v8352_v44 = vrot.slane %v8351_v47, 4  ;;  %vm8355_vm9 = vcmask 121856  }
 0x2ee   : > { %v5132_v23 = vld [vmem:[#allocation2 + $0x150] sm:$0xf0]  ;;  %v4847_v58 = vld [vmem:[#allocation2 + $0x154] sm:$0xf0]  ;;  %1241 = vst [vmem:[#allocation2 + $0x120] sm:$0xcc] %v1235_v54  ;;  %v1125_v21 = vpop.permute.xlu0 %1124 }
 0x2ef   : > { %v4846_v56 = vor.u32 %v5132_v23, %v4845_v51  ;;  %v4850_v9 = vor.u32 %v5130_v36, %v4847_v58  ;;  %1242 = vst [vmem:[#allocation2 + $0x128] sm:$0xc] %v1236_v42  ;;  %v1128_v7 = vrot.slane %v1125_v21, 4  ;;  %v851_v48 = vpop.permute.xlu2 %850  ;;  %v1058_v10 = vpop.permute.xlu1 %1057  ;;  %v8347_v54 = vld [vmem:[#allocation20_spill] sm:$0xff]  ;;  %v8353_v38 = vld [vmem:[#allocation19_spill] sm:$0xff]  ;;  %s8372_s6 = smov 34  }
 0x2f0   : > { %8346 = vst [vmem:[#allocation23_spill] sm:$0xff] %v6630_v50  ;;  %v854_v12 = vrot.slane %v851_v48, 4  ;;  %v1061_v5 = vrot.slane %v1058_v10, 4  ;;  %v8348_v51 = vrot.slane %v8347_v54, 4  ;;  %v8354_v23 = vrot.slane %v8353_v38, 4  ;;  %s8374_s22 = smov 14  }
 0x2f1   : > { %3299 = vmatpush.bf16.msra.mxu1 %v4846_v56  ;;  %5190 = vmatpush.bf16.msrb.mxu3 %v4846_v56  ;;  %v1133_v42 = vsel %vm8349_vm12, %v1125_v21, %v1128_v7  ;;  %v4633_v58 = vld [vmem:[%s8001_s1 + $0x50] sm:$0xf]  ;;  %v5077_v56 = vld [vmem:[%s8001_s1 + $0x58] sm:$0xf0]  ;;  %vm8356_vm12 = vmmov %vm8355_vm9 }
 0x2f2   : > { %3446 = vmatpush.bf16.msrb.mxu2 %v4850_v9  ;;  %v1131_v36 = vsel %vm234_vm1, %v8348_v51, %v1128_v7  ;;  %1139 = vst [vmem:[#allocation2 + $0x114] sm:$0x3] %v1133_v42  ;;  %v858_v28 = vsel %vm234_vm1, %v8352_v44, %v854_v12  ;;  %v860_v13 = vsel %vm856_vm3, %v851_v48, %v854_v12  ;;  %v4835_v12 = vld [vmem:[#allocation2 + $0x134] sm:$0xf0]  ;;  %v5115_v51 = vld [vmem:[#allocation2 + $0xcc] sm:$0xf] }
 0x2f3   : > { %v1132_v32 = vsel %vm8350_vm7, %v8347_v54, %v1131_v36  ;;  %v1064_v9 = vsel %vm234_vm1, %v8354_v23, %v1061_v5  ;;  %v859_v21 = vsel %vm856_vm3, %v8351_v47, %v858_v28  ;;  %v4810_v48 = vor.u32 %v5120_v57, %v4807_v59  ;;  %v4787_v36 = vld [vmem:[#allocation2 + $0xdc] sm:$0xf0]  ;;  %866 = vst [vmem:[#allocation2 + $0xc4] sm:$0x3] %v860_v13  ;;  %v5110_v47 = vld [vmem:[#allocation2 + $0xa4] sm:$0xf] }
 0x2f4   : > { %1138 = vst [vmem:[#allocation2 + $0x10c] sm:$0x33] %v1132_v32  ;;  %v1065_v7 = vsel %vm8355_vm9, %v8353_v38, %v1064_v9  ;;  %3300 = vmatmul.bf16.vlgmr.msra.gmra.mxu1 %v6630_v50  ;;  %3330 = vmatmul.bf16.vlgmr.msrb.gmra.mxu3 %v6632_v16  ;;  %v1066_v54 = vsel %vm8356_vm12, %v1058_v10, %v1061_v5  ;;  %v4637_v13 = vld [vmem:[%s8001_s1 + $0x60] sm:$0xf]  ;;  %v5079_v9 = vld [vmem:[%s8001_s1 + $0x68] sm:$0xf0] }
 0x2f5   : > { %3390 = vmatpush.bf16.msra.mxu3 %v4830_v6  ;;  %v5128_v6 = vld [vmem:[#allocation2 + $0x130] sm:$0xf0]  ;;  %865 = vst [vmem:[#allocation2 + $0xbc] sm:$0x33] %v859_v21  ;;  %2470 = vrot.lane.b32.xlu0 %v6548_v41, %s8357_s9  ;;  %v4833_v42 = vld [vmem:[#allocation2 + $0x120] sm:$0xf]  ;;  %v6666_v57 = vor.u32 %v5077_v56, %v4633_v58  ;;  %v4790_v28 = vor.u32 %v5115_v51, %v4787_v36 }
 0x2f6   : > { %2436 = vrot.lane.b32.xlu2 %v6484_v26, %s8358_s12  ;;  %2401 = vrot.lane.b32.xlu1 %v6441_v43, %s8359_s8  ;;  %v5126_v59 = vld [vmem:[#allocation2 + $0x124] sm:$0xf]  ;;  %1071 = vst [vmem:[#allocation2 + $0xf8] sm:$0x33] %v1065_v7  ;;  %v4834_v32 = vor.u32 %v5128_v6, %v4833_v42  ;;  %v955_v10 = vpop.permute.xlu0 %954  ;;  %v4767_v23 = vld [vmem:[#allocation2 + $0xb4] sm:$0xf0] }
 0x2f7   : > { %8360 = vst [vmem:[#allocation18_spill] sm:$0xff] %v6666_v57  ;;  %v4838_v5 = vor.u32 %v5126_v59, %v4835_v12  ;;  %v958_v41 = vrot.slane %v955_v10, 4  ;;  %v680_v44 = vpop.permute.xlu2 %679  ;;  %v1159_v26 = vpop.permute.xlu1 %1158  ;;  %v8361_v58 = vld [vmem:[#allocation16_spill] sm:$0xff]  ;;  %vm8363_vm7 = vcmask 7168   ;;  %v8366_v12 = vld [vmem:[#allocation9_spill] sm:$0xff]  ;;  %vm8370_vm12 = vcmask 48128  }
 0x2f8   : > { %1072 = vst [vmem:[#allocation2 + $0x100] sm:$0x3] %v1066_v54  ;;  %3537 = vmatpush.bf16.msrb.mxu1 %v4834_v32  ;;  %v683_v43 = vrot.slane %v680_v44, 4  ;;  %v1162_v38 = vrot.slane %v1159_v26, 4  ;;  %v8362_v56 = vrot.slane %v8361_v58, 4  ;;  %vm8365_vm9 = vmmov %vm8363_vm7  ;;  %v8367_v54 = vrot.slane %v8366_v12, 4 }
 0x2f9   : > { %3391 = vmatpush.bf16.msra.mxu3 %v4810_v48  ;;  %3684 = vmatpush.bf16.msra.mxu0 %v4838_v5  ;;  %v964_v7 = vsel %vm8363_vm7, %v955_v10, %v958_v41  ;;  %v6680_v48 = vor.u32 %v5079_v9, %v4637_v13  ;;  %v8368_v42 = vld [vmem:[#allocation21_spill] sm:$0xff]  ;;  %v2499_v5 = vld.sshfl [vmem:[#allocation1 + $0x10] sm:$0xff pattern:$0x75643120]  ;;  %v5105_v10 = vld [vmem:[#allocation2 + $0x7c] sm:$0xf]  ;;  %v4770_v9 = vor.u32 %v5110_v47, %v4767_v23 }
 0x2fa   : > { %v962_v21 = vsel %vm234_vm1, %v8362_v56, %v958_v41  ;;  %5026 = vmatmul.msk.bf16.gmra.mxu2 %vm1864_vm13, %v6666_v57  ;;  %970 = vst [vmem:[#allocation2 + $0xd8] sm:$0xc] %v964_v7  ;;  %v686_v51 = vsel %vm234_vm1, %v8367_v54, %v683_v43  ;;  %v688_v36 = vsel %vm374_vm5, %v680_v44, %v683_v43  ;;  %v8369_v59 = vrot.slane %v8368_v42, 4  ;;  %v4747_v41 = vld [vmem:[#allocation2 + $0x8c] sm:$0xf0]  ;;  %vm8371_vm7 = vmmov %vm8370_vm12  ;;  %v8373_v56 = vld [vmem:[#allocation25_spill] sm:$0xff] }
 0x2fb   : > { %8364 = vst [vmem:[#allocation22_spill] sm:$0xff] %v6680_v48  ;;  %v963_v6 = vsel %vm8365_vm9, %v8361_v58, %v962_v21  ;;  %v5069_v58 = vld [vmem:[%s8001_s1 + $0x1c] sm:$0xf]  ;;  %v4603_v44 = vld [vmem:[%s8001_s1 + $0x24] sm:$0xf0]  ;;  %3271 = vmatmul.bf16.gmra.mxu0 %v6680_v48  ;;  %v1168_v43 = vsel %vm8371_vm7, %v1159_v26, %v1162_v38  ;;  %v8375_v21 = vld [vmem:[#allocation24_spill] sm:$0xff] }
 0x2fc   : > { %v1166_v32 = vsel %vm234_vm1, %v8369_v59, %v1162_v38  ;;  %969 = vst [vmem:[#allocation2 + $0xd0] sm:$0xcc] %v963_v6  ;;  %v5087_v47 = vld [vmem:[%s8001_s1 + $0xac] sm:$0xf]  ;;  %v4675_v23 = vld [vmem:[%s8001_s1 + $0xb4] sm:$0xf0]  ;;  %v6714_v54 = vor.u32 %v5069_v58, %v4603_v44 }
 0x2fd   : > { %3392 = vmatpush.bf16.msra.mxu3 %v4790_v28  ;;  %v687_v28 = vsel %vm374_vm5, %v8366_v12, %v686_v51  ;;  %v1167_v13 = vsel %vm8370_vm12, %v8368_v42, %v1166_v32  ;;  %1362 = vrot.lane.b32.xlu0 %v8373_v56, %s8372_s6  ;;  %694 = vst [vmem:[#allocation2 + $0x88] sm:$0xc] %v688_v36  ;;  %s8376_s12 = smov 40   ;;  %v5100_v32 = vld [vmem:[#allocation2 + $0x54] sm:$0xf]  ;;  %v8377_v56 = vld [vmem:[#allocation12_spill] sm:$0xff] }
 0x2fe   : > { %693 = vst [vmem:[#allocation2 + $0x80] sm:$0xcc] %v687_v28  ;;  %1327 = vrot.lane.b32.xlu2 %v8375_v21, %s8374_s22  ;;  %2505 = vrot.lane.b32.xlu1 %v2499_v5, %s8376_s12  ;;  %v782_v26 = vpop.permute.xlu0 %781  ;;  %v4750_v12 = vor.u32 %v5105_v10, %v4747_v41  ;;  %v6716_v51 = vor.u32 %v5087_v47, %v4675_v23  ;;  %v4727_v28 = vld [vmem:[#allocation2 + $0x64] sm:$0xf0]  ;;  %v8378_v36 = vrot.slane %v8377_v56, 4  ;;  %v8379_v41 = vld [vmem:[#allocation7_spill] sm:$0xff] }
 0x2ff   : > { %1173 = vst [vmem:[#allocation2 + $0x10c] sm:$0xcc] %v1167_v13  ;;  %v785_v38 = vrot.slane %v782_v26, 4  ;;  %v576_v7 = vpop.permute.xlu2 %575  ;;  %v989_v6 = vpop.permute.xlu1 %988  ;;  %v3978_v13 = vld [vmem:[%s8002_s2] sm:$0xff]  ;;  %v8380_v58 = vrot.slane %v8379_v41, 4  ;;  %v8381_v21 = vld [vmem:[#allocation17_spill] sm:$0xff] }
 0x300   : > { %1174 = vst [vmem:[#allocation2 + $0x114] sm:$0xc] %v1168_v43  ;;  %v579_v42 = vrot.slane %v576_v7, 4  ;;  %v992_v59 = vrot.slane %v989_v6, 4  ;;  %v8382_v47 = vrot.slane %v8381_v21, 4  ;;  %vm8383_vm9 = vcmask 1031168  }
 0x301   : > { %3393 = vmatpush.bf16.msra.mxu3 %v4770_v9  ;;  %v789_v9 = vsel %vm234_vm1, %v8378_v36, %v785_v38  ;;  %v791_v5 = vsel %vm787_vm0, %v782_v26, %v785_v38  ;;  %v4645_v26 = vld [vmem:[%s8001_s1 + $0x68] sm:$0xf]  ;;  %v5080_v38 = vld [vmem:[%s8001_s1 + $0x70] sm:$0xf0]  ;;  %vm8384_vm12 = vmmov %vm8383_vm9  ;;  %s7301_s9 = scalar_lea.vmem [#allocation3], %s5191_s26  ;;  %s5193_s8 = smul.u32 640, %s5372_s18 }
 0x302   : > { %v790_v10 = vsel %vm787_vm0, %v8377_v56, %v789_v9  ;;  %797 = vst [vmem:[#allocation2 + $0xb0] sm:$0x3] %v791_v5  ;;  %v583_v44 = vsel %vm234_vm1, %v8380_v58, %v579_v42  ;;  %v585_v43 = vsel %vm581_vm11, %v576_v7, %v579_v42  ;;  %v996_v23 = vsel %vm234_vm1, %v8382_v47, %v992_v59  ;;  %v5095_v42 = vld [vmem:[#allocation2 + $0x2c] sm:$0xf]  ;;  %v4707_v36 = vld [vmem:[#allocation2 + $0x3c] sm:$0xf0] }
 0x303   : > { %796 = vst [vmem:[#allocation2 + $0xa8] sm:$0x33] %v790_v10  ;;  %v997_v56 = vsel %vm8383_vm9, %v8381_v21, %v996_v23  ;;  %v4730_v7 = vor.u32 %v5100_v32, %v4727_v28  ;;  %v998_v9 = vsel %vm8384_vm12, %v989_v6, %v992_v59  ;;  %v8386_v5 = vld [vmem:[#allocation27_spill] sm:$0xff]  ;;  %v4813_v10 = vld [vmem:[#allocation2 + $0xf8] sm:$0xf]  ;;  %v6751_v47 = vor.u32 %v5080_v38, %v4645_v26  ;;  %s4504_s5 = scalar_lea.hbm %s8004_s4, %s5193_s8  ;;  %s4505_s11 = sshll.u32 %s7301_s9, 4  ;;  %s4506_s11 = int_to_ptr.vmem [resolvable:$true] %s4505_s11 }
 0x304   : > { %3305 = vmatmul.bf16.gmra.mxu1 %v6714_v54  ;;  %3335 = vmatmul.bf16.gmra.mxu3 %v6716_v51  ;;  %v5121_v58 = vld [vmem:[#allocation2 + $0xfc] sm:$0xf]  ;;  %591 = vst [vmem:[#allocation2 + $0x74] sm:$0x3] %v585_v43  ;;  %v5090_v6 = vld [vmem:[#allocation2 + $0x4] sm:$0xf] }
 0x305   : > { %3394 = vmatpush.bf16.msra.mxu3 %v4750_v12  ;;  %v584_v12 = vsel %vm581_vm11, %v8379_v41, %v583_v44  ;;  %3996 = vperm.xlu0 %5299, %v3978_v13   ;;  %v8388_v41 = vld [vmem:[#allocation26_spill] sm:$0xff]  ;;  %8389 = vst [vmem:[#allocation30_spill] sm:$0xff] %v6751_v47  ;;  %v4649_v43 = vld [vmem:[%s8001_s1 + $0x78] sm:$0xf]  ;;  %v4687_v26 = vld [vmem:[#allocation2 + $0x14] sm:$0xf0] }
 0x306   : > { %590 = vst [vmem:[#allocation2 + $0x6c] sm:$0x33] %v584_v12  ;;  %1430 = vrot.lane.b32.xlu2 %v8386_v5, %s8385_s29  ;;  %1396 = vrot.lane.b32.xlu1 %v8388_v41, %s8387_s13  ;;  %v5123_v44 = vld [vmem:[#allocation2 + $0x108] sm:$0xf0]  ;;  %v4815_v21 = vld [vmem:[#allocation2 + $0x10c] sm:$0xf0]  ;;  %v886_v23 = vpop.permute.xlu0 %885  ;;  %v4710_v5 = vor.u32 %v5095_v42, %v4707_v36 }
 0x307   : > { %1003 = vst [vmem:[#allocation2 + $0xe4] sm:$0x33] %v997_v56  ;;  %v4814_v32 = vor.u32 %v5123_v44, %v4813_v10  ;;  %v4818_v28 = vor.u32 %v5121_v58, %v4815_v21  ;;  %v889_v59 = vrot.slane %v886_v23, 4  ;;  %v2300_v13 = vpop.permute.xlu2 %2299  ;;  %v817_v12 = vpop.permute.xlu1 %816  ;;  %v5082_v38 = vld [vmem:[%s8001_s1 + $0x80] sm:$0xf0]  ;;  %v8390_v56 = vld [vmem:[#allocation15_spill] sm:$0xff] }
 0x308   : > { %1004 = vst [vmem:[#allocation2 + $0xec] sm:$0x3] %v998_v9  ;;  %v820_v41 = vrot.slane %v817_v12, 4  ;;  %v8391_v10 = vrot.slane %v8390_v56, 4  ;;  %vm8392_vm11 = vcmask 56320   ;;  %v3983_v42 = vld [vmem:[%s8002_s2 + $0x28] sm:$0xff]  ;;  %v6771_v44 = vor.u32 %v5082_v38, %v4649_v43 }
 0x309   : > { %3395 = vmatpush.bf16.msra.mxu3 %v4730_v7  ;;  %3538 = vmatpush.bf16.msrb.mxu1 %v4814_v32  ;;  %v2303_v7 = vrot.slane %v2300_v13, 4  ;;  %v895_v58 = vsel %vm8392_vm11, %v886_v23, %v889_v59  ;;  %v3980_v36 = vld [vmem:[%s8002_s2 + $0x10] sm:$0xff]  ;;  %vm8394_vm7 = vmmov %vm8392_vm11  ;;  %vm8395_vm9 = vcmask 244736   ;;  %v8396_v23 = vld [vmem:[#allocation13_spill] sm:$0xff]  ;;  %s4507_s7 = sshll.u32 %s4504_s5, 4  ;;  %s4491_s18 = scalar_lea.sflag [#allocation4], %s202_s30  ;;  %s4508_s7 = int_to_ptr.hbm [resolvable:$true] %s4507_s7 }
 0x30a   : > { %3685 = vmatpush.bf16.msra.mxu0 %v4818_v28  ;;  %v893_v9 = vsel %vm234_vm1, %v8391_v10, %v889_v59  ;;  %5027 = vmatmul.msk.bf16.gmra.mxu2 %vm1864_vm13, %v6751_v47  ;;  %8393 = vst [vmem:[#allocation29_spill] sm:$0xff] %v6771_v44  ;;  %v8397_v59 = vrot.slane %v8396_v23, 4  ;;  %v3979_v10 = vld [vmem:[%s8002_s2 + $0x8] sm:$0xff]  ;;  %vm8398_vm12 = vmmov %vm8395_vm9  ;;  %s5316_s29 = sshra.s32 %s4508_s7, 4  ;;  %s5322_s22 = scalar_lea.hbm %s8004_s4, 1280  ;;  %s5317_s29 = int_to_ptr.hbm [resolvable:$true] %s5316_s29 }
 0x30b   : > { %v894_v21 = vsel %vm8394_vm7, %v8390_v56, %v893_v9  ;;  %901 = vst [vmem:[#allocation2 + $0xc4] sm:$0xc] %v895_v58  ;;  %v2306_v32 = vsel %vm234_vm1, %v2302_v52, %v2303_v7  ;;  %v2308_v28 = vsel %vm8395_vm9, %v2300_v13, %v2303_v7  ;;  %v4690_v56 = vor.u32 %v5090_v6, %v4687_v26  ;;  %v5072_v52 = vld [vmem:[%s8001_s1 + $0x34] sm:$0xf]  ;;  %v4615_v13 = vld [vmem:[%s8001_s1 + $0x3c] sm:$0xf0]  ;;  %p5323_p1 = scmp.lt.s32.totalorder %s5317_s29, %s8004_s4 }
 0x30c   : > { %900 = vst [vmem:[#allocation2 + $0xbc] sm:$0xcc] %v894_v21  ;;  %v2307_v43 = vsel %vm8398_vm12, %v6254_v3, %v2306_v32  ;;  %3276 = vmatmul.bf16.gmra.mxu0 %v6771_v44  ;;  %v826_v7 = vsel %vm822_vm2, %v817_v12, %v820_v41  ;;  %v4793_v3 = vld [vmem:[#allocation2 + $0xd0] sm:$0xf]  ;;  %v5116_v9 = vld [vmem:[#allocation2 + $0xd4] sm:$0xf] }
 0x30d   : > { %3396 = vmatpush.bf16.msra.mxu3 %v4710_v5  ;;  %v824_v5 = vsel %vm234_vm1, %v8397_v59, %v820_v41  ;;  %2313 = vst [vmem:[#allocation2 + $0x260] sm:$0xcc] %v2307_v43  ;;  %4021 = vperm.xlu0 %5299, %v3983_v42   ;;  %v6797_v43 = vor.u32 %v5072_v52, %v4615_v13  ;;  %v8399_v42 = vld [vmem:[#allocation10_spill] sm:$0xff]  ;;  %v3981_v52 = vld [vmem:[%s8002_s2 + $0x18] sm:$0xff]  ;;  %vm8408_vm7 = vcmask 72704   ;;  %vm8414_vm12 = vcmask 195584  }
 0x30e   : > { %v825_v38 = vsel %vm822_vm2, %v8396_v23, %v824_v5  ;;  %4006 = vperm.xlu2 %5301, %v3980_v36   ;;  %2314 = vst [vmem:[#allocation2 + $0x268] sm:$0xc] %v2308_v28  ;;  %4001 = vperm.xlu1 %5300, %v3979_v10   ;;  %v5118_v6 = vld [vmem:[#allocation2 + $0xe0] sm:$0xf0]  ;;  %v4795_v26 = vld [vmem:[#allocation2 + $0xe4] sm:$0xf0]  ;;  %v713_v32 = vpop.permute.xlu0 %712  ;;  %vm8409_vm9 = vmmov %vm8408_vm7 }
 0x30f   : > { %831 = vst [vmem:[#allocation2 + $0xa8] sm:$0xcc] %v825_v38  ;;  %v4794_v58 = vor.u32 %v5118_v6, %v4793_v3  ;;  %v4798_v21 = vor.u32 %v5116_v9, %v4795_v26  ;;  %v716_v23 = vrot.slane %v713_v32, 4  ;;  %v2130_v59 = vpop.permute.xlu2 %2129  ;;  %v645_v5 = vpop.permute.xlu1 %644  ;;  %v8400_v36 = vrot.slane %v8399_v42, 4  ;;  %v3986_v38 = vld [vmem:[%s8002_s2 + $0x40] sm:$0xff]  ;;  %s5318_s13 = scalar_lea.hbm %s5317_s29, 640 }
 0x310   : > { %832 = vst [vmem:[#allocation2 + $0xb0] sm:$0xc] %v826_v7  ;;  %v2133_v12 = vrot.slane %v2130_v59, 4  ;;  %v648_v41 = vrot.slane %v645_v5, 4  ;;  %v8401_v9 = vld [vmem:[#allocation8_spill] sm:$0xff]  ;;  %p5319_p12 = scmp.ne.s32.totalorder %s5317_s29, %s5318_s13  ;;  %p5324_p2 = scmp.lt.s32.totalorder %s5322_s22, %s5318_s13 }
 0x311   : > { %3397 = vmatpush.bf16.msra.mxu3 %v4690_v56  ;;  %3539 = vmatpush.bf16.msrb.mxu1 %v4794_v58  ;;  %v720_v28 = vsel %vm234_vm1, %v8400_v36, %v716_v23  ;;  %v722_v10 = vsel %vm718_vm14, %v713_v32, %v716_v23  ;;  %v3982_v56 = vld [vmem:[%s8002_s2 + $0x20] sm:$0xff]  ;;  %v8402_v6 = vrot.slane %v8401_v9, 4 }
 0x312   : > { %3686 = vmatpush.bf16.msra.mxu0 %v4798_v21  ;;  %v721_v13 = vsel %vm718_vm14, %v8399_v42, %v720_v28  ;;  %728 = vst [vmem:[#allocation2 + $0x9c] sm:$0x3] %v722_v10  ;;  %v2136_v7 = vsel %vm234_vm1, %v2132_v30, %v2133_v12  ;;  %v2138_v3 = vsel %vm1333_vm10, %v2130_v59, %v2133_v12  ;;  %v4657_v58 = vld [vmem:[%s8001_s1 + $0x80] sm:$0xf]  ;;  %v5083_v21 = vld [vmem:[%s8001_s1 + $0x88] sm:$0xf0]  ;;  %p5320_p13 = pnand %p5319_p12, %p5497_p4  ;;  %p5325_p3 = por %p5324_p2, %p5323_p1 }
 0x313   : > { %v652_v26 = vsel %vm234_vm1, %v8402_v6, %v648_v41  ;;  %727 = vst [vmem:[#allocation2 + $0x94] sm:$0x33] %v721_v13  ;;  %v2137_v32 = vsel %vm1333_vm10, %v6203_v45, %v2136_v7  ;;  %vm8403_vm14 = vcmask 187392   ;;  %v5113_v23 = vld [vmem:[#allocation2 + $0xb8] sm:$0xf0]  ;;  %v6834_v28 = vor.u32 %v5083_v21, %v4657_v58  ;;  %v3985_v58 = vld [vmem:[%s8002_s2 + $0x38] sm:$0xff] }
 0x314   : > { %v653_v30 = vsel %vm8403_vm14, %v8401_v9, %v652_v26  ;;  %3310 = vmatmul.bf16.gmra.mxu1 %v6797_v43  ;;  %3398 = vmatmul.bf16.vlgmr.msra.gmra.mxu3 %v6392_v40  ;;  %v4775_v59 = vld [vmem:[#allocation2 + $0xbc] sm:$0xf0]  ;;  %2143 = vst [vmem:[#allocation2 + $0x238] sm:$0x33] %v2137_v32  ;;  %vm8404_vm11 = vmmov %vm8403_vm14  ;;  %p5321_p0 = pneg %p5320_p13 }
 0x315   : > { %v654_v12 = vsel %vm8404_vm11, %v645_v5, %v648_v41  ;;  %4036 = vperm.xlu0 %5299, %v3986_v38   ;;  %2144 = vst [vmem:[#allocation2 + $0x240] sm:$0x3] %v2138_v3  ;;  %v8406_v41 = vld [vmem:[#allocation6_spill] sm:$0xff]  ;;  %v3989_v3 = vld [vmem:[%s8002_s2 + $0x58] sm:$0xff]  ;;  %vm8415_vm14 = vmmov %vm8414_vm12  ;;  %vm8418_vm11 = vcmask 293888  }
 0x316   : > { %4016 = vperm.xlu2 %5301, %v3982_v56   ;;  %4011 = vperm.xlu1 %5300, %v3981_v52   ;;  %v4773_v42 = vld [vmem:[#allocation2 + $0xa8] sm:$0xf]  ;;  %v5111_v36 = vld [vmem:[#allocation2 + $0xac] sm:$0xf]  ;;  %8405 = vst [vmem:[#allocation28_spill] sm:$0xff] %v6834_v28  ;;  %v611_v13 = vpop.permute.xlu0 %610  ;;  %v8407_v38 = vrot.slane %v8406_v41, 4  ;;  %p5326_p5 = pnand %p5325_p3, %p5321_p0 }
 0x317   : > { %659 = vst [vmem:[#allocation2 + $0x80] sm:$0x33] %v653_v30  ;;  %v4774_v45 = vor.u32 %v5113_v23, %v4773_v42  ;;  %v4778_v10 = vor.u32 %v5111_v36, %v4775_v59  ;;  %v614_v7 = vrot.slane %v611_v13, 4  ;;  %v2233_v9 = vpop.permute.xlu2 %2232  ;;  %v748_v6 = vpop.permute.xlu1 %747  ;;  %v8410_v23 = vld [vmem:[#allocation11_spill] sm:$0xff]  ;;  %v3984_v42 = vld [vmem:[%s8002_s2 + $0x30] sm:$0xff] }
 0x318   : > { %660 = vst [vmem:[#allocation2 + $0x88] sm:$0x3] %v654_v12  ;;  %v2236_v26 = vrot.slane %v2233_v9, 4  ;;  %v751_v5 = vrot.slane %v748_v6, 4  ;;  %v8411_v59 = vrot.slane %v8410_v23, 4 }
 0x319   : > { %3540 = vmatpush.bf16.msrb.mxu1 %v4774_v45  ;;  %3687 = vmatpush.bf16.msra.mxu0 %v4778_v10  ;;  %v618_v56 = vsel %vm234_vm1, %v8407_v38, %v614_v7  ;;  %v620_v52 = vsel %vm8408_vm7, %v611_v13, %v614_v7  ;;  %v5075_v10 = vld [vmem:[%s8001_s1 + $0x4c] sm:$0xf]  ;;  %v4627_v13 = vld [vmem:[%s8001_s1 + $0x54] sm:$0xf0]  ;;  %v8413_v38 = vrot.slane %v6301_v31, 4  ;;  %vm8419_vm7 = vmmov %vm8418_vm11 }
 0x31a   : > { %5028 = vmatmul.msk.bf16.gmra.mxu2 %vm1864_vm13, %v6834_v28  ;;  %v619_v21 = vsel %vm8409_vm9, %v8406_v41, %v618_v56  ;;  %626 = vst [vmem:[#allocation2 + $0x74] sm:$0xc] %v620_v52  ;;  %v2239_v32 = vsel %vm234_vm1, %v2235_v25, %v2236_v26  ;;  %v2241_v30 = vsel %vm1537_vm8, %v2233_v9, %v2236_v26 }
 0x31b   : > { %v755_v12 = vsel %vm234_vm1, %v8411_v59, %v751_v5  ;;  %625 = vst [vmem:[#allocation2 + $0x6c] sm:$0xcc] %v619_v21  ;;  %v2240_v36 = vsel %vm1537_vm8, %v6251_v0, %v2239_v32  ;;  %v757_v25 = vsel %vm753_vm15, %v748_v6, %v751_v5  ;;  %v6873_v41 = vor.u32 %v5075_v10, %v4627_v13  ;;  %v3987_v21 = vld [vmem:[%s8002_s2 + $0x48] sm:$0xff] }
 0x31c   : > { %v756_v45 = vsel %vm753_vm15, %v8410_v23, %v755_v12  ;;  %5031 = vmatmul.msk.bf16.vlgmr.msrb.gmra.mxu0 %vm1864_vm13, %v6445_v33  ;;  %2246 = vst [vmem:[#allocation2 + $0x24c] sm:$0xcc] %v2240_v36  ;;  %v8417_v12 = vrot.slane %v6269_v18, 4  ;;  %v4669_v36 = vld [vmem:[%s8001_s1 + $0x98] sm:$0xf] }
 0x31d   : > { %4051 = vperm.xlu0 %5299, %v3989_v3   ;;  %2247 = vst [vmem:[#allocation2 + $0x254] sm:$0xc] %v2241_v30  ;;  %v3992_v3 = vld [vmem:[%s8002_s2 + $0x70] sm:$0xff]  ;;  %v8416_v30 = vrot.slane %v6171_v15, 4 }
 0x31e   : > { %4031 = vperm.xlu2 %5301, %v3985_v58   ;;  %4026 = vperm.xlu1 %5300, %v3984_v42   ;;  %762 = vst [vmem:[#allocation2 + $0x94] sm:$0xcc] %v756_v45  ;;  %v2333_v0 = vpop.permute.xlu0 %2332  ;;  %v3988_v58 = vld [vmem:[%s8002_s2 + $0x50] sm:$0xff]  ;;  %v5086_v45 = vld [vmem:[%s8001_s1 + $0xa0] sm:$0xf0] }
 0x31f   : > { %763 = vst [vmem:[#allocation2 + $0x9c] sm:$0xc] %v757_v25  ;;  %v2336_v7 = vrot.slane %v2333_v0, 4  ;;  %v2063_v9 = vpop.permute.xlu2 %2062  ;;  %v2266_v26 = vpop.permute.xlu1 %2265  ;;  %v4753_v13 = vld [vmem:[#allocation2 + $0x80] sm:$0xf] }
 0x320   : > { %8412 = vst [vmem:[#allocation20_spill] sm:$0xff] %v6873_v41  ;;  %v2066_v6 = vrot.slane %v2063_v9, 4  ;;  %v2269_v5 = vrot.slane %v2266_v26, 4 }
 0x321   : > { %v2340_v56 = vsel %vm234_vm1, %v8413_v38, %v2336_v7  ;;  %v2342_v52 = vsel %vm8414_vm12, %v2333_v0, %v2336_v7  ;;  %v5106_v0 = vld [vmem:[#allocation2 + $0x84] sm:$0xf]  ;;  %vm8427_vm12 = vcmask 523264  }
 0x322   : > { %v2341_v32 = vsel %vm8415_vm14, %v6301_v31, %v2340_v56  ;;  %2348 = vst [vmem:[#allocation2 + $0x27c] sm:$0x3] %v2342_v52  ;;  %v2069_v23 = vsel %vm234_vm1, %v8416_v30, %v2066_v6  ;;  %v2071_v59 = vsel %vm1198_vm4, %v2063_v9, %v2066_v6  ;;  %v2272_v42 = vsel %vm234_vm1, %v8417_v12, %v2269_v5  ;;  %v5103_v56 = vld [vmem:[#allocation2 + $0x68] sm:$0xf0]  ;;  %v4735_v52 = vld [vmem:[#allocation2 + $0x6c] sm:$0xf0]  ;;  %vm8428_vm14 = vmmov %vm8427_vm12 }
 0x323   : > { %2347 = vst [vmem:[#allocation2 + $0x274] sm:$0x33] %v2341_v32  ;;  %v2070_v31 = vsel %vm1198_vm4, %v6171_v15, %v2069_v23  ;;  %v2273_v25 = vsel %vm8418_vm11, %v6269_v18, %v2272_v42  ;;  %v2274_v10 = vsel %vm8419_vm7, %v2266_v26, %v2269_v5  ;;  %v6910_v6 = vor.u32 %v5086_v45, %v4669_v36  ;;  %v4713_v45 = vld [vmem:[#allocation2 + $0x30] sm:$0xf] }
 0x324   : > { %3315 = vmatmul.bf16.gmra.mxu1 %v6873_v41  ;;  %3403 = vmatmul.bf16.gmra.mxu3 %v6460_v14  ;;  %2076 = vst [vmem:[#allocation2 + $0x224] sm:$0x33] %v2070_v31  ;;  %v8421_v23 = vrot.slane %v6221_v37, 4  ;;  %vm8422_vm4 = vcmask 64512   ;;  %v5098_v31 = vld [vmem:[#allocation2 + $0x40] sm:$0xf0] }
 0x325   : > { %4066 = vperm.xlu0 %5299, %v3992_v3   ;;  %2077 = vst [vmem:[#allocation2 + $0x22c] sm:$0x3] %v2071_v59  ;;  %v5108_v7 = vld [vmem:[#allocation2 + $0x90] sm:$0xf0]  ;;  %v4755_v9 = vld [vmem:[#allocation2 + $0x94] sm:$0xf0]  ;;  %vm8423_vm9 = vmmov %vm8422_vm4 }
 0x326   : > { %4046 = vperm.xlu2 %5301, %v3988_v58   ;;  %4041 = vperm.xlu1 %5300, %v3987_v21   ;;  %8420 = vst [vmem:[#allocation14_spill] sm:$0xff] %v6910_v6  ;;  %v4754_v15 = vor.u32 %v5108_v7, %v4753_v13  ;;  %v4758_v18 = vor.u32 %v5106_v0, %v4755_v9  ;;  %v2164_v38 = vpop.permute.xlu0 %2163  ;;  %v4733_v58 = vld [vmem:[#allocation2 + $0x58] sm:$0xf]  ;;  %v5101_v21 = vld [vmem:[#allocation2 + $0x5c] sm:$0xf]  ;;  %v8426_v9 = vrot.slane %v6315_v60, 4 }
 0x327   : > { %2279 = vst [vmem:[#allocation2 + $0x260] sm:$0x33] %v2273_v25  ;;  %v2167_v32 = vrot.slane %v2164_v38, 4  ;;  %v1894_v30 = vpop.permute.xlu2 %1893  ;;  %v2368_v26 = vpop.permute.xlu1 %2367  ;;  %v4734_v42 = vor.u32 %v5103_v56, %v4733_v58  ;;  %v4738_v36 = vor.u32 %v5101_v21, %v4735_v52  ;;  %v5078_v58 = vld [vmem:[%s8001_s1 + $0x64] sm:$0xf]  ;;  %vm8434_vm7 = vcmask 998400  }
 0x328   : > { %2280 = vst [vmem:[#allocation2 + $0x268] sm:$0x3] %v2274_v10  ;;  %3541 = vmatpush.bf16.msrb.mxu1 %v4754_v15  ;;  %3688 = vmatpush.bf16.msra.mxu0 %v4758_v18  ;;  %v1897_v5 = vrot.slane %v1894_v30, 4  ;;  %v2371_v3 = vrot.slane %v2368_v26, 4  ;;  %v8424_v10 = vld [vmem:[#allocation40_spill] sm:$0xff]  ;;  %v4155_v18 = vld [vmem:[%s8003_s3 + $0x8] sm:$0xff] }
 0x329   : > { %v2171_v59 = vsel %vm234_vm1, %v8421_v23, %v2167_v32  ;;  %v2173_v12 = vsel %vm8422_vm4, %v2164_v38, %v2167_v32  ;;  %v8425_v13 = vrot.slane %v8424_v10, 4  ;;  %v3991_v38 = vld [vmem:[%s8002_s2 + $0x68] sm:$0xff]  ;;  %v3990_v32 = vld [vmem:[%s8002_s2 + $0x60] sm:$0xff]  ;;  %v4693_v21 = vld [vmem:[#allocation2 + $0x8] sm:$0xf] }
 0x32a   : > { %5029 = vmatmul.msk.bf16.gmra.mxu2 %vm1864_vm13, %v6910_v6  ;;  %v2172_v25 = vsel %vm8423_vm9, %v6221_v37, %v2171_v59  ;;  %2179 = vst [vmem:[#allocation2 + $0x240] sm:$0xc] %v2173_v12  ;;  %v1902_v7 = vsel %vm856_vm3, %v1894_v30, %v1897_v5  ;;  %v2375_v15 = vsel %vm234_vm1, %v8426_v9, %v2371_v3  ;;  %v5096_v37 = vld [vmem:[#allocation2 + $0x34] sm:$0xf]  ;;  %v4715_v30 = vld [vmem:[#allocation2 + $0x44] sm:$0xf0]  ;;  %vm8436_vm4 = vmmov %vm8434_vm7 }
 0x32b   : > { %v1900_v0 = vsel %vm234_vm1, %v8425_v13, %v1897_v5  ;;  %2178 = vst [vmem:[#allocation2 + $0x238] sm:$0xcc] %v2172_v25  ;;  %v2376_v52 = vsel %vm8427_vm12, %v6315_v60, %v2375_v15  ;;  %v2377_v5 = vsel %vm8428_vm14, %v2368_v26, %v2371_v3  ;;  %v4639_v60 = vld [vmem:[%s8001_s1 + $0x6c] sm:$0xf0]  ;;  %v5093_v23 = vld [vmem:[#allocation2 + $0x18] sm:$0xf0]  ;;  %v4714_v59 = vor.u32 %v5098_v31, %v4713_v45 }
 0x32c   : > { %v1901_v56 = vsel %vm856_vm3, %v8424_v10, %v1900_v0  ;;  %5032 = vmatmul.msk.bf16.gmra.mxu0 %vm1864_vm13, %v6509_v62  ;;  %3542 = vmatpush.bf16.msrb.mxu1 %v4734_v42  ;;  %1908 = vst [vmem:[#allocation2 + $0x1f0] sm:$0xc] %v1902_v7  ;;  %v4718_v12 = vor.u32 %v5096_v37, %v4715_v30  ;;  %v5091_v3 = vld [vmem:[#allocation2 + $0xc] sm:$0xf]  ;;  %v4695_v42 = vld [vmem:[#allocation2 + $0x1c] sm:$0xf0] }
 0x32d   : > { %1907 = vst [vmem:[#allocation2 + $0x1e8] sm:$0xcc] %v1901_v56  ;;  %3689 = vmatpush.bf16.msra.mxu0 %v4738_v36  ;;  %4177 = vperm.xlu0 %5299, %v4155_v18   ;;  %v6949_v13 = vor.u32 %v5078_v58, %v4639_v60  ;;  %v8429_v9 = vrot.slane %v6136_v39, 4  ;;  %vm8430_vm3 = vcmask 982016   ;;  %v4694_v31 = vor.u32 %v5093_v23, %v4693_v21  ;;  %v4154_v37 = vld [vmem:[%s8003_s3] sm:$0xff] }
 0x32e   : > { %4061 = vperm.xlu2 %5301, %v3991_v38   ;;  %2382 = vst [vmem:[#allocation2 + $0x274] sm:$0xcc] %v2376_v52  ;;  %4056 = vperm.xlu1 %5300, %v3990_v32   ;;  %v1994_v26 = vpop.permute.xlu0 %1993  ;;  %v4698_v18 = vor.u32 %v5091_v3, %v4695_v42  ;;  %v4158_v38 = vld [vmem:[%s8003_s3 + $0x20] sm:$0xff]  ;;  %vm8431_vm11 = vmmov %vm8430_vm3  ;;  %v8432_v52 = vld [vmem:[#allocation35_spill] sm:$0xff]  ;;  %v8435_v58 = vrot.slane %v6215_v24, 4  ;;  %vm8437_vm9 = vcmask 392192  }
 0x32f   : > { %2383 = vst [vmem:[#allocation2 + $0x27c] sm:$0xc] %v2377_v5  ;;  %v1997_v36 = vrot.slane %v1994_v26, 4  ;;  %v1721_v25 = vpop.permute.xlu2 %1720  ;;  %v2198_v10 = vpop.permute.xlu1 %2197  ;;  %v8433_v32 = vrot.slane %v8432_v52, 4  ;;  %v4681_v21 = vld [vmem:[%s8001_s1 + $0xb0] sm:$0xf]  ;;  %vm8438_vm12 = vmmov %vm8437_vm9 }
 0x330   : > { %3543 = vmatpush.bf16.msrb.mxu1 %v4714_v59  ;;  %v1724_v0 = vrot.slane %v1721_v25, 4  ;;  %v2201_v7 = vrot.slane %v2198_v10, 4  ;;  %v5089_v23 = vld [vmem:[%s8001_s1 + $0xb8] sm:$0xf0]  ;;  %v5001_v42 = vld [vmem:[#allocation2 + $0x268] sm:$0xf] }
 0x331   : > { %3690 = vmatpush.bf16.msra.mxu0 %v4718_v12  ;;  %v2001_v15 = vsel %vm234_vm1, %v8429_v9, %v1997_v36  ;;  %v2003_v45 = vsel %vm8430_vm3, %v1994_v26, %v1997_v36  ;;  %v3993_v12 = vld [vmem:[%s8002_s2 + $0x78] sm:$0xff]  ;;  %v4993_v26 = vld [vmem:[#allocation2 + $0x260] sm:$0xf]  ;;  %v5166_v36 = vld [vmem:[#allocation2 + $0x264] sm:$0xf]  ;;  %vm8443_vm14 = vcmask 850944  }
 0x332   : > { %v2002_v56 = vsel %vm8431_vm11, %v6136_v39, %v2001_v15  ;;  %2009 = vst [vmem:[#allocation2 + $0x218] sm:$0x3] %v2003_v45  ;;  %v1728_v30 = vsel %vm234_vm1, %v8433_v32, %v1724_v0  ;;  %v1730_v5 = vsel %vm8434_vm7, %v1721_v25, %v1724_v0  ;;  %v2205_v60 = vsel %vm234_vm1, %v8435_v58, %v2201_v7 }
 0x333   : > { %2008 = vst [vmem:[#allocation2 + $0x210] sm:$0x33] %v2002_v56  ;;  %v1729_v39 = vsel %vm8436_vm4, %v8432_v52, %v1728_v30  ;;  %v2206_v59 = vsel %vm8437_vm9, %v6215_v24, %v2205_v60  ;;  %v2207_v3 = vsel %vm8438_vm12, %v2198_v10, %v2201_v7  ;;  %v6986_v0 = vor.u32 %v5089_v23, %v4681_v21  ;;  %v8441_v60 = vld [vmem:[#allocation38_spill] sm:$0xff] }
 0x334   : > { %3320 = vmatmul.bf16.gmra.mxu1 %v6949_v13  ;;  %3408 = vmatmul.bf16.gmra.mxu3 %v6523_v34  ;;  %1735 = vst [vmem:[#allocation2 + $0x1c0] sm:$0x33] %v1729_v39  ;;  %v8442_v21 = vrot.slane %v8441_v60, 4  ;;  %vm8446_vm3 = vcmask 261120   ;;  %vm8452_vm7 = vcmask 244736   ;;  %vm8458_vm4 = vcmask 949248  }
 0x335   : > { %3544 = vmatpush.bf16.msrb.mxu1 %v4694_v31  ;;  %3691 = vmatpush.bf16.msra.mxu0 %v4698_v18  ;;  %1736 = vst [vmem:[#allocation2 + $0x1c8] sm:$0x3] %v1730_v5  ;;  %v5168_v24 = vld [vmem:[#allocation2 + $0x270] sm:$0xf0]  ;;  %v4995_v25 = vld [vmem:[#allocation2 + $0x274] sm:$0xf0]  ;;  %vm8447_vm11 = vmmov %vm8446_vm3 }
 0x336   : > { %4192 = vperm.xlu0 %5299, %v4158_v38   ;;  %4172 = vperm.xlu2 %5301, %v4154_v37   ;;  %8439 = vst [vmem:[#allocation19_spill] sm:$0xff] %v6986_v0  ;;  %v5169_v9 = vld [vmem:[#allocation2 + $0x278] sm:$0xf0]  ;;  %v4994_v15 = vor.u32 %v5168_v24, %v4993_v26  ;;  %v4998_v45 = vor.u32 %v5166_v36, %v4995_v25  ;;  %v2097_v56 = vpop.permute.xlu0 %2096  ;;  %v8440_v37 = vrot.slane %v6174_v27, 4  ;;  %v4157_v5 = vld [vmem:[%s8003_s3 + $0x18] sm:$0xff]  ;;  %v4156_v26 = vld [vmem:[%s8003_s3 + $0x10] sm:$0xff] }
 0x337   : > { %2212 = vst [vmem:[#allocation2 + $0x24c] sm:$0x33] %v2206_v59  ;;  %4071 = vperm.xlu1 %5300, %v3993_v12   ;;  %v5002_v52 = vor.u32 %v5169_v9, %v5001_v42  ;;  %v2100_v10 = vrot.slane %v2097_v56, 4  ;;  %v1825_v7 = vpop.permute.xlu2 %1824  ;;  %v2029_v31 = vpop.permute.xlu1 %2028  ;;  %v8444_v59 = vrot.slane %v6155_v20, 4  ;;  %v4981_v24 = vld [vmem:[#allocation2 + $0x240] sm:$0xf]  ;;  %vm8459_vm9 = vmmov %vm8458_vm4 }
 0x338   : > { %2213 = vst [vmem:[#allocation2 + $0x254] sm:$0x3] %v2207_v3  ;;  %3586 = vmatpush.bf16.msrb.mxu3 %v4994_v15  ;;  %v1828_v18 = vrot.slane %v1825_v7, 4  ;;  %v2032_v38 = vrot.slane %v2029_v31, 4  ;;  %v5081_v3 = vld [vmem:[%s8001_s1 + $0x7c] sm:$0xf] }
 0x339   : > { %3733 = vmatpush.bf16.msra.mxu1 %v4998_v45  ;;  %3880 = vmatpush.bf16.msrb.mxu0 %v5002_v52  ;;  %v2103_v32 = vsel %vm234_vm1, %v8440_v37, %v2100_v10  ;;  %v2105_v30 = vsel %vm374_vm5, %v2097_v56, %v2100_v10  ;;  %v4651_v25 = vld [vmem:[%s8001_s1 + $0x84] sm:$0xf0]  ;;  %v4973_v15 = vld [vmem:[#allocation2 + $0x238] sm:$0xf]  ;;  %v5161_v45 = vld [vmem:[#allocation2 + $0x23c] sm:$0xf] }
 0x33a   : > { %5030 = vmatmul.msk.bf16.gmra.mxu2 %vm1864_vm13, %v6986_v0  ;;  %v2104_v58 = vsel %vm374_vm5, %v6174_v27, %v2103_v32  ;;  %2111 = vst [vmem:[#allocation2 + $0x22c] sm:$0xc] %v2105_v30  ;;  %v1832_v23 = vsel %vm234_vm1, %v8442_v21, %v1828_v18  ;;  %v1834_v39 = vsel %vm8443_vm14, %v1825_v7, %v1828_v18  ;;  %v4161_v27 = vld [vmem:[%s8003_s3 + $0x38] sm:$0xff]  ;;  %vm8445_vm5 = vmmov %vm8443_vm14  ;;  %vm8463_vm12 = vcmask 1031168  }
 0x33b   : > { %v2036_v12 = vsel %vm234_vm1, %v8444_v59, %v2032_v38  ;;  %2110 = vst [vmem:[#allocation2 + $0x224] sm:$0xcc] %v2104_v58  ;;  %v1833_v42 = vsel %vm8445_vm5, %v8441_v60, %v1832_v23  ;;  %v2038_v9 = vsel %vm8447_vm11, %v2029_v31, %v2032_v38  ;;  %v7025_v60 = vor.u32 %v5081_v3, %v4651_v25  ;;  %v4159_v25 = vld [vmem:[%s8003_s3 + $0x28] sm:$0xff]  ;;  %vm8464_vm14 = vmmov %vm8463_vm12 }
 0x33c   : > { %v2037_v36 = vsel %vm8446_vm3, %v6155_v20, %v2036_v12  ;;  %5033 = vmatmul.msk.bf16.gmra.mxu0 %vm1864_vm13, %v6581_v1  ;;  %1839 = vst [vmem:[#allocation2 + $0x1d4] sm:$0xcc] %v1833_v42  ;;  %v8450_v12 = vld [vmem:[#allocation34_spill] sm:$0xff]  ;;  %v8453_v42 = vld [vmem:[#allocation39_spill] sm:$0xff]  ;;  %vm8470_vm3 = vcmask 424960  }
 0x33d   : > { %1840 = vst [vmem:[#allocation2 + $0x1dc] sm:$0xc] %v1834_v39  ;;  %vm8473_vm11 = vmmov %vm8470_vm3 }
 0x33e   : > { %4187 = vperm.xlu2 %5301, %v4157_v5   ;;  %v5163_v56 = vld [vmem:[#allocation2 + $0x248] sm:$0xf0]  ;;  %v4975_v52 = vld [vmem:[#allocation2 + $0x24c] sm:$0xf0]  ;;  %4207 = vperm.xlu0 %5299, %v4161_v27   ;;  %2043 = vst [vmem:[#allocation2 + $0x210] sm:$0xcc] %v2037_v36  ;;  %v1927_v18 = vpop.permute.xlu0 %1926 }
 0x33f   : > { %4182 = vperm.xlu1 %5300, %v4156_v26   ;;  %v5164_v20 = vld [vmem:[#allocation2 + $0x250] sm:$0xf0]  ;;  %v4974_v10 = vor.u32 %v5163_v56, %v4973_v15  ;;  %v4978_v7 = vor.u32 %v5161_v45, %v4975_v52  ;;  %2044 = vst [vmem:[#allocation2 + $0x218] sm:$0xc] %v2038_v9  ;;  %v1930_v32 = vrot.slane %v1927_v18, 4  ;;  %v1670_v30 = vpop.permute.xlu2 %1669  ;;  %v1859_v58 = vpop.permute.xlu1 %1858  ;;  %v8448_v5 = vld [vmem:[#allocation41_spill] sm:$0xff] }
 0x340   : > { %v4982_v37 = vor.u32 %v5164_v20, %v4981_v24  ;;  %v1673_v31 = vrot.slane %v1670_v30, 4  ;;  %v1862_v38 = vrot.slane %v1859_v58, 4  ;;  %v8449_v21 = vrot.slane %v8448_v5, 4  ;;  %v4164_v9 = vld [vmem:[%s8003_s3 + $0x50] sm:$0xff] }
 0x341   : > { %3587 = vmatpush.bf16.msrb.mxu3 %v4974_v10  ;;  %3734 = vmatpush.bf16.msra.mxu1 %v4978_v7  ;;  %v1935_v39 = vsel %vm925_vm6, %v1927_v18, %v1930_v32  ;;  %v8451_v26 = vrot.slane %v8450_v12, 4  ;;  %v8454_v36 = vrot.slane %v8453_v42, 4  ;;  %v4160_v15 = vld [vmem:[%s8003_s3 + $0x30] sm:$0xff] }
 0x342   : > { %3881 = vmatpush.bf16.msrb.mxu0 %v4982_v37  ;;  %v1933_v23 = vsel %vm234_vm1, %v8449_v21, %v1930_v32  ;;  %1941 = vst [vmem:[#allocation2 + $0x204] sm:$0x3] %v1935_v39  ;;  %v1679_v27 = vsel %vm8452_vm7, %v1670_v30, %v1673_v31  ;;  %v5158_v52 = vld [vmem:[#allocation2 + $0x220] sm:$0xf0]  ;;  %v4955_v20 = vld [vmem:[#allocation2 + $0x224] sm:$0xf0]  ;;  %v1868_v10 = vsel %vm1864_vm13, %v1859_v58, %v1862_v38 }
 0x343   : > { %v1934_v59 = vsel %vm925_vm6, %v8448_v5, %v1933_v23  ;;  %v1677_v3 = vsel %vm234_vm1, %v8451_v26, %v1673_v31  ;;  %v1866_v24 = vsel %vm234_vm1, %v8454_v36, %v1862_v38  ;;  %vm8455_vm6 = vmmov %vm8452_vm7  ;;  %v5159_v7 = vld [vmem:[#allocation2 + $0x228] sm:$0xf0]  ;;  %1685 = vst [vmem:[#allocation2 + $0x1b4] sm:$0x3] %v1679_v27  ;;  %v8456_v26 = vld [vmem:[#allocation36_spill] sm:$0xff]  ;;  %vm8474_vm7 = vcmask 900096  }
 0x344   : > { %1940 = vst [vmem:[#allocation2 + $0x1fc] sm:$0x33] %v1934_v59  ;;  %v1678_v45 = vsel %vm8455_vm6, %v8450_v12, %v1677_v3  ;;  %v1867_v56 = vsel %vm1864_vm13, %v8453_v42, %v1866_v24  ;;  %3325 = vmatmul.bf16.gmra.mxu1 %v7025_v60  ;;  %3413 = vmatmul.bf16.gmra.mxu3 %v6589_v4  ;;  %v7056_v12 = vpop.f32.mrf.mxu0  ;;  %v8457_v3 = vrot.slane %v8456_v26, 4  ;;  %v8460_v24 = vrot.slane %v6458_v63, 4  ;;  %vm8475_vm6 = vmmov %vm8474_vm7 }
 0x345   : > { %1684 = vst [vmem:[#allocation2 + $0x1ac] sm:$0x33] %v1678_v45  ;;  %v4953_v18 = vld [vmem:[#allocation2 + $0x210] sm:$0xf]  ;;  %v5156_v37 = vld [vmem:[#allocation2 + $0x214] sm:$0xf] }
 0x346   : > { %4222 = vperm.xlu0 %5299, %v4164_v9   ;;  %4202 = vperm.xlu2 %5301, %v4160_v15   ;;  %1873 = vst [vmem:[#allocation2 + $0x1e8] sm:$0x33] %v1867_v56  ;;  %v4961_v32 = vld [vmem:[#allocation2 + $0x218] sm:$0xf]  ;;  %v4954_v30 = vor.u32 %v5158_v52, %v4953_v18  ;;  %v4958_v31 = vor.u32 %v5156_v37, %v4955_v20  ;;  %v1756_v5 = vpop.permute.xlu0 %1755  ;;  %v8461_v15 = vld [vmem:[#allocation42_spill] sm:$0xff]  ;;  %v4167_v52 = vld [vmem:[%s8003_s3 + $0x68] sm:$0xff] }
 0x347   : > { %4197 = vperm.xlu1 %5300, %v4159_v25   ;;  %1874 = vst [vmem:[#allocation2 + $0x1f0] sm:$0x3] %v1868_v10  ;;  %v4962_v21 = vor.u32 %v5159_v7, %v4961_v32  ;;  %v1759_v23 = vrot.slane %v1756_v5, 4  ;;  %v1532_v39 = vpop.permute.xlu2 %1531  ;;  %v1961_v59 = vpop.permute.xlu1 %1960  ;;  %v8462_v45 = vrot.slane %v8461_v15, 4  ;;  %v4163_v20 = vld [vmem:[%s8003_s3 + $0x48] sm:$0xff]  ;;  %v4162_v18 = vld [vmem:[%s8003_s3 + $0x40] sm:$0xff] }
 0x348   : > { %3588 = vmatpush.bf16.msrb.mxu3 %v4954_v30  ;;  %3735 = vmatpush.bf16.msra.mxu1 %v4958_v31  ;;  %v1535_v58 = vrot.slane %v1532_v39, 4  ;;  %v1964_v38 = vrot.slane %v1961_v59, 4  ;;  %v7090_v30 = vpop.f32.mrf.mxu3 }
 0x349   : > { %3882 = vmatpush.bf16.msrb.mxu0 %v4962_v21  ;;  %v1763_v27 = vsel %vm234_vm1, %v8457_v3, %v1759_v23  ;;  %v1765_v42 = vsel %vm8458_vm4, %v1756_v5, %v1759_v23 }
 0x34a   : > { %3447 = vmatmul.bf16.vlgmr.msrb.gmra.mxu2 %v6630_v50  ;;  %v1764_v36 = vsel %vm8459_vm9, %v8456_v26, %v1763_v27  ;;  %1771 = vst [vmem:[#allocation2 + $0x1c8] sm:$0xc] %v1765_v42  ;;  %v1539_v25 = vsel %vm234_vm1, %v8460_v24, %v1535_v58  ;;  %v1541_v9 = vsel %vm1537_vm8, %v1532_v39, %v1535_v58  ;;  %v8465_v26 = vld [vmem:[#allocation31_spill] sm:$0xff]  ;;  %v8469_v42 = vrot.slane %v6345_v17, 4 }
 0x34b   : > { %v1967_v56 = vsel %vm234_vm1, %v8462_v45, %v1964_v38  ;;  %1770 = vst [vmem:[#allocation2 + $0x1c0] sm:$0xcc] %v1764_v36  ;;  %v1540_v10 = vsel %vm1537_vm8, %v6458_v63, %v1539_v25  ;;  %v1969_v37 = vsel %vm8464_vm14, %v1961_v59, %v1964_v38  ;;  %v8466_v59 = vrot.slane %v8465_v26, 4  ;;  %v8471_v25 = vld [vmem:[#allocation37_spill] sm:$0xff]  ;;  %v4166_v45 = vld [vmem:[%s8003_s3 + $0x60] sm:$0xff] }
 0x34c   : > { %v1968_v7 = vsel %vm8463_vm12, %v8461_v15, %v1967_v56  ;;  %5034 = vmatmul.msk.bf16.gmra.mxu0 %vm1864_vm13, %v6666_v57  ;;  %1546 = vst [vmem:[#allocation2 + $0x184] sm:$0x33] %v1540_v10  ;;  %v7088_v32 = vpop.f32.mrf.mxu2  ;;  %v7092_v58 = vpop.f32.mrf.mxu0  ;;  %vm8467_vm8 = vcmask 293888   ;;  %v4165_v10 = vld [vmem:[%s8003_s3 + $0x58] sm:$0xff]  ;;  %vm8487_vm12 = vcmask 179200  }
 0x34d   : > { %1547 = vst [vmem:[#allocation2 + $0x18c] sm:$0x3] %v1541_v9  ;;  %vm8468_vm5 = vmmov %vm8467_vm8  ;;  %v8472_v9 = vrot.slane %v8471_v25, 4 }
 0x34e   : > { %4237 = vperm.xlu0 %5299, %v4167_v52   ;;  %4217 = vperm.xlu2 %5301, %v4163_v20   ;;  %1974 = vst [vmem:[#allocation2 + $0x1fc] sm:$0xcc] %v1968_v7  ;;  %v1601_v63 = vpop.permute.xlu0 %1600  ;;  %v4933_v20 = vld [vmem:[#allocation2 + $0x1e8] sm:$0xf]  ;;  %vm8488_vm14 = vmmov %vm8487_vm12 }
 0x34f   : > { %4212 = vperm.xlu1 %5300, %v4162_v18   ;;  %1975 = vst [vmem:[#allocation2 + $0x204] sm:$0xc] %v1969_v37  ;;  %v1604_v31 = vrot.slane %v1601_v63, 4  ;;  %v1790_v21 = vpop.permute.xlu1 %1789  ;;  %v4941_v37 = vld [vmem:[#allocation2 + $0x1f0] sm:$0xf] }
 0x350   : > { %v2437_v5 = vpop.permute.xlu2 %2436  ;;  %v1793_v39 = vrot.slane %v1790_v21, 4 }
 0x351   : > { %v2440_v23 = vrot.slane %v2437_v5, 4  ;;  %v1608_v38 = vsel %vm234_vm1, %v8466_v59, %v1604_v31  ;;  %v1610_v3 = vsel %vm8467_vm8, %v1601_v63, %v1604_v31  ;;  %v5151_v63 = vld [vmem:[#allocation2 + $0x1ec] sm:$0xf] }
 0x352   : > { %v1609_v27 = vsel %vm8468_vm5, %v8465_v26, %v1608_v38  ;;  %1616 = vst [vmem:[#allocation2 + $0x1a0] sm:$0x3] %v1610_v3  ;;  %v1797_v15 = vsel %vm234_vm1, %v8472_v9, %v1793_v39  ;;  %v1799_v7 = vsel %vm8475_vm6, %v1790_v21, %v1793_v39  ;;  %vm8494_vm5 = vcmask 474112  }
 0x353   : > { %v2444_v36 = vsel %vm234_vm1, %v8469_v42, %v2440_v23  ;;  %v2446_v24 = vsel %vm8470_vm3, %v2437_v5, %v2440_v23  ;;  %1615 = vst [vmem:[#allocation2 + $0x198] sm:$0x33] %v1609_v27  ;;  %v1798_v52 = vsel %vm8474_vm7, %v8471_v25, %v1797_v15  ;;  %v8476_v25 = vrot.slane %v6390_v19, 4  ;;  %vm8495_vm3 = vmmov %vm8494_vm5 }
 0x354   : > { %v2445_v56 = vsel %vm8473_vm11, %v6345_v17, %v2444_v36  ;;  %3418 = vmatmul.bf16.gmra.mxu3 %v6680_v48  ;;  %3545 = vmatmul.bf16.vlgmr.msrb.gmra.mxu1 %v6392_v40  ;;  %v7120_v18 = vpop.f32.mrf.mxu2  ;;  %2452 = vst [vmem:[#allocation2 + $0x290] sm:$0xc] %v2446_v24  ;;  %v7122_v36 = vpop.f32.mrf.mxu3  ;;  %vm8498_vm11 = vcmask 277504   ;;  %vm8501_vm6 = vcmask 326656  }
 0x355   : > { %2451 = vst [vmem:[#allocation2 + $0x288] sm:$0xcc] %v2445_v56  ;;  %v5153_v17 = vld [vmem:[#allocation2 + $0x1f8] sm:$0xf0]  ;;  %v4935_v31 = vld [vmem:[#allocation2 + $0x1fc] sm:$0xf0]  ;;  %v7124_v24 = vpop.f32.mrf.mxu0  ;;  %vm8499_vm7 = vmmov %vm8498_vm11 }
 0x356   : > { %4232 = vperm.xlu2 %5301, %v4166_v45   ;;  %1804 = vst [vmem:[#allocation2 + $0x1d4] sm:$0x33] %v1798_v52  ;;  %v5154_v5 = vld [vmem:[#allocation2 + $0x200] sm:$0xf0]  ;;  %v4934_v23 = vor.u32 %v5153_v17, %v4933_v20  ;;  %v4938_v26 = vor.u32 %v5151_v63, %v4935_v31  ;;  %v1464_v59 = vpop.permute.xlu0 %1463  ;;  %v8477_v56 = vrot.slane %v6396_v11, 4  ;;  %v4169_v63 = vld [vmem:[%s8003_s3 + $0x78] sm:$0xff] }
 0x357   : > { %4227 = vperm.xlu1 %5300, %v4165_v10   ;;  %1805 = vst [vmem:[#allocation2 + $0x1dc] sm:$0x3] %v1799_v7  ;;  %v4942_v38 = vor.u32 %v5154_v5, %v4941_v37  ;;  %v1467_v3 = vrot.slane %v1464_v59, 4  ;;  %v1636_v42 = vpop.permute.xlu1 %1635  ;;  %v8478_v10 = vld [vmem:[#allocation33_spill] sm:$0xff]  ;;  %v4921_v31 = vld [vmem:[#allocation2 + $0x1c8] sm:$0xf] }
 0x358   : > { %v1328_v27 = vpop.permute.xlu2 %1327  ;;  %3589 = vmatpush.bf16.msrb.mxu3 %v4934_v23  ;;  %3736 = vmatpush.bf16.msra.mxu1 %v4938_v26  ;;  %v1639_v39 = vrot.slane %v1636_v42, 4  ;;  %v8479_v7 = vrot.slane %v8478_v10, 4  ;;  %v4168_v5 = vld [vmem:[%s8003_s3 + $0x70] sm:$0xff] }
 0x359   : > { %v1331_v21 = vrot.slane %v1328_v27, 4  ;;  %3883 = vmatpush.bf16.msrb.mxu0 %v4942_v38  ;;  %v1470_v9 = vsel %vm234_vm1, %v8476_v25, %v1467_v3  ;;  %v1472_v15 = vsel %vm822_vm2, %v1464_v59, %v1467_v3  ;;  %v4913_v59 = vld [vmem:[#allocation2 + $0x1c0] sm:$0xf]  ;;  %v5146_v38 = vld [vmem:[#allocation2 + $0x1c4] sm:$0xf] }
 0x35a   : > { %3452 = vmatmul.bf16.gmra.mxu2 %v6714_v54  ;;  %v1471_v45 = vsel %vm822_vm2, %v6390_v19, %v1470_v9  ;;  %1478 = vst [vmem:[#allocation2 + $0x178] sm:$0x3] %v1472_v15  ;;  %v1643_v37 = vsel %vm234_vm1, %v8479_v7, %v1639_v39  ;;  %vm8480_vm2 = vcmask 269312  }
 0x35b   : > { %v1335_v52 = vsel %vm234_vm1, %v8477_v56, %v1331_v21  ;;  %v1337_v20 = vsel %vm1333_vm10, %v1328_v27, %v1331_v21  ;;  %1477 = vst [vmem:[#allocation2 + $0x170] sm:$0x33] %v1471_v45  ;;  %v1644_v19 = vsel %vm8480_vm2, %v8478_v10, %v1643_v37  ;;  %vm8481_vm4 = vmmov %vm8480_vm2 }
 0x35c   : > { %v1336_v17 = vsel %vm1333_vm10, %v6396_v11, %v1335_v52  ;;  %5035 = vmatmul.msk.bf16.gmra.mxu0 %vm1864_vm13, %v6751_v47  ;;  %v1645_v23 = vsel %vm8481_vm4, %v1636_v42, %v1639_v39  ;;  %v7153_v26 = vpop.f32.mrf.mxu2  ;;  %1343 = vst [vmem:[#allocation2 + $0x150] sm:$0x3] %v1337_v20  ;;  %v8482_v20 = vrot.slane %v6447_v61, 4  ;;  %vm8483_vm10 = vcmask 318464   ;;  %vm8502_vm2 = vmmov %vm8501_vm6 }
 0x35d   : > { %1342 = vst [vmem:[#allocation2 + $0x148] sm:$0x33] %v1336_v17  ;;  %v5148_v11 = vld [vmem:[#allocation2 + $0x1d0] sm:$0xf0]  ;;  %v4915_v3 = vld [vmem:[#allocation2 + $0x1d4] sm:$0xf0]  ;;  %v7155_v10 = vpop.f32.mrf.mxu0  ;;  %vm8484_vm9 = vmmov %vm8483_vm10 }
 0x35e   : > { %4247 = vperm.xlu2 %5301, %v4169_v63   ;;  %1650 = vst [vmem:[#allocation2 + $0x198] sm:$0xcc] %v1644_v19  ;;  %v5149_v27 = vld [vmem:[#allocation2 + $0x1d8] sm:$0xf0]  ;;  %v4914_v21 = vor.u32 %v5148_v11, %v4913_v59  ;;  %v4918_v25 = vor.u32 %v5146_v38, %v4915_v3  ;;  %v1567_v9 = vpop.permute.xlu0 %1566  ;;  %v8485_v17 = vrot.slane %v6456_v2, 4  ;;  %v7170_v59 = vpop.f32.mrf.mxu3 }
 0x35f   : > { %4242 = vperm.xlu1 %5300, %v4168_v5   ;;  %1651 = vst [vmem:[#allocation2 + $0x1a0] sm:$0xc] %v1645_v23  ;;  %v4922_v15 = vor.u32 %v5149_v27, %v4921_v31  ;;  %v1570_v45 = vrot.slane %v1567_v9, 4  ;;  %v1498_v52 = vpop.permute.xlu1 %1497  ;;  %v8486_v5 = vrot.slane %v6348_v53, 4  ;;  %v5143_v11 = vld [vmem:[#allocation2 + $0x1a8] sm:$0xf0] }
 0x360   : > { %v1431_v56 = vpop.permute.xlu2 %1430  ;;  %3590 = vmatpush.bf16.msrb.mxu3 %v4914_v21  ;;  %3737 = vmatpush.bf16.msra.mxu1 %v4918_v25  ;;  %v1501_v39 = vrot.slane %v1498_v52, 4  ;;  %v5144_v21 = vld [vmem:[#allocation2 + $0x1b0] sm:$0xf0]  ;;  %v4895_v25 = vld [vmem:[#allocation2 + $0x1ac] sm:$0xf0] }
 0x361   : > { %v1434_v42 = vrot.slane %v1431_v56, 4  ;;  %3884 = vmatpush.bf16.msrb.mxu0 %v4922_v15  ;;  %v1574_v7 = vsel %vm234_vm1, %v8482_v20, %v1570_v45  ;;  %v1576_v37 = vsel %vm8483_vm10, %v1567_v9, %v1570_v45 }
 0x362   : > { %v1575_v63 = vsel %vm8484_vm9, %v6447_v61, %v1574_v7  ;;  %1582 = vst [vmem:[#allocation2 + $0x18c] sm:$0xc] %v1576_v37  ;;  %v1505_v23 = vsel %vm234_vm1, %v8486_v5, %v1501_v39  ;;  %v1507_v3 = vsel %vm8488_vm14, %v1498_v52, %v1501_v39  ;;  %v8493_v5 = vrot.slane %v6295_v29, 4 }
 0x363   : > { %v1437_v19 = vsel %vm234_vm1, %v8485_v17, %v1434_v42  ;;  %v1439_v31 = vsel %vm787_vm0, %v1431_v56, %v1434_v42  ;;  %1581 = vst [vmem:[#allocation2 + $0x184] sm:$0xcc] %v1575_v63  ;;  %v1506_v61 = vsel %vm8487_vm12, %v6348_v53, %v1505_v23  ;;  %v8490_v63 = vrot.slane %v6359_v55, 4 }
 0x364   : > { %v1438_v38 = vsel %vm787_vm0, %v6456_v2, %v1437_v19  ;;  %3423 = vmatmul.bf16.gmra.mxu3 %v6771_v44  ;;  %3550 = vmatmul.bf16.gmra.mxu1 %v6460_v14  ;;  %v7179_v27 = vpop.f32.mrf.mxu2  ;;  %1445 = vst [vmem:[#allocation2 + $0x164] sm:$0xc] %v1439_v31  ;;  %vm8491_vm0 = vcmask 375808  }
 0x365   : > { %1444 = vst [vmem:[#allocation2 + $0x15c] sm:$0xcc] %v1438_v38  ;;  %v4893_v9 = vld [vmem:[#allocation2 + $0x198] sm:$0xf]  ;;  %v5141_v15 = vld [vmem:[#allocation2 + $0x19c] sm:$0xf]  ;;  %v7183_v39 = vpop.f32.mrf.mxu0  ;;  %vm8492_vm8 = vmmov %vm8491_vm0 }
 0x366   : > { %1512 = vst [vmem:[#allocation2 + $0x170] sm:$0xcc] %v1506_v61  ;;  %v4901_v2 = vld [vmem:[#allocation2 + $0x1a0] sm:$0xf]  ;;  %v4894_v45 = vor.u32 %v5143_v11, %v4893_v9  ;;  %v4898_v56 = vor.u32 %v5141_v15, %v4895_v25 }
 0x367   : > { %v2471_v53 = vpop.permute.xlu0 %2470  ;;  %1513 = vst [vmem:[#allocation2 + $0x178] sm:$0xc] %v1507_v3  ;;  %v4902_v42 = vor.u32 %v5144_v21, %v4901_v2  ;;  %v7200_v21 = vpop.f32.mrf.mxu3 }
 0x368   : > { %v2474_v20 = vrot.slane %v2471_v53, 4  ;;  %v7181_v7 = vpop.permute.xlu2 %4006  ;;  %v2402_v37 = vpop.permute.xlu1 %2401  ;;  %3591 = vmatpush.bf16.msrb.mxu3 %v4894_v45  ;;  %3738 = vmatpush.bf16.msra.mxu1 %v4898_v56  ;;  %8496 = vst [vmem:[#allocation9_spill] sm:$0xff] %v7200_v21 }
 0x369   : > { %8489 = vst [vmem:[#allocation16_spill] sm:$0xff] %v7181_v7  ;;  %v2405_v52 = vrot.slane %v2402_v37, 4  ;;  %3885 = vmatpush.bf16.msrb.mxu0 %v4902_v42  ;;  %v5139_v25 = vld [vmem:[#allocation2 + $0x188] sm:$0xf0] }
 0x36a   : > { %v2478_v17 = vsel %vm234_vm1, %v8490_v63, %v2474_v20  ;;  %v2480_v19 = vsel %vm8491_vm0, %v2471_v53, %v2474_v20  ;;  %3457 = vmatmul.bf16.gmra.mxu2 %v6797_v43  ;;  %v5138_v11 = vld [vmem:[#allocation2 + $0x180] sm:$0xf0]  ;;  %v4875_v3 = vld [vmem:[#allocation2 + $0x184] sm:$0xf0] }
 0x36b   : > { %v2479_v31 = vsel %vm8492_vm8, %v6359_v55, %v2478_v17  ;;  %2486 = vst [vmem:[#allocation2 + $0x2a4] sm:$0x3] %v2480_v19  ;;  %v2409_v23 = vsel %vm234_vm1, %v8493_v5, %v2405_v52  ;;  %v2411_v38 = vsel %vm8494_vm5, %v2402_v37, %v2405_v52  ;;  %v8497_v19 = vrot.slane %v6514_v35, 4 }
 0x36c   : > { %2485 = vst [vmem:[#allocation2 + $0x29c] sm:$0x33] %v2479_v31  ;;  %v2410_v61 = vsel %vm8495_vm3, %v6295_v29, %v2409_v23  ;;  %5036 = vmatmul.msk.bf16.gmra.mxu0 %vm1864_vm13, %v6834_v28  ;;  %v7202_v55 = vpop.f32.mrf.mxu2 }
 0x36d   : > { %2416 = vst [vmem:[#allocation2 + $0x288] sm:$0x33] %v2410_v61  ;;  %v4873_v9 = vld [vmem:[#allocation2 + $0x170] sm:$0xf]  ;;  %v5136_v15 = vld [vmem:[#allocation2 + $0x174] sm:$0xf]  ;;  %v7208_v17 = vpop.f32.mrf.mxu0 }
 0x36e   : > { %2417 = vst [vmem:[#allocation2 + $0x290] sm:$0x3] %v2411_v38  ;;  %v4881_v2 = vld [vmem:[#allocation2 + $0x178] sm:$0xf]  ;;  %v4874_v45 = vor.u32 %v5138_v11, %v4873_v9  ;;  %v4878_v56 = vor.u32 %v5136_v15, %v4875_v3  ;;  %v8500_v38 = vrot.slane %v6332_v22, 4 }
 0x36f   : > { %v1363_v53 = vpop.permute.xlu0 %1362  ;;  %v4882_v42 = vor.u32 %v5139_v25, %v4881_v2 }
 0x370   : > { %v1366_v29 = vrot.slane %v1363_v53, 4  ;;  %v7204_v20 = vpop.permute.xlu2 %4016  ;;  %v2506_v37 = vpop.permute.xlu1 %2505  ;;  %3592 = vmatpush.bf16.msrb.mxu3 %v4874_v45  ;;  %3739 = vmatpush.bf16.msra.mxu1 %v4878_v56 }
 0x371   : > { %v7206_v52 = vpop.f32.mrf.mxu1  ;;  %v2509_v63 = vrot.slane %v2506_v37, 4  ;;  %3886 = vmatpush.bf16.msrb.mxu0 %v4882_v42 }
 0x372   : > { %v1370_v31 = vsel %vm234_vm1, %v8497_v19, %v1366_v29  ;;  %v1372_v5 = vsel %vm8498_vm11, %v1363_v53, %v1366_v29 }
 0x373   : > { %v1371_v23 = vsel %vm8499_vm7, %v6514_v35, %v1370_v31  ;;  %1378 = vst [vmem:[#allocation2 + $0x150] sm:$0xc] %v1372_v5  ;;  %v2513_v61 = vsel %vm234_vm1, %v8500_v38, %v2509_v63  ;;  %v2515_v11 = vsel %vm8501_vm6, %v2506_v37, %v2509_v63  ;;  %v4841_v37 = vld [vmem:[#allocation2 + $0x128] sm:$0xf]  ;;  %v5129_v63 = vld [vmem:[#allocation2 + $0x138] sm:$0xf0] }
 0x374   : > { %1377 = vst [vmem:[#allocation2 + $0x148] sm:$0xcc] %v1371_v23  ;;  %v2514_v3 = vsel %vm8502_vm2, %v6332_v22, %v2513_v61  ;;  %3428 = vmatmul.bf16.gmra.mxu3 %v6370_v49  ;;  %3555 = vmatmul.bf16.gmra.mxu1 %v6523_v34  ;;  %v7224_v25 = vpop.f32.mrf.mxu2  ;;  %v8504_v22 = vrot.slane %v6511_v46, 4  ;;  %v5013_v31 = vld [vmem:[#allocation2 + $0x288] sm:$0xf]  ;;  %v4842_v61 = vor.u32 %v5129_v63, %v4841_v37 }
 0x375   : > { %2520 = vst [vmem:[#allocation2 + $0x29c] sm:$0xcc] %v2514_v3  ;;  %v7234_v53 = vpop.f32.mrf.mxu0 }
 0x376   : > { %2521 = vst [vmem:[#allocation2 + $0x2a4] sm:$0xc] %v2515_v11 }
 0x377   : > { %v7226_v35 = vpop.f32.mrf.mxu3  ;;  %v7228_v9 = vpop.permute.xlu0 %3996 }
 0x378   : > { %v7230_v15 = vpop.permute.xlu2 %4031  ;;  %v1397_v2 = vpop.permute.xlu1 %1396 }
 0x379   : > { %8503 = vst [vmem:[#allocation21_spill] sm:$0xff] %v7230_v15  ;;  %v7232_v45 = vpop.f32.mrf.mxu1  ;;  %v1400_v56 = vrot.slane %v1397_v2, 4 }
 0x37a   : > { %3462 = vmatmul.bf16.gmra.mxu2 %v6873_v41 }
 0x37b   : > { %v1403_v42 = vsel %vm234_vm1, %v8504_v22, %v1400_v56  ;;  %v1405_v29 = vsel %vm753_vm15, %v1397_v2, %v1400_v56  ;;  %v5124_v22 = vld [vmem:[#allocation2 + $0x110] sm:$0xf0]  ;;  %v4853_v63 = vld [vmem:[#allocation2 + $0x148] sm:$0xf]  ;;  %v5131_v47 = vld [vmem:[#allocation2 + $0x14c] sm:$0xf] }
 0x37c   : > { %v1404_v19 = vsel %vm753_vm15, %v6511_v46, %v1403_v42  ;;  %1411 = vst [vmem:[#allocation2 + $0x164] sm:$0x3] %v1405_v29  ;;  %v5173_v5 = vld [vmem:[#allocation2 + $0x298] sm:$0xf0]  ;;  %5037 = vmatmul.msk.bf16.gmra.mxu0 %vm1864_vm13, %v6910_v6  ;;  %v4821_v46 = vld [vmem:[#allocation2 + $0x100] sm:$0xf] }
 0x37d   : > { %1410 = vst [vmem:[#allocation2 + $0x15c] sm:$0x33] %v1404_v19  ;;  %v7245_v23 = vpop.f32.mrf.mxu2  ;;  %v5014_v38 = vor.u32 %v5173_v5, %v5013_v31  ;;  %v5021_v29 = vld [vmem:[#allocation2 + $0x290] sm:$0xf]  ;;  %v5174_v19 = vld [vmem:[#allocation2 + $0x2a0] sm:$0xf0]  ;;  %v7257_v6 = vpop.f32.mrf.mxu0  ;;  %v4822_v37 = vor.u32 %v5124_v22, %v4821_v46 }
 0x37e   : > { %v4801_v31 = vld [vmem:[#allocation2 + $0xd8] sm:$0xf]  ;;  %v5015_v5 = vld [vmem:[#allocation2 + $0x29c] sm:$0xf0]  ;;  %v5022_v57 = vor.u32 %v5174_v19, %v5021_v29  ;;  %v5109_v19 = vld [vmem:[#allocation2 + $0x98] sm:$0xf0] }
 0x37f   : > { %v7247_v11 = vpop.f32.mrf.mxu3  ;;  %3642 = vmatpush.bf16.msra.mxu2 %v5014_v38  ;;  %v7249_v3 = vpop.permute.xlu0 %4021  ;;  %v5119_v38 = vld [vmem:[#allocation2 + $0xe8] sm:$0xf0] }
 0x380   : > { %8505 = vst [vmem:[#allocation25_spill] sm:$0xff] %v7249_v3  ;;  %v7251_v2 = vpop.permute.xlu2 %4046  ;;  %v7253_v56 = vpop.permute.xlu1 %4001  ;;  %v4802_v22 = vor.u32 %v5119_v38, %v4801_v31 }
 0x381   : > { %8506 = vst [vmem:[#allocation24_spill] sm:$0xff] %v7251_v2  ;;  %v7255_v42 = vpop.f32.mrf.mxu1  ;;  %v5171_v2 = vld [vmem:[#allocation2 + $0x28c] sm:$0xf] }
 0x382   : > { %8507 = vst [vmem:[#allocation12_spill] sm:$0xff] %v7253_v56  ;;  %v5018_v41 = vor.u32 %v5171_v2, %v5015_v5 }
 0x383   : > { %3831 = vmatpush.bf16.msrb.mxu2 %v4842_v61 }
 0x384   : > { %3433 = vmatmul.bf16.gmra.mxu3 %v6423_v8  ;;  %3560 = vmatmul.bf16.gmra.mxu1 %v6589_v4  ;;  %v5133_v28 = vld [vmem:[#allocation2 + $0x158] sm:$0xf0]  ;;  %v4855_v61 = vld [vmem:[#allocation2 + $0x15c] sm:$0xf0] }
 0x385   : > { %v7261_v1 = vpop.f32.mrf.mxu2  ;;  %v4854_v62 = vor.u32 %v5133_v28, %v4853_v63  ;;  %v4858_v33 = vor.u32 %v5131_v47, %v4855_v61  ;;  %v4781_v47 = vld [vmem:[#allocation2 + $0xb0] sm:$0xf]  ;;  %v5114_v28 = vld [vmem:[#allocation2 + $0xc0] sm:$0xf0]  ;;  %v7274_v2 = vpop.f32.mrf.mxu0  ;;  %v5104_v61 = vld [vmem:[#allocation2 + $0x70] sm:$0xf0] }
 0x387   : > { %3832 = vmatpush.bf16.msrb.mxu2 %v4822_v37  ;;  %v3336_v21 = vpop.f32.mrf.mxu3  ;;  %3593 = vmatpush.bf16.msrb.mxu3 %v4854_v62  ;;  %v7263_v46 = vpop.permute.xlu0 %4036  ;;  %v3302_v62 = vadd.f32 %v7206_v52, %v7056_v12 }
 0x388   : > { %3740 = vmatpush.bf16.msra.mxu1 %v4858_v33  ;;  %v7266_v4 = vadd.f32 %v3336_v21, %v7170_v59  ;;  %v7268_v8 = vpop.permute.xlu2 %4061  ;;  %v7270_v29 = vpop.permute.xlu1 %4011  ;;  %v4782_v59 = vor.u32 %v5114_v28, %v4781_v47  ;;  %v4761_v21 = vld [vmem:[#allocation2 + $0x88] sm:$0xf]  ;;  %v4741_v28 = vld [vmem:[#allocation2 + $0x60] sm:$0xf] }
 0x389   : > { %8508 = vst [vmem:[#allocation7_spill] sm:$0xff] %v7268_v8  ;;  %v3308_v33 = vpop.f32.mrf.mxu1  ;;  %v4762_v63 = vor.u32 %v5109_v19, %v4761_v21  ;;  %v5099_v21 = vld [vmem:[#allocation2 + $0x48] sm:$0xf0] }
 0x38a   : > { %8509 = vst [vmem:[#allocation17_spill] sm:$0xff] %v7270_v29  ;;  %3467 = vmatmul.bf16.gmra.mxu2 %v6949_v13  ;;  %v3309_v52 = vadd.f32 %v3308_v33, %v7155_v10  ;;  %v4742_v33 = vor.u32 %v5104_v61, %v4741_v28  ;;  %v5094_v28 = vld [vmem:[#allocation2 + $0x20] sm:$0xf0] }
 0x38b   : > { %3789 = vmatpush.bf16.msra.mxu3 %v5018_v41  ;;  %3833 = vmatpush.bf16.msrb.mxu2 %v4802_v22 }
 0x38c   : > { %3936 = vmatpush.bf16.msrb.mxu1 %v5022_v57  ;;  %5038 = vmatmul.msk.bf16.gmra.mxu0 %vm1864_vm13, %v6986_v0  ;;  %v3351_v57 = vadd.f32 %v7088_v32, %v3302_v62  ;;  %v3358_v62 = vadd.f32 %v7179_v27, %v3309_v52 }
 0x38d   : > { %v7281_v41 = vpop.f32.mrf.mxu2  ;;  %v7296_v47 = vpop.f32.mrf.mxu0 }
 0x38e   : > { %v4074_v12 = vmul.f32 %v7228_v9, %v3351_v57  ;;  %v4089_v57 = vmul.f32 %v7270_v29, %v3358_v62 }
 0x38f   : > { %3834 = vmatpush.bf16.msrb.mxu2 %v4782_v59  ;;  %v7287_v31 = vpop.f32.mrf.mxu3  ;;  %v7289_v37 = vpop.permute.xlu0 %4051  ;;  %v4721_v59 = vld [vmem:[#allocation2 + $0x38] sm:$0xf] }
 0x390   : > { %8510 = vst [vmem:[#allocation27_spill] sm:$0xff] %v7289_v37  ;;  %v7291_v5 = vpop.permute.xlu2 %4172  ;;  %v7293_v38 = vpop.permute.xlu1 %4026  ;;  %v4722_v52 = vor.u32 %v5099_v21, %v4721_v59 }
 0x391   : > { %v3311_v32 = vpop.f32.mrf.mxu1  ;;  %v4250_v22 = vadd.f32 %v7291_v5, %v4074_v12 }
 0x393   : > { %3835 = vmatpush.bf16.msrb.mxu2 %v4762_v63  ;;  %v4330_v10 = vmax.f32 %v4250_v22, 0.0  ;;  %v4701_v22 = vld [vmem:[#allocation2 + $0x10] sm:$0xf] }
 0x394   : > { %3565 = vmatmul.bf16.gmra.mxu1 %v6680_v48  ;;  %3594 = vmatmul.bf16.vlgmr.msrb.gmra.mxu3 %v6630_v50  ;;  %v4702_v48 = vor.u32 %v5094_v28, %v4701_v22  ;;  %v4861_v50 = vld [vmem:[#allocation2 + $0x150] sm:$0xf] }
 0x395   : > { %4410 = vst [vmem:[%s7301_s9] sm:$0xff] %v4330_v10  ;;  %v7304_v19 = vpop.f32.mrf.mxu2  ;;  %v3304_v10 = vadd.f32 %v7232_v45, %v7092_v58  ;;  %v7318_v62 = vpop.f32.mrf.mxu0  ;;  %v5134_v58 = vld [vmem:[#allocation2 + $0x160] sm:$0xf0] }
 0x397   : > { %3836 = vmatpush.bf16.msrb.mxu2 %v4742_v33  ;;  %v7307_v12 = vpop.f32.mrf.mxu3  ;;  %v7309_v27 = vpop.permute.xlu0 %4066  ;;  %v3353_v59 = vadd.f32 %v7120_v18, %v3304_v10 }
 0x398   : > { %8511 = vst [vmem:[#allocation26_spill] sm:$0xff] %v7309_v27  ;;  %v7311_v63 = vpop.permute.xlu2 %4187  ;;  %v7313_v61 = vpop.permute.xlu1 %4041 }
 0x399   : > { %8512 = vst [vmem:[#allocation15_spill] sm:$0xff] %v7311_v63  ;;  %v3313_v33 = vpop.f32.mrf.mxu1  ;;  %v4265_v0 = vadd.f32 %v7311_v63, %v4089_v57  ;;  %v4079_v45 = vmul.f32 %v7253_v56, %v3353_v59  ;;  %v3312_v57 = vadd.f32 %v3311_v32, %v7183_v39  ;;  %v4862_v63 = vor.u32 %v5134_v58, %v4861_v50 }
 0x39a   : > { %8513 = vst [vmem:[#allocation13_spill] sm:$0xff] %v7313_v61  ;;  %3472 = vmatmul.bf16.gmra.mxu2 %v7025_v60 }
 0x39b   : > { %3837 = vmatpush.bf16.msrb.mxu2 %v4722_v52  ;;  %v4345_v29 = vmax.f32 %v4265_v0, 0.0  ;;  %3887 = vmatpush.bf16.msrb.mxu0 %v4862_v63  ;;  %v3361_v39 = vadd.f32 %v7202_v55, %v3312_v57  ;;  %v3307_v55 = vadd.f32 %v7255_v42, %v7124_v24  ;;  %v3332_v42 = vadd.f32 %v7226_v35, %v7090_v30 }
 0x39c   : > { %3692 = vmatmul.bf16.vlgmr.msra.gmra.mxu0 %v6392_v40 }
 0x39d   : > { %4425 = vst [vmem:[%s7301_s9 + $0x78] sm:$0xff] %v4345_v29  ;;  %v7324_v21 = vpop.f32.mrf.mxu2  ;;  %v7338_v10 = vpop.f32.mrf.mxu0  ;;  %v4094_v63 = vmul.f32 %v7204_v20, %v3361_v39 }
 0x39f   : > { %3838 = vmatpush.bf16.msrb.mxu2 %v4702_v48  ;;  %v7328_v52 = vpop.f32.mrf.mxu3  ;;  %v7330_v0 = vpop.permute.xlu0 %4177 }
 0x3a0   : > { %v7332_v22 = vpop.permute.xlu2 %4202  ;;  %v4255_v18 = vadd.f32 %v7330_v0, %v4079_v45  ;;  %v7335_v48 = vpop.permute.xlu1 %4056 }
 0x3a1   : > { %8514 = vst [vmem:[#allocation10_spill] sm:$0xff] %v7332_v22  ;;  %v3316_v28 = vpop.f32.mrf.mxu1 }
 0x3a2   : > { %8515 = vst [vmem:[#allocation8_spill] sm:$0xff] %v7335_v48  ;;  %v3317_v29 = vadd.f32 %v3316_v28, %v7234_v53  ;;  %v4335_v32 = vmax.f32 %v4255_v18, 0.0 }
 0x3a4   : > { %v3366_v59 = vadd.f32 %v7245_v23, %v3317_v29  ;;  %3570 = vmatmul.bf16.gmra.mxu1 %v6771_v44  ;;  %3599 = vmatmul.bf16.gmra.mxu3 %v6714_v54  ;;  %4415 = vst [vmem:[%s7301_s9 + $0x28] sm:$0xff] %v4335_v32 }
 0x3a5   : > { %v7345_v50 = vpop.f32.mrf.mxu2 }
 0x3a6   : > { %v4104_v58 = vmul.f32 %v7293_v38, %v3366_v59  ;;  %v7363_v59 = vpop.f32.mrf.mxu0 }
 0x3a7   : > { %v7349_v45 = vpop.f32.mrf.mxu3 }
 0x3a8   : > { %v7353_v53 = vpop.permute.xlu0 %4192  ;;  %v4280_v23 = vadd.f32 %v7332_v22, %v4104_v58  ;;  %v7356_v57 = vpop.permute.xlu2 %4217  ;;  %v3356_v58 = vadd.f32 %v7153_v26, %v3307_v55 }
 0x3a9   : > { %8516 = vst [vmem:[#allocation6_spill] sm:$0xff] %v7353_v53  ;;  %v3318_v28 = vpop.f32.mrf.mxu1  ;;  %v4270_v18 = vadd.f32 %v7353_v53, %v4094_v63  ;;  %v7359_v29 = vpop.permute.xlu1 %4071 }
 0x3aa   : > { %8517 = vst [vmem:[#allocation11_spill] sm:$0xff] %v7359_v29  ;;  %v3319_v39 = vadd.f32 %v3318_v28, %v7257_v6  ;;  %3477 = vmatmul.bf16.gmra.mxu2 %v6632_v16  ;;  %v4360_v32 = vmax.f32 %v4280_v23, 0.0  ;;  %v4084_v23 = vmul.f32 %v7181_v7, %v3356_v58 }
 0x3ab   : > { %v4350_v24 = vmax.f32 %v4270_v18, 0.0  ;;  %v3314_v18 = vadd.f32 %v3313_v33, %v7208_v17 }
 0x3ac   : > { %v3368_v40 = vadd.f32 %v7261_v1, %v3319_v39  ;;  %4440 = vst [vmem:[%s7301_s9 + $0xf0] sm:$0xff] %v4360_v32  ;;  %3697 = vmatmul.bf16.gmra.mxu0 %v6460_v14  ;;  %v8526_v14 = vld [vmem:[#allocation20_spill] sm:$0xff] }
 0x3ad   : > { %4430 = vst [vmem:[%s7301_s9 + $0xa0] sm:$0xff] %v4350_v24  ;;  %v3380_v63 = vpop.f32.mrf.mxu2  ;;  %v3363_v33 = vadd.f32 %v7224_v25, %v3314_v18  ;;  %v3334_v25 = vadd.f32 %v7247_v11, %v7122_v36 }
 0x3ae   : > { %v3381_v22 = vadd.f32 %v3380_v63, %v3332_v42  ;;  %v4109_v6 = vmul.f32 %v7230_v15, %v3368_v40  ;;  %v7387_v24 = vpop.f32.mrf.mxu0 }
 0x3af   : > { %v7373_v28 = vpop.f32.mrf.mxu3 }
 0x3b0   : > { %v4134_v30 = vmul.f32 %v7335_v48, %v3381_v22  ;;  %v7378_v26 = vpop.permute.xlu0 %4207  ;;  %v7380_v1 = vpop.permute.xlu2 %4232 }
 0x3b1   : > { %8518 = vst [vmem:[#allocation40_spill] sm:$0xff] %v7380_v1  ;;  %v3321_v35 = vpop.f32.mrf.mxu1  ;;  %v7382_v55 = vpop.permute.xlu1 %4182  ;;  %v4285_v40 = vadd.f32 %v7378_v26, %v4109_v6  ;;  %v4099_v6 = vmul.f32 %v7249_v3, %v3363_v33 }
 0x3b2   : > { %8519 = vst [vmem:[#allocation35_spill] sm:$0xff] %v7382_v55  ;;  %v4260_v39 = vadd.f32 %v7382_v55, %v4084_v23  ;;  %v4310_v32 = vadd.f32 %v7380_v1, %v4134_v30  ;;  %v3322_v23 = vadd.f32 %v3321_v35, %v7274_v2 }
 0x3b3   : > { %v4365_v17 = vmax.f32 %v4285_v40, 0.0 }
 0x3b4   : > { %v4340_v22 = vmax.f32 %v4260_v39, 0.0  ;;  %3575 = vmatmul.bf16.gmra.mxu1 %v6370_v49  ;;  %3604 = vmatmul.bf16.gmra.mxu3 %v6797_v43  ;;  %v4390_v42 = vmax.f32 %v4310_v32, 0.0  ;;  %v3371_v2 = vadd.f32 %v7281_v41, %v3322_v23 }
 0x3b5   : > { %v3382_v58 = vpop.f32.mrf.mxu2  ;;  %4445 = vst [vmem:[%s7301_s9 + $0x118] sm:$0xff] %v4365_v17 }
 0x3b6   : > { %4420 = vst [vmem:[%s7301_s9 + $0x50] sm:$0xff] %v4340_v22  ;;  %v7408_v17 = vpop.f32.mrf.mxu0  ;;  %v3383_v33 = vadd.f32 %v3382_v58, %v3334_v25 }
 0x3b7   : > { %v7394_v63 = vpop.f32.mrf.mxu3  ;;  %4470 = vst [vmem:[%s7301_s9 + $0x1e0] sm:$0xff] %v4390_v42 }
 0x3b8   : > { %v7399_v30 = vpop.permute.xlu0 %4222 }
 0x3b9   : > { %8520 = vst [vmem:[#allocation38_spill] sm:$0xff] %v7399_v30  ;;  %v3323_v18 = vpop.f32.mrf.mxu1  ;;  %v7403_v40 = vpop.permute.xlu1 %4197 }
 0x3ba   : > { %8521 = vst [vmem:[#allocation41_spill] sm:$0xff] %v7403_v40  ;;  %v3324_v39 = vadd.f32 %v3323_v18, %v7296_v47  ;;  %v4275_v32 = vadd.f32 %v7403_v40, %v4099_v6  ;;  %3482 = vmatmul.bf16.gmra.mxu2 %v6716_v51  ;;  %v4139_v47 = vmul.f32 %v7268_v8, %v3383_v33 }
 0x3bb   : > { %v4114_v6 = vmul.f32 %v7263_v46, %v3371_v2  ;;  %v8524_v2 = vld [vmem:[#allocation9_spill] sm:$0xff] }
 0x3bc   : > { %v3373_v35 = vadd.f32 %v7304_v19, %v3324_v39  ;;  %v4355_v22 = vmax.f32 %v4275_v32, 0.0  ;;  %3702 = vmatmul.bf16.gmra.mxu0 %v6523_v34  ;;  %v8525_v34 = vld [vmem:[#allocation45_spill] sm:$0xff] }
 0x3bd   : > { %v3385_v36 = vpop.f32.mrf.mxu2 }
 0x3be   : > { %v4119_v11 = vmul.f32 %v7313_v61, %v3373_v35  ;;  %4435 = vst [vmem:[%s7301_s9 + $0xc8] sm:$0xff] %v4355_v22  ;;  %v7427_v33 = vpop.f32.mrf.mxu0  ;;  %v3339_v22 = vadd.f32 %v7287_v31, %v8524_v2  ;;  %v8529_v2 = vld [vmem:[#allocation46_spill] sm:$0xff] }
 0x3bf   : > { %v7416_v42 = vpop.f32.mrf.mxu3 }
 0x3c0   : > { %v4295_v58 = vadd.f32 %v7356_v57, %v4119_v11  ;;  %v7420_v25 = vpop.permute.xlu0 %4237 }
 0x3c1   : > { %8522 = vst [vmem:[#allocation34_spill] sm:$0xff] %v7420_v25  ;;  %v3326_v41 = vpop.f32.mrf.mxu1  ;;  %v7422_v19 = vpop.permute.xlu1 %4212  ;;  %v4315_v23 = vadd.f32 %v7420_v25, %v4139_v47 }
 0x3c2   : > { %8523 = vst [vmem:[#allocation39_spill] sm:$0xff] %v7422_v19  ;;  %v3327_v18 = vadd.f32 %v3326_v41, %v7318_v62  ;;  %v4375_v39 = vmax.f32 %v4295_v58, 0.0  ;;  %v4290_v32 = vadd.f32 %v7422_v19, %v4114_v6  ;;  %v8527_v62 = vld [vmem:[#allocation24_spill] sm:$0xff] }
 0x3c3   : > { %v4395_v35 = vmax.f32 %v4315_v23, 0.0  ;;  %v7440_v23 = vpop.permute.xlu2 %4247 }
 0x3c4   : > { %v3376_v11 = vadd.f32 %v7324_v21, %v3327_v18  ;;  %4455 = vst [vmem:[%s7301_s9 + $0x168] sm:$0xff] %v4375_v39  ;;  %3580 = vmatmul.bf16.gmra.mxu1 %v8525_v34  ;;  %3609 = vmatmul.bf16.gmra.mxu3 %v8526_v14  ;;  %v4370_v47 = vmax.f32 %v4290_v32, 0.0 }
 0x3c5   : > { %v3387_v25 = vpop.f32.mrf.mxu2  ;;  %4475 = vst [vmem:[%s7301_s9 + $0x208] sm:$0xff] %v4395_v35 }
 0x3c6   : > { %v4124_v58 = vmul.f32 %v8527_v62, %v3376_v11  ;;  %v3388_v6 = vadd.f32 %v3387_v25, %v3339_v22  ;;  %4450 = vst [vmem:[%s7301_s9 + $0x140] sm:$0xff] %v4370_v47  ;;  %v7450_v22 = vpop.f32.mrf.mxu0  ;;  %v3386_v11 = vadd.f32 %v3385_v36, %v7266_v4 }
 0x3c7   : > { %v7438_v41 = vpop.f32.mrf.mxu3  ;;  %8528 = vst [vmem:[#allocation36_spill] sm:$0xff] %v7440_v23 }
 0x3c8   : > { %v4300_v31 = vadd.f32 %v7399_v30, %v4124_v58  ;;  %v4149_v21 = vmul.f32 %v7359_v29, %v3388_v6  ;;  %v8530_v6 = vld [vmem:[#allocation50_spill] sm:$0xff] }
 0x3c9   : > { %v3328_v18 = vpop.f32.mrf.mxu1  ;;  %v7444_v39 = vpop.permute.xlu1 %4227 }
 0x3ca   : > { %v4380_v32 = vmax.f32 %v4300_v31, 0.0  ;;  %v3329_v35 = vadd.f32 %v3328_v18, %v7338_v10  ;;  %5039 = vmatmul.msk.bf16.vlgmr.msra.gmra.mxu2 %vm1864_vm13, %v8529_v2  ;;  %v4325_v25 = vadd.f32 %v7440_v23, %v4149_v21  ;;  %v4144_v21 = vmul.f32 %v7309_v27, %v3386_v11 }
 0x3cc   : > { %4460 = vst [vmem:[%s7301_s9 + $0x190] sm:$0xff] %v4380_v32  ;;  %v3378_v47 = vadd.f32 %v7345_v50, %v3329_v35  ;;  %v4405_v58 = vmax.f32 %v4325_v25, 0.0  ;;  %3707 = vmatmul.bf16.gmra.mxu0 %v8530_v6 }
 0x3cd   : > { %v3448_v29 = vpop.f32.mrf.mxu2 }
 0x3ce   : > { %v4129_v31 = vmul.f32 %v7289_v37, %v3378_v47  ;;  %v3449_v10 = vadd.f32 %v3448_v29, %v7307_v12  ;;  %4485 = vst [vmem:[%s7301_s9 + $0x258] sm:$0xff] %v4405_v58  ;;  %v3509_v29 = vpop.f32.mrf.mxu0 }
 0x3cf   : > { %v7459_v18 = vpop.f32.mrf.mxu3 }
 0x3d0   : > { %v3498_v23 = vadd.f32 %v7363_v59, %v3449_v10  ;;  %v4305_v4 = vadd.f32 %v7444_v39, %v4129_v31  ;;  %v8532_v59 = vld [vmem:[#allocation23_spill] sm:$0xff] }
 0x3d1   : > { %v7464_v50 = vpop.f32.mrf.mxu1  ;;  %v7466_v36 = vpop.permute.xlu1 %4242 }
 0x3d2   : > { %8531 = vst [vmem:[#allocation42_spill] sm:$0xff] %v7466_v36  ;;  %v4075_v32 = vmul.f32 %v7228_v9, %v3498_v23  ;;  %v4385_v35 = vmax.f32 %v4305_v4, 0.0  ;;  %v4320_v12 = vadd.f32 %v7466_v36, %v4144_v21 }
 0x3d4   : > { %v4251_v25 = vadd.f32 %v7291_v5, %v4075_v32  ;;  %4465 = vst [vmem:[%s7301_s9 + $0x1b8] sm:$0xff] %v4385_v35  ;;  %3614 = vmatmul.bf16.gmra.mxu3 %v6949_v13  ;;  %3741 = vmatmul.bf16.vlgmr.msra.gmra.mxu1 %v8532_v59  ;;  %v4400_v11 = vmax.f32 %v4320_v12, 0.0  ;;  %v8533_v32 = vld [vmem:[#allocation48_spill] sm:$0xff] }
 0x3d5   : > { %v3450_v47 = vpop.f32.mrf.mxu2 }
 0x3d6   : > { %v4331_v58 = vmax.f32 %v4251_v25, 0.0  ;;  %v3451_v31 = vadd.f32 %v3450_v47, %v7328_v52  ;;  %4480 = vst [vmem:[%s7301_s9 + $0x230] sm:$0xff] %v4400_v11  ;;  %v3512_v35 = vpop.f32.mrf.mxu0  ;;  %v8534_v25 = vld [vmem:[#allocation22_spill] sm:$0xff] }
 0x3d7   : > { %v7476_v10 = vpop.f32.mrf.mxu3 }
 0x3d8   : > { %4411 = vst [vmem:[%s7301_s9 + $0x8] sm:$0xff] %v4331_v58  ;;  %v3500_v23 = vadd.f32 %v7387_v24, %v3451_v31 }
 0x3d9   : > { %v7480_v21 = vpop.f32.mrf.mxu1 }
 0x3da   : > { %v4080_v4 = vmul.f32 %v7253_v56, %v3500_v23  ;;  %5040 = vmatmul.msk.bf16.gmra.mxu2 %vm1864_vm13, %v8533_v32 }
 0x3dc   : > { %v4256_v12 = vadd.f32 %v7330_v0, %v4080_v4  ;;  %3712 = vmatmul.bf16.gmra.mxu0 %v8534_v25  ;;  %v8537_v25 = vld [vmem:[#allocation32_spill] sm:$0xff] }
 0x3dd   : > { %v3453_v6 = vpop.f32.mrf.mxu2 }
 0x3de   : > { %v4336_v52 = vmax.f32 %v4256_v12, 0.0  ;;  %v3454_v11 = vadd.f32 %v3453_v6, %v7349_v45  ;;  %v3514_v23 = vpop.f32.mrf.mxu0 }
 0x3df   : > { %v7488_v47 = vpop.f32.mrf.mxu3 }
 0x3e0   : > { %4416 = vst [vmem:[%s7301_s9 + $0x30] sm:$0xff] %v4336_v52  ;;  %v3503_v24 = vadd.f32 %v7408_v17, %v3454_v11  ;;  %v8536_v11 = vld [vmem:[#allocation17_spill] sm:$0xff] }
 0x3e1   : > { %v7492_v58 = vpop.f32.mrf.mxu1 }
 0x3e2   : > { %v4085_v31 = vmul.f32 %v7181_v7, %v3503_v24 }
 0x3e4   : > { %v4261_v56 = vadd.f32 %v7382_v55, %v4085_v31  ;;  %3619 = vmatmul.bf16.gmra.mxu3 %v7025_v60  ;;  %3746 = vmatmul.bf16.gmra.mxu1 %v6714_v54  ;;  %v8538_v55 = vld [vmem:[#allocation15_spill] sm:$0xff] }
 0x3e5   : > { %v3455_v4 = vpop.f32.mrf.mxu2 }
 0x3e6   : > { %v4341_v12 = vmax.f32 %v4261_v56, 0.0  ;;  %v3456_v45 = vadd.f32 %v3455_v4, %v7373_v28  ;;  %v3517_v31 = vpop.f32.mrf.mxu0 }
 0x3e7   : > { %v7499_v6 = vpop.f32.mrf.mxu3 }
 0x3e8   : > { %4421 = vst [vmem:[%s7301_s9 + $0x58] sm:$0xff] %v4341_v12  ;;  %v3505_v17 = vadd.f32 %v7427_v33, %v3456_v45 }
 0x3e9   : > { %v7503_v52 = vpop.f32.mrf.mxu1 }
 0x3ea   : > { %8535 = vst [vmem:[#allocation31_spill] sm:$0xff] %v7503_v52  ;;  %v4090_v24 = vmul.f32 %v8536_v11, %v3505_v17  ;;  %5041 = vmatmul.msk.bf16.gmra.mxu2 %vm1864_vm13, %v8537_v25 }
 0x3ec   : > { %v4266_v7 = vadd.f32 %v8538_v55, %v4090_v24  ;;  %3717 = vmatmul.bf16.gmra.mxu0 %v6771_v44 }
 0x3ed   : > { %v3458_v56 = vpop.f32.mrf.mxu2 }
 0x3ee   : > { %v4346_v28 = vmax.f32 %v4266_v7, 0.0  ;;  %v3459_v4 = vadd.f32 %v3458_v56, %v7394_v63  ;;  %v3519_v11 = vpop.f32.mrf.mxu0 }
 0x3ef   : > { %v7511_v12 = vpop.f32.mrf.mxu3 }
 0x3f0   : > { %4426 = vst [vmem:[%s7301_s9 + $0x80] sm:$0xff] %v4346_v28  ;;  %v3508_v33 = vadd.f32 %v7450_v22, %v3459_v4 }
 0x3f1   : > { %v7515_v45 = vpop.f32.mrf.mxu1 }
 0x3f2   : > { %v4095_v17 = vmul.f32 %v7204_v20, %v3508_v33  ;;  %v8540_v33 = vld [vmem:[#allocation18_spill] sm:$0xff] }
 0x3f4   : > { %v4271_v52 = vadd.f32 %v7353_v53, %v4095_v17  ;;  %3624 = vmatmul.bf16.gmra.mxu3 %v6632_v16  ;;  %3751 = vmatmul.bf16.gmra.mxu1 %v6797_v43 }
 0x3f5   : > { %v3460_v24 = vpop.f32.mrf.mxu2 }
 0x3f6   : > { %v4351_v7 = vmax.f32 %v4271_v52, 0.0  ;;  %v3461_v63 = vadd.f32 %v3460_v24, %v7416_v42  ;;  %v3522_v17 = vpop.f32.mrf.mxu0 }
 0x3f7   : > { %v7522_v56 = vpop.f32.mrf.mxu3 }
 0x3f8   : > { %4431 = vst [vmem:[%s7301_s9 + $0xa8] sm:$0xff] %v4351_v7  ;;  %v3510_v22 = vadd.f32 %v3509_v29, %v3461_v63 }
 0x3f9   : > { %v7525_v28 = vpop.f32.mrf.mxu1 }
 0x3fa   : > { %8539 = vst [vmem:[#allocation37_spill] sm:$0xff] %v7525_v28  ;;  %v4100_v4 = vmul.f32 %v7249_v3, %v3510_v22  ;;  %5042 = vmatmul.msk.bf16.gmra.mxu2 %vm1864_vm13, %v8540_v33  ;;  %v8541_v3 = vld [vmem:[#allocation10_spill] sm:$0xff] }
 0x3fc   : > { %v4276_v44 = vadd.f32 %v7403_v40, %v4100_v4  ;;  %3722 = vmatmul.bf16.gmra.mxu0 %v6370_v49 }
 0x3fd   : > { %v3463_v53 = vpop.f32.mrf.mxu2 }
 0x3fe   : > { %v4356_v52 = vmax.f32 %v4276_v44, 0.0  ;;  %v3464_v42 = vadd.f32 %v3463_v53, %v7438_v41  ;;  %v3524_v22 = vpop.f32.mrf.mxu0 }
 0x3ff   : > { %v7533_v24 = vpop.f32.mrf.mxu3 }
 0x400   : > { %4436 = vst [vmem:[%s7301_s9 + $0xd0] sm:$0xff] %v4356_v52  ;;  %v3513_v29 = vadd.f32 %v3512_v35, %v3464_v42 }
 0x401   : > { %v7536_v7 = vpop.f32.mrf.mxu1 }
 0x402   : > { %v4105_v63 = vmul.f32 %v7293_v38, %v3513_v29  ;;  %v8542_v29 = vld [vmem:[#allocation30_spill] sm:$0xff] }
 0x404   : > { %v4281_v28 = vadd.f32 %v8541_v3, %v4105_v63  ;;  %3629 = vmatmul.bf16.gmra.mxu3 %v6716_v51  ;;  %3756 = vmatmul.bf16.gmra.mxu1 %v8526_v14 }
 0x405   : > { %v3465_v4 = vpop.f32.mrf.mxu2 }
 0x406   : > { %v4361_v44 = vmax.f32 %v4281_v28, 0.0  ;;  %v3466_v53 = vadd.f32 %v3465_v4, %v7459_v18  ;;  %v3527_v63 = vpop.f32.mrf.mxu0 }
 0x407   : > { %v7543_v41 = vpop.f32.mrf.mxu3 }
 0x408   : > { %4441 = vst [vmem:[%s7301_s9 + $0xf8] sm:$0xff] %v4361_v44  ;;  %v3515_v35 = vadd.f32 %v3514_v23, %v3466_v53 }
 0x409   : > { %v7546_v52 = vpop.f32.mrf.mxu1 }
 0x40a   : > { %v4110_v42 = vmul.f32 %v7230_v15, %v3515_v35  ;;  %5043 = vmatmul.msk.bf16.gmra.mxu2 %vm1864_vm13, %v8542_v29 }
 0x40c   : > { %v4286_v49 = vadd.f32 %v7378_v26, %v4110_v42  ;;  %3727 = vmatmul.bf16.gmra.mxu0 %v8525_v34 }
 0x40d   : > { %v3468_v3 = vpop.f32.mrf.mxu2 }
 0x40e   : > { %v4366_v28 = vmax.f32 %v4286_v49, 0.0  ;;  %v3469_v18 = vadd.f32 %v3468_v3, %v7476_v10  ;;  %v3529_v35 = vpop.f32.mrf.mxu0 }
 0x40f   : > { %v7554_v4 = vpop.f32.mrf.mxu3 }
 0x410   : > { %4446 = vst [vmem:[%s7301_s9 + $0x120] sm:$0xff] %v4366_v28  ;;  %v3518_v23 = vadd.f32 %v3517_v31, %v3469_v18 }
 0x411   : > { %v7557_v44 = vpop.f32.mrf.mxu1 }
 0x412   : > { %v4115_v53 = vmul.f32 %v7263_v46, %v3518_v23  ;;  %v8543_v23 = vld [vmem:[#allocation28_spill] sm:$0xff] }
 0x414   : > { %v4291_v15 = vadd.f32 %v7422_v19, %v4115_v53  ;;  %3761 = vmatmul.bf16.gmra.mxu1 %v6949_v13  ;;  %5047 = vmatmul.msk.bf16.vlgmr.msra.gmra.mxu3 %vm1864_vm13, %v8529_v2 }
 0x415   : > { %v3470_v42 = vpop.f32.mrf.mxu2 }
 0x416   : > { %v4371_v49 = vmax.f32 %v4291_v15, 0.0  ;;  %v3471_v3 = vadd.f32 %v3470_v42, %v7488_v47  ;;  %v3532_v53 = vpop.f32.mrf.mxu0 }
 0x417   : > { %v7565_v10 = vpop.f32.mrf.mxu3 }
 0x418   : > { %4451 = vst [vmem:[%s7301_s9 + $0x148] sm:$0xff] %v4371_v49  ;;  %v3520_v31 = vadd.f32 %v3519_v11, %v3471_v3 }
 0x419   : > { %v7568_v28 = vpop.f32.mrf.mxu1 }
 0x41a   : > { %v4120_v18 = vmul.f32 %v7313_v61, %v3520_v31  ;;  %5044 = vmatmul.msk.bf16.gmra.mxu2 %vm1864_vm13, %v8543_v23 }
 0x41c   : > { %v4296_v34 = vadd.f32 %v7356_v57, %v4120_v18  ;;  %3888 = vmatmul.bf16.vlgmr.msrb.gmra.mxu0 %v8532_v59 }
 0x41d   : > { %v3473_v19 = vpop.f32.mrf.mxu2 }
 0x41e   : > { %v4376_v15 = vmax.f32 %v4296_v34, 0.0  ;;  %v3474_v47 = vadd.f32 %v3473_v19, %v7499_v6  ;;  %v3534_v31 = vpop.f32.mrf.mxu0 }
 0x41f   : > { %v7576_v42 = vpop.f32.mrf.mxu3 }
 0x420   : > { %4456 = vst [vmem:[%s7301_s9 + $0x170] sm:$0xff] %v4376_v15  ;;  %v3523_v11 = vadd.f32 %v3522_v17, %v3474_v47  ;;  %v8544_v47 = vld [vmem:[#allocation14_spill] sm:$0xff] }
 0x421   : > { %v7579_v49 = vpop.f32.mrf.mxu1 }
 0x422   : > { %v4125_v3 = vmul.f32 %v8527_v62, %v3523_v11 }
 0x424   : > { %v4301_v61 = vadd.f32 %v7399_v30, %v4125_v3  ;;  %3766 = vmatmul.bf16.gmra.mxu1 %v7025_v60  ;;  %5048 = vmatmul.msk.bf16.gmra.mxu3 %vm1864_vm13, %v8533_v32 }
 0x425   : > { %v3475_v59 = vpop.f32.mrf.mxu2 }
 0x426   : > { %v4381_v34 = vmax.f32 %v4301_v61, 0.0  ;;  %v3476_v19 = vadd.f32 %v3475_v59, %v7511_v12  ;;  %v3693_v11 = vpop.f32.mrf.mxu0 }
 0x427   : > { %v7587_v6 = vpop.f32.mrf.mxu3 }
 0x428   : > { %4461 = vst [vmem:[%s7301_s9 + $0x198] sm:$0xff] %v4381_v34  ;;  %v3525_v17 = vadd.f32 %v3524_v22, %v3476_v19 }
 0x429   : > { %v7590_v18 = vpop.f32.mrf.mxu1 }
 0x42a   : > { %v4130_v15 = vmul.f32 %v7289_v37, %v3525_v17  ;;  %5045 = vmatmul.msk.bf16.gmra.mxu2 %vm1864_vm13, %v8544_v47 }
 0x42c   : > { %v4306_v3 = vadd.f32 %v7444_v39, %v4130_v15  ;;  %3893 = vmatmul.bf16.gmra.mxu0 %v6714_v54 }
 0x42d   : > { %v3478_v30 = vpop.f32.mrf.mxu2 }
 0x42e   : > { %v4386_v61 = vmax.f32 %v4306_v3, 0.0  ;;  %v3479_v12 = vadd.f32 %v3478_v30, %v7522_v56  ;;  %v3695_v17 = vpop.f32.mrf.mxu0 }
 0x42f   : > { %v7598_v59 = vpop.f32.mrf.mxu3 }
 0x430   : > { %4466 = vst [vmem:[%s7301_s9 + $0x1c0] sm:$0xff] %v4386_v61  ;;  %v3528_v22 = vadd.f32 %v3527_v63, %v3479_v12  ;;  %v8545_v12 = vld [vmem:[#allocation19_spill] sm:$0xff] }
 0x431   : > { %v7601_v34 = vpop.f32.mrf.mxu1 }
 0x432   : > { %v4135_v19 = vmul.f32 %v7335_v48, %v3528_v22 }
 0x434   : > { %v4311_v37 = vadd.f32 %v7380_v1, %v4135_v19  ;;  %3771 = vmatmul.bf16.gmra.mxu1 %v6632_v16  ;;  %5049 = vmatmul.msk.bf16.gmra.mxu3 %vm1864_vm13, %v8537_v25  ;;  %v8546_v19 = vld [vmem:[#allocation34_spill] sm:$0xff] }
 0x435   : > { %v3480_v54 = vpop.f32.mrf.mxu2 }
 0x436   : > { %v4391_v15 = vmax.f32 %v4311_v37, 0.0  ;;  %v3481_v30 = vadd.f32 %v3480_v54, %v7533_v24  ;;  %v3698_v22 = vpop.f32.mrf.mxu0 }
 0x437   : > { %v7609_v56 = vpop.f32.mrf.mxu3 }
 0x438   : > { %4471 = vst [vmem:[%s7301_s9 + $0x1e8] sm:$0xff] %v4391_v15  ;;  %v3530_v63 = vadd.f32 %v3529_v35, %v3481_v30 }
 0x439   : > { %v7612_v3 = vpop.f32.mrf.mxu1 }
 0x43a   : > { %v4140_v61 = vmul.f32 %v7268_v8, %v3530_v63  ;;  %5046 = vmatmul.msk.bf16.gmra.mxu2 %vm1864_vm13, %v8545_v12 }
 0x43c   : > { %v4316_v1 = vadd.f32 %v8546_v19, %v4140_v61  ;;  %3898 = vmatmul.bf16.gmra.mxu0 %v6797_v43 }
 0x43d   : > { %v3483_v48 = vpop.f32.mrf.mxu2 }
 0x43e   : > { %v4396_v37 = vmax.f32 %v4316_v1, 0.0  ;;  %v3484_v24 = vadd.f32 %v3483_v48, %v7543_v41  ;;  %v7626_v63 = vpop.f32.mrf.mxu0 }
 0x43f   : > { %v7620_v54 = vpop.f32.mrf.mxu3 }
 0x440   : > { %4476 = vst [vmem:[%s7301_s9 + $0x210] sm:$0xff] %v4396_v37  ;;  %v3533_v35 = vadd.f32 %v3532_v53, %v3484_v24  ;;  %v8548_v37 = vld [vmem:[#allocation11_spill] sm:$0xff] }
 0x441   : > { %v7623_v15 = vpop.f32.mrf.mxu1 }
 0x442   : > { %v4145_v30 = vmul.f32 %v7309_v27, %v3533_v35  ;;  %v8549_v35 = vld [vmem:[#allocation44_spill] sm:$0xff] }
 0x443   : > { %v8550_v27 = vld [vmem:[#allocation36_spill] sm:$0xff] }
 0x444   : > { %v4321_v8 = vadd.f32 %v7466_v36, %v4145_v30  ;;  %3776 = vmatmul.bf16.gmra.mxu1 %v6716_v51  ;;  %5050 = vmatmul.msk.bf16.gmra.mxu3 %vm1864_vm13, %v8540_v33  ;;  %v3596_v36 = vadd.f32 %v7565_v10, %v7464_v50  ;;  %v3598_v50 = vadd.f32 %v7576_v42, %v7480_v21  ;;  %v8552_v21 = vld [vmem:[#allocation47_spill] sm:$0xff] }
 0x445   : > { %v3485_v43 = vpop.f32.mrf.mxu2 }
 0x446   : > { %v4401_v1 = vmax.f32 %v4321_v8, 0.0  ;;  %v3486_v48 = vadd.f32 %v3485_v43, %v7554_v4  ;;  %v7640_v30 = vpop.f32.mrf.mxu0 }
 0x447   : > { %v7633_v41 = vpop.f32.mrf.mxu3 }
 0x448   : > { %4481 = vst [vmem:[%s7301_s9 + $0x238] sm:$0xff] %v4401_v1  ;;  %v3535_v53 = vadd.f32 %v3534_v31, %v3486_v48 }
 0x449   : > { %v7636_v61 = vpop.f32.mrf.mxu1 }
 0x44a   : > { %8547 = vst [vmem:[#allocation33_spill] sm:$0xff] %v7636_v61  ;;  %v4150_v24 = vmul.f32 %v8548_v37, %v3535_v53  ;;  %3839 = vmatmul.bf16.vlgmr.msrb.gmra.mxu2 %v8549_v35 }
 0x44c   : > { %v4326_v8 = vadd.f32 %v8550_v27, %v4150_v24  ;;  %3903 = vmatmul.bf16.gmra.mxu0 %v8526_v14  ;;  %v8555_v27 = vld [vmem:[#allocation31_spill] sm:$0xff] }
 0x44d   : > { %v3644_v4 = vpop.f32.mrf.mxu2 }
 0x44e   : > { %v4406_v43 = vmax.f32 %v4326_v8, 0.0  ;;  %v3645_v1 = vadd.f32 %v3644_v4, %v3596_v36  ;;  %v7653_v61 = vpop.f32.mrf.mxu0 }
 0x44f   : > { %v7646_v31 = vpop.f32.mrf.mxu3 }
 0x450   : > { %4486 = vst [vmem:[%s7301_s9 + $0x260] sm:$0xff] %v4406_v43  ;;  %v4076_v48 = vmul.f32 %v7228_v9, %v3645_v1 }
 0x451   : > { %v3742_v53 = vpop.f32.mrf.mxu1 }
 0x452   : > { %v4252_v35 = vadd.f32 %v7291_v5, %v4076_v48  ;;  %v7651_v37 = vadd.f32 %v3742_v53, %v3693_v11  ;;  %v8551_v11 = vld [vmem:[#allocation12_spill] sm:$0xff]  ;;  %v3601_v48 = vadd.f32 %v7587_v6, %v7492_v58  ;;  %v3603_v58 = vadd.f32 %v7598_v59, %v8555_v27  ;;  %v8557_v59 = vld [vmem:[#allocation49_spill] sm:$0xff] }
 0x454   : > { %v4332_v14 = vmax.f32 %v4252_v35, 0.0  ;;  %5051 = vmatmul.msk.bf16.gmra.mxu3 %vm1864_vm13, %v8542_v29  ;;  %5055 = vmatmul.msk.bf16.vlgmr.msrb.gmra.mxu1 %vm1864_vm13, %v8529_v2 }
 0x455   : > { %v3646_v36 = vpop.f32.mrf.mxu2 }
 0x456   : > { %4412 = vst [vmem:[%s7301_s9 + $0x10] sm:$0xff] %v4332_v14  ;;  %v3647_v10 = vadd.f32 %v3646_v36, %v3598_v50  ;;  %v7669_v42 = vpop.f32.mrf.mxu0  ;;  %v8553_v14 = vld [vmem:[#allocation16_spill] sm:$0xff] }
 0x457   : > { %v7662_v24 = vpop.f32.mrf.mxu3 }
 0x458   : > { %v4081_v8 = vmul.f32 %v8551_v11, %v3647_v10  ;;  %v8554_v10 = vld [vmem:[#allocation35_spill] sm:$0xff] }
 0x459   : > { %v3744_v4 = vpop.f32.mrf.mxu1 }
 0x45a   : > { %v4257_v43 = vadd.f32 %v7330_v0, %v4081_v8  ;;  %v7666_v1 = vadd.f32 %v3744_v4, %v3695_v17  ;;  %3844 = vmatmul.bf16.gmra.mxu2 %v8552_v21 }
 0x45c   : > { %v4337_v2 = vmax.f32 %v4257_v43, 0.0  ;;  %3908 = vmatmul.bf16.gmra.mxu0 %v6949_v13 }
 0x45d   : > { %v3649_v53 = vpop.f32.mrf.mxu2 }
 0x45e   : > { %4417 = vst [vmem:[%s7301_s9 + $0x38] sm:$0xff] %v4337_v2  ;;  %v3650_v35 = vadd.f32 %v3649_v53, %v3601_v48  ;;  %v7681_v21 = vpop.f32.mrf.mxu0 }
 0x45f   : > { %v7675_v50 = vpop.f32.mrf.mxu3 }
 0x460   : > { %v4086_v36 = vmul.f32 %v8553_v14, %v3650_v35 }
 0x461   : > { %v3747_v17 = vpop.f32.mrf.mxu1 }
 0x462   : > { %v4262_v8 = vadd.f32 %v8554_v10, %v4086_v36  ;;  %v7679_v4 = vadd.f32 %v3747_v17, %v3698_v22  ;;  %v8556_v22 = vld [vmem:[#allocation17_spill] sm:$0xff] }
 0x464   : > { %v4342_v6 = vmax.f32 %v4262_v8, 0.0  ;;  %5052 = vmatmul.msk.bf16.gmra.mxu3 %vm1864_vm13, %v8543_v23  ;;  %5056 = vmatmul.msk.bf16.gmra.mxu1 %vm1864_vm13, %v8533_v32  ;;  %v3606_v32 = vadd.f32 %v7609_v56, %v7515_v45  ;;  %v8559_v45 = vld [vmem:[#allocation37_spill] sm:$0xff] }
 0x465   : > { %v3651_v13 = vpop.f32.mrf.mxu2  ;;  %v3608_v56 = vadd.f32 %v7620_v54, %v8559_v45 }
 0x466   : > { %4422 = vst [vmem:[%s7301_s9 + $0x60] sm:$0xff] %v4342_v6  ;;  %v3652_v43 = vadd.f32 %v3651_v13, %v3603_v58  ;;  %v7698_v36 = vpop.f32.mrf.mxu0 }
 0x467   : > { %v7690_v48 = vpop.f32.mrf.mxu3 }
 0x468   : > { %v4091_v2 = vmul.f32 %v8556_v22, %v3652_v43  ;;  %v8558_v43 = vld [vmem:[#allocation6_spill] sm:$0xff] }
 0x469   : > { %v3749_v53 = vpop.f32.mrf.mxu1 }
 0x46a   : > { %v4267_v35 = vadd.f32 %v8538_v55, %v4091_v2  ;;  %v7695_v27 = vadd.f32 %v3749_v53, %v7626_v63  ;;  %3849 = vmatmul.bf16.gmra.mxu2 %v8557_v59 }
 0x46c   : > { %v4347_v17 = vmax.f32 %v4267_v35, 0.0  ;;  %3913 = vmatmul.bf16.gmra.mxu0 %v7025_v60 }
 0x46d   : > { %v3654_v8 = vpop.f32.mrf.mxu2 }
 0x46e   : > { %4427 = vst [vmem:[%s7301_s9 + $0x88] sm:$0xff] %v4347_v17  ;;  %v3655_v58 = vadd.f32 %v3654_v8, %v3606_v32  ;;  %v7711_v59 = vpop.f32.mrf.mxu0 }
 0x46f   : > { %v7704_v6 = vpop.f32.mrf.mxu3 }
 0x470   : > { %v4096_v13 = vmul.f32 %v7204_v20, %v3655_v58 }
 0x471   : > { %v3752_v63 = vpop.f32.mrf.mxu1 }
 0x472   : > { %v4272_v2 = vadd.f32 %v8558_v43, %v4096_v13  ;;  %v7709_v53 = vadd.f32 %v3752_v63, %v7640_v30  ;;  %v8560_v30 = vld [vmem:[#allocation25_spill] sm:$0xff]  ;;  %v8561_v63 = vld [vmem:[#allocation50_spill] sm:$0xff] }
 0x474   : > { %v4352_v35 = vmax.f32 %v4272_v2, 0.0  ;;  %5053 = vmatmul.msk.bf16.gmra.mxu3 %vm1864_vm13, %v8544_v47  ;;  %5057 = vmatmul.msk.bf16.gmra.mxu1 %vm1864_vm13, %v8537_v25  ;;  %v3611_v25 = vadd.f32 %v7633_v41, %v7536_v7  ;;  %v3613_v7 = vadd.f32 %v7646_v31, %v7546_v52  ;;  %v8564_v31 = vld [vmem:[#allocation22_spill] sm:$0xff] }
 0x475   : > { %v3656_v60 = vpop.f32.mrf.mxu2 }
 0x476   : > { %4432 = vst [vmem:[%s7301_s9 + $0xb0] sm:$0xff] %v4352_v35  ;;  %v3657_v32 = vadd.f32 %v3656_v60, %v3608_v56  ;;  %v7728_v2 = vpop.f32.mrf.mxu0 }
 0x477   : > { %v7720_v17 = vpop.f32.mrf.mxu3 }
 0x478   : > { %v4101_v8 = vmul.f32 %v8560_v30, %v3657_v32 }
 0x479   : > { %v3754_v58 = vpop.f32.mrf.mxu1 }
 0x47a   : > { %v4277_v13 = vadd.f32 %v7403_v40, %v4101_v8  ;;  %v7725_v54 = vadd.f32 %v3754_v58, %v7653_v61  ;;  %3854 = vmatmul.bf16.gmra.mxu2 %v8561_v63  ;;  %v8562_v8 = vld [vmem:[#allocation10_spill] sm:$0xff] }
 0x47c   : > { %v4357_v45 = vmax.f32 %v4277_v13, 0.0  ;;  %3918 = vmatmul.bf16.gmra.mxu0 %v6632_v16 }
 0x47d   : > { %v3659_v56 = vpop.f32.mrf.mxu2 }
 0x47e   : > { %4437 = vst [vmem:[%s7301_s9 + $0xd8] sm:$0xff] %v4357_v45  ;;  %v3660_v35 = vadd.f32 %v3659_v56, %v3611_v25  ;;  %v7741_v40 = vpop.f32.mrf.mxu0 }
 0x47f   : > { %v7734_v60 = vpop.f32.mrf.mxu3 }
 0x480   : > { %v4106_v32 = vmul.f32 %v7293_v38, %v3660_v35 }
 0x481   : > { %v3757_v61 = vpop.f32.mrf.mxu1 }
 0x482   : > { %v4282_v58 = vadd.f32 %v8562_v8, %v4106_v32  ;;  %v7739_v63 = vadd.f32 %v3757_v61, %v7669_v42  ;;  %v8563_v42 = vld [vmem:[#allocation21_spill] sm:$0xff] }
 0x484   : > { %v4362_v41 = vmax.f32 %v4282_v58, 0.0  ;;  %5054 = vmatmul.msk.bf16.gmra.mxu3 %vm1864_vm13, %v8545_v12  ;;  %5058 = vmatmul.msk.bf16.gmra.mxu1 %vm1864_vm13, %v8540_v33  ;;  %v3616_v33 = vadd.f32 %v7662_v24, %v7557_v44  ;;  %v3618_v44 = vadd.f32 %v7675_v50, %v7568_v28  ;;  %v8567_v50 = vld [vmem:[#allocation29_spill] sm:$0xff] }
 0x485   : > { %v3661_v16 = vpop.f32.mrf.mxu2 }
 0x486   : > { %4442 = vst [vmem:[%s7301_s9 + $0x100] sm:$0xff] %v4362_v41  ;;  %v3662_v13 = vadd.f32 %v3661_v16, %v3613_v7  ;;  %v7758_v32 = vpop.f32.mrf.mxu0 }
 0x487   : > { %v7750_v25 = vpop.f32.mrf.mxu3 }
 0x488   : > { %v4111_v45 = vmul.f32 %v8563_v42, %v3662_v13  ;;  %v8565_v13 = vld [vmem:[#allocation39_spill] sm:$0xff] }
 0x489   : > { %v3759_v56 = vpop.f32.mrf.mxu1 }
 0x48a   : > { %v4287_v35 = vadd.f32 %v7378_v26, %v4111_v45  ;;  %v7755_v52 = vadd.f32 %v3759_v56, %v7681_v21  ;;  %3859 = vmatmul.bf16.gmra.mxu2 %v8564_v31 }
 0x48c   : > { %v4367_v61 = vmax.f32 %v4287_v35, 0.0  ;;  %3923 = vmatmul.bf16.gmra.mxu0 %v6716_v51 }
 0x48d   : > { %v3664_v58 = vpop.f32.mrf.mxu2 }
 0x48e   : > { %4447 = vst [vmem:[%s7301_s9 + $0x128] sm:$0xff] %v4367_v61  ;;  %v3665_v7 = vadd.f32 %v3664_v58, %v3616_v33  ;;  %v7771_v31 = vpop.f32.mrf.mxu0  ;;  %v8566_v61 = vld [vmem:[#allocation13_spill] sm:$0xff] }
 0x48f   : > { %v7764_v41 = vpop.f32.mrf.mxu3 }
 0x490   : > { %v4116_v16 = vmul.f32 %v7263_v46, %v3665_v7 }
 0x491   : > { %v3762_v21 = vpop.f32.mrf.mxu1 }
 0x492   : > { %v4292_v45 = vadd.f32 %v8565_v13, %v4116_v16  ;;  %v7769_v56 = vadd.f32 %v3762_v21, %v7698_v36 }
 0x494   : > { %v4372_v24 = vmax.f32 %v4292_v45, 0.0  ;;  %5059 = vmatmul.msk.bf16.gmra.mxu1 %vm1864_vm13, %v8542_v29  ;;  %v3621_v45 = vadd.f32 %v7690_v48, %v7579_v49 }
 0x495   : > { %v3666_v51 = vpop.f32.mrf.mxu2 }
 0x496   : > { %4452 = vst [vmem:[%s7301_s9 + $0x150] sm:$0xff] %v4372_v24  ;;  %v3667_v35 = vadd.f32 %v3666_v51, %v3618_v44  ;;  %v7786_v29 = vpop.f32.mrf.mxu0 }
 0x497   : > { %v3791_v33 = vpop.f32.mrf.mxu3 }
 0x498   : > { %v4121_v58 = vmul.f32 %v8566_v61, %v3667_v35  ;;  %v3792_v36 = vadd.f32 %v3791_v33, %v7651_v37 }
 0x499   : > { %v3764_v7 = vpop.f32.mrf.mxu1 }
 0x49a   : > { %v4297_v16 = vadd.f32 %v7356_v57, %v4121_v58  ;;  %v4077_v21 = vmul.f32 %v7228_v9, %v3792_v36  ;;  %v7783_v28 = vadd.f32 %v3764_v7, %v7711_v59  ;;  %3864 = vmatmul.bf16.gmra.mxu2 %v8567_v50  ;;  %v8568_v7 = vld [vmem:[#allocation38_spill] sm:$0xff] }
 0x49c   : > { %v4377_v44 = vmax.f32 %v4297_v16, 0.0  ;;  %v4253_v24 = vadd.f32 %v7291_v5, %v4077_v21  ;;  %v3623_v16 = vadd.f32 %v7704_v6, %v7590_v18 }
 0x49d   : > { %v3669_v51 = vpop.f32.mrf.mxu2 }
 0x49e   : > { %4457 = vst [vmem:[%s7301_s9 + $0x178] sm:$0xff] %v4377_v44  ;;  %v4333_v37 = vmax.f32 %v4253_v24, 0.0  ;;  %v3670_v35 = vadd.f32 %v3669_v51, %v3621_v45  ;;  %v7805_v24 = vpop.f32.mrf.mxu0 }
 0x49f   : > { %v3793_v33 = vpop.f32.mrf.mxu3 }
 0x4a0   : > { %4413 = vst [vmem:[%s7301_s9 + $0x18] sm:$0xff] %v4333_v37  ;;  %v4126_v59 = vmul.f32 %v8527_v62, %v3670_v35  ;;  %v3794_v58 = vadd.f32 %v3793_v33, %v7666_v1 }
 0x4a1   : > { %v3767_v36 = vpop.f32.mrf.mxu1 }
 0x4a2   : > { %v4302_v50 = vadd.f32 %v8568_v7, %v4126_v59  ;;  %v4082_v49 = vmul.f32 %v8551_v11, %v3794_v58  ;;  %v7798_v48 = vadd.f32 %v3767_v36, %v7728_v2  ;;  %v8569_v2 = vld [vmem:[#allocation27_spill] sm:$0xff]  ;;  %v3626_v36 = vadd.f32 %v7720_v17, %v7601_v34 }
 0x4a3   : > { %v8570_v58 = vld [vmem:[#allocation43_spill] sm:$0xff] }
 0x4a4   : > { %v4382_v21 = vmax.f32 %v4302_v50, 0.0  ;;  %v4258_v45 = vadd.f32 %v7330_v0, %v4082_v49  ;;  %5060 = vmatmul.msk.bf16.gmra.mxu1 %vm1864_vm13, %v8543_v23 }
 0x4a5   : > { %v3671_v44 = vpop.f32.mrf.mxu2 }
 0x4a6   : > { %4462 = vst [vmem:[%s7301_s9 + $0x1a0] sm:$0xff] %v4382_v21  ;;  %v4338_v1 = vmax.f32 %v4258_v45, 0.0  ;;  %v3672_v51 = vadd.f32 %v3671_v44, %v3623_v16  ;;  %v7821_v44 = vpop.f32.mrf.mxu0 }
 0x4a7   : > { %v3796_v37 = vpop.f32.mrf.mxu3 }
 0x4a8   : > { %4418 = vst [vmem:[%s7301_s9 + $0x40] sm:$0xff] %v4338_v1  ;;  %v4131_v35 = vmul.f32 %v8569_v2, %v3672_v51  ;;  %v3797_v18 = vadd.f32 %v3796_v37, %v7679_v4  ;;  %v8571_v1 = vld [vmem:[#allocation8_spill] sm:$0xff] }
 0x4a9   : > { %v3769_v6 = vpop.f32.mrf.mxu1 }
 0x4aa   : > { %v4307_v33 = vadd.f32 %v7444_v39, %v4131_v35  ;;  %v4087_v59 = vmul.f32 %v8553_v14, %v3797_v18  ;;  %v7814_v23 = vadd.f32 %v3769_v6, %v7741_v40  ;;  %3869 = vmatmul.bf16.gmra.mxu2 %v8570_v58  ;;  %v8572_v35 = vld [vmem:[#allocation40_spill] sm:$0xff]  ;;  %v3628_v6 = vadd.f32 %v7734_v60, %v7612_v3 }
 0x4ac   : > { %v4387_v50 = vmax.f32 %v4307_v33, 0.0  ;;  %v4263_v49 = vadd.f32 %v8554_v10, %v4087_v59 }
 0x4ad   : > { %v3674_v16 = vpop.f32.mrf.mxu2 }
 0x4ae   : > { %4467 = vst [vmem:[%s7301_s9 + $0x1c8] sm:$0xff] %v4387_v50  ;;  %v4343_v21 = vmax.f32 %v4263_v49, 0.0  ;;  %v3675_v4 = vadd.f32 %v3674_v16, %v3626_v36  ;;  %v8573_v49 = vld [vmem:[#allocation7_spill] sm:$0xff]  ;;  %v3891_v3 = vpop.f32.mrf.mxu0 }
 0x4af   : > { %v3798_v45 = vpop.f32.mrf.mxu3 }
 0x4b0   : > { %4423 = vst [vmem:[%s7301_s9 + $0x68] sm:$0xff] %v4343_v21  ;;  %v4136_v40 = vmul.f32 %v8571_v1, %v3675_v4  ;;  %v3799_v51 = vadd.f32 %v3798_v45, %v7695_v27  ;;  %v8574_v45 = vld [vmem:[#allocation45_spill] sm:$0xff] }
 0x4b1   : > { %v3772_v37 = vpop.f32.mrf.mxu1 }
 0x4b2   : > { %v4312_v34 = vadd.f32 %v8572_v35, %v4136_v40  ;;  %v4092_v17 = vmul.f32 %v8556_v22, %v3799_v51  ;;  %v7829_v18 = vadd.f32 %v3772_v37, %v7758_v32  ;;  %v3631_v40 = vadd.f32 %v7750_v25, %v7623_v15 }
 0x4b4   : > { %v4392_v33 = vmax.f32 %v4312_v34, 0.0  ;;  %v4268_v59 = vadd.f32 %v8538_v55, %v4092_v17  ;;  %5061 = vmatmul.msk.bf16.gmra.mxu1 %vm1864_vm13, %v8544_v47 }
 0x4b5   : > { %v3676_v58 = vpop.f32.mrf.mxu2 }
 0x4b6   : > { %4472 = vst [vmem:[%s7301_s9 + $0x1f0] sm:$0xff] %v4392_v33  ;;  %v4348_v27 = vmax.f32 %v4268_v59, 0.0  ;;  %v3677_v36 = vadd.f32 %v3676_v58, %v3628_v6  ;;  %v8575_v33 = vld [vmem:[#allocation26_spill] sm:$0xff] }
 0x4b7   : > { %v3801_v50 = vpop.f32.mrf.mxu3 }
 0x4b8   : > { %4428 = vst [vmem:[%s7301_s9 + $0x90] sm:$0xff] %v4348_v27  ;;  %v4141_v16 = vmul.f32 %v8573_v49, %v3677_v36  ;;  %v3802_v32 = vadd.f32 %v3801_v50, %v7709_v53  ;;  %v8576_v27 = vld [vmem:[#allocation42_spill] sm:$0xff]  ;;  %v3894_v50 = vpop.f32.mrf.mxu0 }
 0x4b9   : > { %v3774_v21 = vpop.f32.mrf.mxu1 }
 0x4ba   : > { %v4317_v60 = vadd.f32 %v8546_v19, %v4141_v16  ;;  %v4097_v4 = vmul.f32 %v7204_v20, %v3802_v32  ;;  %v7843_v47 = vadd.f32 %v3774_v21, %v7771_v31  ;;  %3874 = vmatmul.bf16.gmra.mxu2 %v8574_v45  ;;  %v8577_v16 = vld [vmem:[#allocation33_spill] sm:$0xff] }
 0x4bb   : > { %v3633_v32 = vadd.f32 %v7764_v41, %v8577_v16  ;;  %v8580_v41 = vld [vmem:[#allocation36_spill] sm:$0xff] }
 0x4bc   : > { %v4397_v51 = vmax.f32 %v4317_v60, 0.0  ;;  %v4273_v37 = vadd.f32 %v8558_v43, %v4097_v4  ;;  %v8578_v60 = vld [vmem:[#allocation41_spill] sm:$0xff] }
 0x4bd   : > { %v3679_v34 = vpop.f32.mrf.mxu2 }
 0x4be   : > { %4477 = vst [vmem:[%s7301_s9 + $0x218] sm:$0xff] %v4397_v51  ;;  %v4353_v53 = vmax.f32 %v4273_v37, 0.0  ;;  %v3680_v17 = vadd.f32 %v3679_v34, %v3631_v40 }
 0x4bf   : > { %v3803_v6 = vpop.f32.mrf.mxu3 }
 0x4c0   : > { %4433 = vst [vmem:[%s7301_s9 + $0xb8] sm:$0xff] %v4353_v53  ;;  %v4146_v59 = vmul.f32 %v8575_v33, %v3680_v17  ;;  %v3804_v31 = vadd.f32 %v3803_v6, %v7725_v54 }
 0x4c1   : > { %v3777_v58 = vpop.f32.mrf.mxu1 }
 0x4c2   : > { %v4322_v36 = vadd.f32 %v8576_v27, %v4146_v59  ;;  %v4102_v15 = vmul.f32 %v8560_v30, %v3804_v31  ;;  %v7856_v25 = vadd.f32 %v3777_v58, %v7786_v29  ;;  %v8579_v29 = vld [vmem:[#allocation11_spill] sm:$0xff] }
 0x4c4   : > { %v4402_v21 = vmax.f32 %v4322_v36, 0.0  ;;  %v4278_v4 = vadd.f32 %v8578_v60, %v4102_v15  ;;  %5062 = vmatmul.msk.bf16.gmra.mxu1 %vm1864_vm13, %v8545_v12  ;;  %v3896_v36 = vpop.f32.mrf.mxu0 }
 0x4c5   : > { %v3681_v45 = vpop.f32.mrf.mxu2 }
 0x4c6   : > { %4482 = vst [vmem:[%s7301_s9 + $0x240] sm:$0xff] %v4402_v21  ;;  %v4358_v54 = vmax.f32 %v4278_v4, 0.0  ;;  %v3682_v40 = vadd.f32 %v3681_v45, %v3633_v32 }
 0x4c7   : > { %v3806_v51 = vpop.f32.mrf.mxu3 }
 0x4c8   : > { %4438 = vst [vmem:[%s7301_s9 + $0xe0] sm:$0xff] %v4358_v54  ;;  %v4151_v37 = vmul.f32 %v8579_v29, %v3682_v40  ;;  %v3807_v34 = vadd.f32 %v3806_v51, %v7739_v63 }
 0x4c9   : > { %v3779_v53 = vpop.f32.mrf.mxu1 }
 0x4ca   : > { %v4327_v17 = vadd.f32 %v8580_v41, %v4151_v37  ;;  %v4107_v6 = vmul.f32 %v7293_v38, %v3807_v34  ;;  %v7870_v59 = vadd.f32 %v3779_v53, %v7805_v24 }
 0x4cc   : > { %v4407_v12 = vmax.f32 %v4327_v17, 0.0  ;;  %v4283_v31 = vadd.f32 %v8562_v8, %v4107_v6 }
 0x4cd   : > { %v3840_v58 = vpop.f32.mrf.mxu2 }
 0x4ce   : > { %4487 = vst [vmem:[%s7301_s9 + $0x268] sm:$0xff] %v4407_v12  ;;  %v4363_v15 = vmax.f32 %v4283_v31, 0.0  ;;  %v3890_v16 = vadd.f32 %v7821_v44, %v3840_v58  ;;  %v3899_v44 = vpop.f32.mrf.mxu0 }
 0x4cf   : > { %v3808_v32 = vpop.f32.mrf.mxu3 }
 0x4d0   : > { %4443 = vst [vmem:[%s7301_s9 + $0x108] sm:$0xff] %v4363_v15  ;;  %v3809_v63 = vadd.f32 %v3808_v32, %v7755_v52 }
 0x4d1   : > { %v3938_v21 = vpop.f32.mrf.mxu1 }
 0x4d2   : > { %v4112_v4 = vmul.f32 %v8563_v42, %v3809_v63  ;;  %v3939_v24 = vadd.f32 %v3938_v21, %v3890_v16 }
 0x4d4   : > { %v4288_v45 = vadd.f32 %v7378_v26, %v4112_v4  ;;  %v4078_v54 = vmul.f32 %v7228_v9, %v3939_v24 }
 0x4d5   : > { %v3842_v40 = vpop.f32.mrf.mxu2 }
 0x4d6   : > { %v4368_v51 = vmax.f32 %v4288_v45, 0.0  ;;  %v4254_v37 = vadd.f32 %v7291_v5, %v4078_v54  ;;  %v3892_v34 = vadd.f32 %v3891_v3, %v3842_v40  ;;  %v3901_v4 = vpop.f32.mrf.mxu0 }
 0x4d7   : > { %v3811_v53 = vpop.f32.mrf.mxu3 }
 0x4d8   : > { %4448 = vst [vmem:[%s7301_s9 + $0x130] sm:$0xff] %v4368_v51  ;;  %v4334_v17 = vmax.f32 %v4254_v37, 0.0  ;;  %v3812_v52 = vadd.f32 %v3811_v53, %v7769_v56 }
 0x4d9   : > { %v3940_v6 = vpop.f32.mrf.mxu1 }
 0x4da   : > { %4414 = vst [vmem:[%s7301_s9 + $0x20] sm:$0xff] %v4334_v17  ;;  %v4117_v12 = vmul.f32 %v7263_v46, %v3812_v52  ;;  %v3941_v31 = vadd.f32 %v3940_v6, %v3892_v34 }
 0x4dc   : > { %v4293_v9 = vadd.f32 %v8565_v13, %v4117_v12  ;;  %v4083_v58 = vmul.f32 %v8551_v11, %v3941_v31 }
 0x4dd   : > { %v3845_v15 = vpop.f32.mrf.mxu2 }
 0x4de   : > { %v4373_v5 = vmax.f32 %v4293_v9, 0.0  ;;  %v4259_v3 = vadd.f32 %v7330_v0, %v4083_v58  ;;  %v3895_v16 = vadd.f32 %v3894_v50, %v3845_v15  ;;  %v3904_v6 = vpop.f32.mrf.mxu0 }
 0x4df   : > { %v3813_v32 = vpop.f32.mrf.mxu3 }
 0x4e0   : > { %4453 = vst [vmem:[%s7301_s9 + $0x158] sm:$0xff] %v4373_v5  ;;  %v4339_v63 = vmax.f32 %v4259_v3, 0.0  ;;  %v3814_v56 = vadd.f32 %v3813_v32, %v7783_v28 }
 0x4e1   : > { %v3943_v21 = vpop.f32.mrf.mxu1 }
 0x4e2   : > { %4419 = vst [vmem:[%s7301_s9 + $0x48] sm:$0xff] %v4339_v63  ;;  %v4122_v24 = vmul.f32 %v8566_v61, %v3814_v56  ;;  %v3944_v45 = vadd.f32 %v3943_v21, %v3895_v16 }
 0x4e4   : > { %v4298_v11 = vadd.f32 %v7356_v57, %v4122_v24  ;;  %v4088_v54 = vmul.f32 %v8553_v14, %v3944_v45 }
 0x4e5   : > { %v3847_v40 = vpop.f32.mrf.mxu2 }
 0x4e6   : > { %v4378_v0 = vmax.f32 %v4298_v11, 0.0  ;;  %v4264_v50 = vadd.f32 %v8554_v10, %v4088_v54  ;;  %v3897_v51 = vadd.f32 %v3896_v36, %v3847_v40  ;;  %v3906_v56 = vpop.f32.mrf.mxu0 }
 0x4e7   : > { %v3816_v37 = vpop.f32.mrf.mxu3 }
 0x4e8   : > { %4458 = vst [vmem:[%s7301_s9 + $0x180] sm:$0xff] %v4378_v0  ;;  %v4344_v28 = vmax.f32 %v4264_v50, 0.0  ;;  %v3817_v34 = vadd.f32 %v3816_v37, %v7798_v48 }
 0x4e9   : > { %v3945_v53 = vpop.f32.mrf.mxu1 }
 0x4ea   : > { %4424 = vst [vmem:[%s7301_s9 + $0x70] sm:$0xff] %v4344_v28  ;;  %v4127_v17 = vmul.f32 %v8527_v62, %v3817_v34  ;;  %v3946_v52 = vadd.f32 %v3945_v53, %v3897_v51 }
 0x4ec   : > { %v4303_v14 = vadd.f32 %v8568_v7, %v4127_v17  ;;  %v4093_v12 = vmul.f32 %v8556_v22, %v3946_v52 }
 0x4ed   : > { %v3850_v31 = vpop.f32.mrf.mxu2 }
 0x4ee   : > { %v4383_v10 = vmax.f32 %v4303_v14, 0.0  ;;  %v4269_v36 = vadd.f32 %v8538_v55, %v4093_v12  ;;  %v3900_v9 = vadd.f32 %v3899_v44, %v3850_v31  ;;  %v3909_v28 = vpop.f32.mrf.mxu0 }
 0x4ef   : > { %v3818_v58 = vpop.f32.mrf.mxu3 }
 0x4f0   : > { %4463 = vst [vmem:[%s7301_s9 + $0x1a8] sm:$0xff] %v4383_v10  ;;  %v4349_v48 = vmax.f32 %v4269_v36, 0.0  ;;  %v3819_v15 = vadd.f32 %v3818_v58, %v7814_v23 }
 0x4f1   : > { %v3948_v5 = vpop.f32.mrf.mxu1 }
 0x4f2   : > { %4429 = vst [vmem:[%s7301_s9 + $0x98] sm:$0xff] %v4349_v48  ;;  %v4132_v3 = vmul.f32 %v8569_v2, %v3819_v15  ;;  %v3949_v16 = vadd.f32 %v3948_v5, %v3900_v9 }
 0x4f4   : > { %v4308_v32 = vadd.f32 %v7444_v39, %v4132_v3  ;;  %v4098_v22 = vmul.f32 %v7204_v20, %v3949_v16 }
 0x4f5   : > { %v3852_v63 = vpop.f32.mrf.mxu2 }
 0x4f6   : > { %v4388_v55 = vmax.f32 %v4308_v32, 0.0  ;;  %v4274_v44 = vadd.f32 %v8558_v43, %v4098_v22  ;;  %v3902_v21 = vadd.f32 %v3901_v4, %v3852_v63  ;;  %v3911_v58 = vpop.f32.mrf.mxu0 }
 0x4f7   : > { %v3821_v24 = vpop.f32.mrf.mxu3 }
 0x4f8   : > { %4468 = vst [vmem:[%s7301_s9 + $0x1d0] sm:$0xff] %v4388_v55  ;;  %v4354_v23 = vmax.f32 %v4274_v44, 0.0  ;;  %v3822_v45 = vadd.f32 %v3821_v24, %v7829_v18 }
 0x4f9   : > { %v3950_v11 = vpop.f32.mrf.mxu1 }
 0x4fa   : > { %4434 = vst [vmem:[%s7301_s9 + $0xc0] sm:$0xff] %v4354_v23  ;;  %v4137_v54 = vmul.f32 %v8571_v1, %v3822_v45  ;;  %v3951_v40 = vadd.f32 %v3950_v11, %v3902_v21 }
 0x4fc   : > { %v4313_v20 = vadd.f32 %v8572_v35, %v4137_v54  ;;  %v4103_v0 = vmul.f32 %v8560_v30, %v3951_v40 }
 0x4fd   : > { %v3855_v50 = vpop.f32.mrf.mxu2 }
 0x4fe   : > { %v4393_v51 = vmax.f32 %v4313_v20, 0.0  ;;  %v4279_v43 = vadd.f32 %v8578_v60, %v4103_v0  ;;  %v3905_v4 = vadd.f32 %v3904_v6, %v3855_v50  ;;  %v3914_v21 = vpop.f32.mrf.mxu0 }
 0x4ff   : > { %v3823_v37 = vpop.f32.mrf.mxu3 }
 0x500   : > { %4473 = vst [vmem:[%s7301_s9 + $0x1f8] sm:$0xff] %v4393_v51  ;;  %v4359_v18 = vmax.f32 %v4279_v43, 0.0  ;;  %v3824_v34 = vadd.f32 %v3823_v37, %v7843_v47 }
 0x501   : > { %v3953_v53 = vpop.f32.mrf.mxu1 }
 0x502   : > { %4439 = vst [vmem:[%s7301_s9 + $0xe8] sm:$0xff] %v4359_v18  ;;  %v4142_v17 = vmul.f32 %v8573_v49, %v3824_v34  ;;  %v3954_v52 = vadd.f32 %v3953_v53, %v3905_v4 }
 0x504   : > { %v4318_v30 = vadd.f32 %v8546_v19, %v4142_v17  ;;  %v4108_v14 = vmul.f32 %v7293_v38, %v3954_v52 }
 0x505   : > { %v3857_v12 = vpop.f32.mrf.mxu2 }
 0x506   : > { %v4398_v60 = vmax.f32 %v4318_v30, 0.0  ;;  %v4284_v6 = vadd.f32 %v8562_v8, %v4108_v14  ;;  %v3907_v31 = vadd.f32 %v3906_v56, %v3857_v12  ;;  %v3916_v50 = vpop.f32.mrf.mxu0 }
 0x507   : > { %v3826_v10 = vpop.f32.mrf.mxu3 }
 0x508   : > { %4478 = vst [vmem:[%s7301_s9 + $0x220] sm:$0xff] %v4398_v60  ;;  %v4364_v36 = vmax.f32 %v4284_v6, 0.0  ;;  %v3827_v47 = vadd.f32 %v3826_v10, %v7856_v25 }
 0x509   : > { %v3955_v9 = vpop.f32.mrf.mxu1 }
 0x50a   : > { %4444 = vst [vmem:[%s7301_s9 + $0x110] sm:$0xff] %v4364_v36  ;;  %v4147_v48 = vmul.f32 %v8575_v33, %v3827_v47  ;;  %v3956_v15 = vadd.f32 %v3955_v9, %v3907_v31 }
 0x50c   : > { %v4323_v38 = vadd.f32 %v8576_v27, %v4147_v48  ;;  %v4113_v5 = vmul.f32 %v8563_v42, %v3956_v15 }
 0x50d   : > { %v3860_v3 = vpop.f32.mrf.mxu2 }
 0x50e   : > { %v4403_v8 = vmax.f32 %v4323_v38, 0.0  ;;  %v4289_v16 = vadd.f32 %v7378_v26, %v4113_v5  ;;  %v3910_v32 = vadd.f32 %v3909_v28, %v3860_v3  ;;  %v3919_v53 = vpop.f32.mrf.mxu0 }
 0x50f   : > { %v3828_v22 = vpop.f32.mrf.mxu3 }
 0x510   : > { %4483 = vst [vmem:[%s7301_s9 + $0x248] sm:$0xff] %v4403_v8  ;;  %v4369_v25 = vmax.f32 %v4289_v16, 0.0  ;;  %v3829_v63 = vadd.f32 %v3828_v22, %v7870_v59 }
 0x511   : > { %v3958_v56 = vpop.f32.mrf.mxu1 }
 0x512   : > { %4449 = vst [vmem:[%s7301_s9 + $0x138] sm:$0xff] %v4369_v25  ;;  %v4152_v55 = vmul.f32 %v8579_v29, %v3829_v63  ;;  %v3959_v44 = vadd.f32 %v3958_v56, %v3910_v32 }
 0x514   : > { %v4328_v42 = vadd.f32 %v8580_v41, %v4152_v55  ;;  %v4118_v24 = vmul.f32 %v7263_v46, %v3959_v44 }
 0x515   : > { %v3862_v23 = vpop.f32.mrf.mxu2 }
 0x516   : > { %v4408_v26 = vmax.f32 %v4328_v42, 0.0  ;;  %v4294_v45 = vadd.f32 %v8565_v13, %v4118_v24  ;;  %v3912_v11 = vadd.f32 %v3911_v58, %v3862_v23 }
 0x518   : > { %4488 = vst [vmem:[%s7301_s9 + $0x270] sm:$0xff] %v4408_v26  ;;  %v4374_v54 = vmax.f32 %v4294_v45, 0.0 }
 0x519   : > { %v3960_v40 = vpop.f32.mrf.mxu1 }
 0x51a   : > { %4454 = vst [vmem:[%s7301_s9 + $0x160] sm:$0xff] %v4374_v54  ;;  %v3961_v59 = vadd.f32 %v3960_v40, %v3912_v11 }
 0x51c   : > { %v4123_v20 = vmul.f32 %v8566_v61, %v3961_v59 }
 0x51d   : > { %v3865_v0 = vpop.f32.mrf.mxu2 }
 0x51e   : > { %v4299_v51 = vadd.f32 %v7356_v57, %v4123_v20  ;;  %v3915_v43 = vadd.f32 %v3914_v21, %v3865_v0 }
 0x520   : > { %v4379_v46 = vmax.f32 %v4299_v51, 0.0 }
 0x521   : > { %v3963_v4 = vpop.f32.mrf.mxu1 }
 0x522   : > { %4459 = vst [vmem:[%s7301_s9 + $0x188] sm:$0xff] %v4379_v46  ;;  %v3964_v37 = vadd.f32 %v3963_v4, %v3915_v43 }
 0x524   : > { %v4128_v13 = vmul.f32 %v8527_v62, %v3964_v37  ;;  %v3921_v62 = vpop.f32.mrf.mxu0 }
 0x525   : > { %v3867_v28 = vpop.f32.mrf.mxu2 }
 0x526   : > { %v4304_v18 = vadd.f32 %v8568_v7, %v4128_v13  ;;  %v3917_v34 = vadd.f32 %v3916_v50, %v3867_v28 }
 0x528   : > { %v4384_v17 = vmax.f32 %v4304_v18, 0.0 }
 0x529   : > { %v3965_v61 = vpop.f32.mrf.mxu1 }
 0x52a   : > { %4464 = vst [vmem:[%s7301_s9 + $0x1b0] sm:$0xff] %v4384_v17  ;;  %v3966_v52 = vadd.f32 %v3965_v61, %v3917_v34 }
 0x52c   : > { %v4133_v57 = vmul.f32 %v8569_v2, %v3966_v52  ;;  %v3924_v48 = vpop.f32.mrf.mxu0 }
 0x52d   : > { %v3870_v30 = vpop.f32.mrf.mxu2 }
 0x52e   : > { %v4309_v14 = vadd.f32 %v7444_v39, %v4133_v57  ;;  %v3920_v12 = vadd.f32 %v3919_v53, %v3870_v30 }
 0x530   : > { %v4389_v60 = vmax.f32 %v4309_v14, 0.0 }
 0x531   : > { %v3968_v6 = vpop.f32.mrf.mxu1 }
 0x532   : > { %4469 = vst [vmem:[%s7301_s9 + $0x1d8] sm:$0xff] %v4389_v60  ;;  %v3969_v31 = vadd.f32 %v3968_v6, %v3920_v12 }
 0x534   : > { %v4138_v7 = vmul.f32 %v8571_v1, %v3969_v31  ;;  %v3926_v32 = vpop.f32.mrf.mxu0 }
 0x535   : > { %v3872_v10 = vpop.f32.mrf.mxu2 }
 0x536   : > { %v4314_v36 = vadd.f32 %v8572_v35, %v4138_v7  ;;  %v3922_v47 = vadd.f32 %v3921_v62, %v3872_v10 }
 0x538   : > { %v4394_v9 = vmax.f32 %v4314_v36, 0.0 }
 0x539   : > { %v3970_v58 = vpop.f32.mrf.mxu1 }
 0x53a   : > { %4474 = vst [vmem:[%s7301_s9 + $0x200] sm:$0xff] %v4394_v9  ;;  %v3971_v2 = vadd.f32 %v3970_v58, %v3922_v47 }
 0x53c   : > { %v4143_v39 = vmul.f32 %v8573_v49, %v3971_v2 }
 0x53d   : > { %v3875_v15 = vpop.f32.mrf.mxu2 }
 0x53e   : > { %v4319_v38 = vadd.f32 %v8546_v19, %v4143_v39  ;;  %v3925_v5 = vadd.f32 %v3924_v48, %v3875_v15 }
 0x540   : > { %v4399_v3 = vmax.f32 %v4319_v38, 0.0 }
 0x541   : > { %v3973_v1 = vpop.f32.mrf.mxu1 }
 0x542   : > { %4479 = vst [vmem:[%s7301_s9 + $0x228] sm:$0xff] %v4399_v3  ;;  %v3974_v8 = vadd.f32 %v3973_v1, %v3925_v5 }
 0x544   : > { %v4148_v35 = vmul.f32 %v8575_v33, %v3974_v8 }
 0x545   : > { %v3877_v16 = vpop.f32.mrf.mxu2 }
 0x546   : > { %v4324_v22 = vadd.f32 %v8576_v27, %v4148_v35  ;;  %v3927_v25 = vadd.f32 %v3926_v32, %v3877_v16 }
 0x548   : > { %v4404_v49 = vmax.f32 %v4324_v22, 0.0 }
 0x549   : > { %v3975_v63 = vpop.f32.mrf.mxu1 }
 0x54a   : > { %4484 = vst [vmem:[%s7301_s9 + $0x250] sm:$0xff] %v4404_v49  ;;  %v3976_v19 = vadd.f32 %v3975_v63, %v3927_v25 }
 0x54c   : > { %v4153_v56 = vmul.f32 %v8579_v29, %v3976_v19 }
 0x54e   : > { %v4329_v33 = vadd.f32 %v8580_v41, %v4153_v56 }
 0x550   : > { %v4409_v27 = vmax.f32 %v4329_v33, 0.0 }
 0x552   : > { %4489 = vst [vmem:[%s7301_s9 + $0x278] sm:$0xff] %v4409_v27 }
 0x553   : > { %5329 = shalt.err (!%p5326_p5)
}
 0x554   : > { %s5431_s30 = smov 640  }
 0x555   : > { %5194 = dma.vmem_to_hbm [thread:$0]  (%p5497_p4), %s4506_s11, 10240, %s4508_s7, %s4491_s18, %s5431_s30, %s5431_s30, %s8376_s12  }
 0x556 PF: > { %p5200_p6 = scmp.ge.s32.totalorder %s5380_s20, 2  ;;  %s4522_s9 = sand.u32 1, %s5360_s15  }
 0x557   : > { %s4523_s8 = scalar_lea.sflag [#allocation4], %s4522_s9 }
 0x558   : > { %p5197_p7 = pnand %p5200_p6, %p5504_p8 }
 0x55a   : > { %p5198_p9 = pneg %p5197_p7 }
 0x55c   : > { %5355 = dma.done.wait (%p5198_p9), %s4523_s8, 10240  }
 0x55d   : > { %5357 = vsyncadd (%p5198_p9), %s4523_s8, 4294957056  ;;  %s17_s20 = sadd.s32 1, %s5380_s20   ;;  %s8581_s15 = smov %s5364_s16 }
 0x55e   : > { %p14_p10 = scmp.ge.s32.totalorder %s17_s20, 4   ;;  %s8582_s16 = smov %s5368_s17 }
 0x55f   : > { %s8583_s17 = smov %s5510_s28  ;;  %s8584_s18 = smov %s5376_s19 }
 0x560   : > { %s8585_s19 = smov %s8587_s23  ;;  %16 = sbr.rel (!%p14_p10) target bundleno = 4 (0x4), region = 173 }
 0x565   :  { %4529 = vsyncpa [#allocation4], 1 }
 0x566   :  { %4531 = vsyncpa [#allocation4 + $0x1], 1 }

</bundles_post_ra>
